<compile_context>
chip_gen: v7x
topology: tpu7x:2x2x1
jax: 0.10.0
libtpu: 0.0.40
codegen_flags: <defaults>
</compile_context>

<pallas_src>
import functools

import jax
import jax.numpy as jnp
from jax.experimental import pallas as pl
from jax.experimental.pallas import tpu as pltpu


def _round_up(x, m):
    return (x + m - 1) // m * m


# ----------------------------- Pallas kernels ------------------------------

def _conv_pool_kernel(p_ref, w_ref, b_ref, o_ref, *, act):
    """Fused conv(im2col matmul) + bias + act + 2x2 max-pool.

    p_ref: (4, TM, Kp)  -- one leading slice per 2x2 pool tap
    w_ref: (Kp, OCp)    -- K/lane padded weights
    b_ref: (1, OCp)
    o_ref: (TM, OC)     -- compact pooled output (no lane padding in HBM)
    """
    w = w_ref[...]
    y = jnp.dot(p_ref[0], w, preferred_element_type=jnp.float32)
    y = jnp.maximum(y, jnp.dot(p_ref[1], w, preferred_element_type=jnp.float32))
    y = jnp.maximum(y, jnp.dot(p_ref[2], w, preferred_element_type=jnp.float32))
    y = jnp.maximum(y, jnp.dot(p_ref[3], w, preferred_element_type=jnp.float32))
    y = y + b_ref[...]
    if act == "relu":
        y = jnp.maximum(y, 0.0)
    o_ref[...] = y[:, :o_ref.shape[-1]]


def _head_kernel(p_ref, w3_ref, b3_ref, w4_ref, b4_ref, o_ref):
    """Fused fc1(5x5 conv) + 2x2 max-pool + relu + fc2(1x1 conv) + sigmoid."""
    w3 = w3_ref[...]
    y = jnp.dot(p_ref[0], w3, preferred_element_type=jnp.float32)
    y = jnp.maximum(y, jnp.dot(p_ref[1], w3, preferred_element_type=jnp.float32))
    y = jnp.maximum(y, jnp.dot(p_ref[2], w3, preferred_element_type=jnp.float32))
    y = jnp.maximum(y, jnp.dot(p_ref[3], w3, preferred_element_type=jnp.float32))
    y = jnp.maximum(y + b3_ref[...], 0.0)        # relu(pool(fc1)); padded lanes stay 0
    z = jnp.dot(y, w4_ref[...], preferred_element_type=jnp.float32) + b4_ref[...]
    z = 1.0 / (1.0 + jnp.exp(-z))                # sigmoid (exp/recip on the EUP)
    o_ref[...] = z[:, :o_ref.shape[-1]]


# ----------------------------- glue + wrappers ------------------------------

def _tap_patches(x, kh, kw, stride, ph, pw):
    """NHWC x -> (4, N*ph*pw, C*kh*kw) im2col patches grouped by 2x2-pool tap.

    Tap t = 2*dy+dx covers conv output (2*p+dy, 2*q+dx) for pooled position (p, q).
    K is ordered (C slowest, then kh, kw) to match OIHW weight.reshape(OC, C*KH*KW).
    """
    n, _, _, c = x.shape
    s2 = 2 * stride
    taps = []
    for dy in range(2):
        for dx in range(2):
            cols = []
            for i in range(kh):
                for j in range(kw):
                    r0 = stride * dy + i
                    c0 = stride * dx + j
                    cols.append(x[:, r0:r0 + s2 * ph:s2, c0:c0 + s2 * pw:s2, :])
            p = jnp.stack(cols, axis=-1)                       # (N, ph, pw, C, kh*kw)
            taps.append(p.reshape(n * ph * pw, c * kh * kw))
    return jnp.stack(taps, axis=0)


def conv_relu_pool(x, w2, b2, *, oc, kh, kw, stride, act="relu", tile_m=None):
    """Fused valid conv(stride) + bias + act + MaxPool2d(2,2).  x and result are NHWC."""
    n, h, w_in, c = x.shape
    oh = (h - kh) // stride + 1
    ow = (w_in - kw) // stride + 1
    ph, pw = oh // 2, ow // 2
    m = n * ph * pw
    k = c * kh * kw
    kp, ocp = w2.shape

    if tile_m is None:
        tile_m = _round_up(m, 8)
    mp = _round_up(m, tile_m)

    patches = _tap_patches(x, kh, kw, stride, ph, pw)          # (4, m, k)
    patches = jnp.pad(patches, ((0, 0), (0, mp - m), (0, kp - k)))

    out = pl.pallas_call(
        functools.partial(_conv_pool_kernel, act=act),
        out_shape=jax.ShapeDtypeStruct((mp, oc), jnp.float32),
        grid_spec=pltpu.PrefetchScalarGridSpec(
            num_scalar_prefetch=0,
            grid=(mp // tile_m,),
            in_specs=[
                pl.BlockSpec((4, tile_m, kp), lambda i: (0, i, 0)),
                pl.BlockSpec((kp, ocp), lambda i: (0, 0)),
                pl.BlockSpec((1, ocp), lambda i: (0, 0)),
            ],
            out_specs=pl.BlockSpec((tile_m, oc), lambda i: (i, 0)),
        ),
        compiler_params=pltpu.CompilerParams(
            dimension_semantics=("parallel",)),
    )(patches, w2, b2)
    return out[:m].reshape(n, ph, pw, oc)


def head(x, w3, b3, w4, b4, *, oc_out=1, kh=5, kw=5):
    """Fused fc1 (5x5 conv) + pool + relu + fc2 (1x1 conv) + sigmoid.  x is NHWC."""
    n, h, w_in, c = x.shape
    oh, ow = h - kh + 1, w_in - kw + 1
    ph, pw = oh // 2, ow // 2
    m = n * ph * pw
    k = c * kh * kw
    kp, oc3p = w3.shape
    mp = _round_up(m, 8)

    patches = _tap_patches(x, kh, kw, 1, ph, pw)
    patches = jnp.pad(patches, ((0, 0), (0, mp - m), (0, kp - k)))

    out = pl.pallas_call(
        _head_kernel,
        out_shape=jax.ShapeDtypeStruct((mp, oc_out), jnp.float32),
        grid_spec=pltpu.PrefetchScalarGridSpec(
            num_scalar_prefetch=0,
            grid=(1,),
            in_specs=[
                pl.BlockSpec((4, mp, kp), lambda i: (0, 0, 0)),
                pl.BlockSpec((kp, oc3p), lambda i: (0, 0)),
                pl.BlockSpec((1, oc3p), lambda i: (0, 0)),
                pl.BlockSpec(w4.shape, lambda i: (0, 0)),
                pl.BlockSpec((1, w4.shape[1]), lambda i: (0, 0)),
            ],
            out_specs=pl.BlockSpec((mp, oc_out), lambda i: (0, 0)),
        ),
        compiler_params=pltpu.CompilerParams(
            dimension_semantics=("arbitrary",)),
    )(patches, w3, b3, w4, b4)
    return out[:m].reshape(n, ph, pw, oc_out)


def prepare_params(p):
    """Reshape/pad PyTorch OIHW conv weights to matmul layout ONCE, outside jit."""
    def prep(w, b):
        oc, c, kh, kw = w.shape
        k = c * kh * kw
        kp, ocp = _round_up(k, 128), _round_up(oc, 128)
        w2 = jnp.pad(w.reshape(oc, k).T, ((0, kp - k), (0, ocp - oc)))
        b2 = jnp.pad(b, (0, ocp - oc)).reshape(1, ocp)
        return w2, b2

    out = {}
    for name in ("1", "2", "3", "4"):
        w2, b2 = prep(p["w" + name], p["b" + name])
        out["w" + name] = w2
        out["b" + name] = b2
    return out


# ----------------------------- Net forward ------------------------------

@jax.jit
def net_forward(x, p):
    """Eval-mode forward of Net.  x is NCHW (PyTorch convention), p is prepared."""
    x = jnp.transpose(x, (0, 2, 3, 1))                         # NHWC internally
    # x = self.pool(F.relu(self.conv1(x)))
    x = conv_relu_pool(x, p["w1"], p["b1"], oc=6, kh=5, kw=5, stride=2,
                       act="relu", tile_m=512)
    # x = self.pool(F.relu(self.conv2(x)))
    x = conv_relu_pool(x, p["w2"], p["b2"], oc=32, kh=5, kw=5, stride=2,
                       act="relu")
    # x = self.sigmoid(self.fc2(F.relu(self.pool(self.fc1(x)))))
    x = head(x, p["w3"], p["b3"], p["w4"], p["b4"], oc_out=1, kh=5, kw=5)
    # eval-mode semantics: keep (N, 1, H', W').
    # TODO(synk): training-mode `x.view(-1)` flatten omitted (module run in eval mode).
    return jnp.transpose(x, (0, 3, 1, 2))


# ----------------------------- pure-JAX reference ------------------------------

def _ref_conv(x, w, b, stride):
    y = jax.lax.conv_general_dilated(
        x, w, (stride, stride), "VALID",
        dimension_numbers=("NCHW", "OIHW", "NCHW"))
    return y + b.reshape(1, -1, 1, 1)


def _ref_pool(x):
    return jax.lax.reduce_window(x, -jnp.inf, jax.lax.max,
                                 (1, 1, 2, 2), (1, 1, 2, 2), "VALID")


def net_forward_ref(x, p):
    x = _ref_pool(jax.nn.relu(_ref_conv(x, p["w1"], p["b1"], 2)))
    x = _ref_pool(jax.nn.relu(_ref_conv(x, p["w2"], p["b2"], 2)))
    x = jax.nn.relu(_ref_pool(_ref_conv(x, p["w3"], p["b3"], 1)))
    x = _ref_conv(x, p["w4"], p["b4"], 1)
    return jax.nn.sigmoid(x)


# ----------------------------- main ------------------------------

if __name__ == "__main__":
    key = jax.random.PRNGKey(0)
    kx, k1w, k1b, k2w, k2b, k3w, k3b, k4w, k4b = jax.random.split(key, 9)

    # Spatial 128 is the smallest round size for which every valid conv / floor pool
    # in this net still produces >=1 output (final output is (2, 1, 1, 1)).
    x = jax.random.normal(kx, (2, 3, 128, 128), dtype=jnp.float32)

    def init_conv(kw_, kb_, oc, ic, kh, kww):
        fan_in = ic * kh * kww
        bound = 1.0 / (fan_in ** 0.5)
        w = jax.random.uniform(kw_, (oc, ic, kh, kww), jnp.float32, -bound, bound)
        b = jax.random.uniform(kb_, (oc,), jnp.float32, -bound, bound)
        return w, b

    w1, b1 = init_conv(k1w, k1b, 6, 3, 5, 5)    # conv1
    w2, b2 = init_conv(k2w, k2b, 32, 6, 5, 5)   # conv2
    w3, b3 = init_conv(k3w, k3b, 16, 32, 5, 5)  # fc1 (conv)
    w4, b4 = init_conv(k4w, k4b, 1, 16, 1, 1)   # fc2 (1x1 conv)
    params = dict(w1=w1, b1=b1, w2=w2, b2=b2, w3=w3, b3=b3, w4=w4, b4=b4)
    prepped = prepare_params(params)            # pad/reshape weights once, outside jit

    out = jax.block_until_ready(net_forward(x, prepped))
    ref = jax.block_until_ready(net_forward_ref(x, params))

    assert out.shape == (2, 1, 1, 1), out.shape
    assert jnp.allclose(out, ref, rtol=1e-3, atol=1e-5), (out, ref)
    print("KERNEL_OK")
</pallas_src>

<mosaic_0001>
module attributes {stable_mosaic.version = 11 : i64} {
  func.func @_conv_pool_kernel(%arg0: i32, %arg1: memref<4x512x128xf32, #tpu.memory_space<vmem>>, %arg2: memref<128x128xf32, #tpu.memory_space<vmem>>, %arg3: memref<1x128xf32, #tpu.memory_space<vmem>>, %arg4: memref<512x6xf32, #tpu.memory_space<vmem>>) attributes {dimension_semantics = [#tpu.dimension_semantics<parallel>], iteration_bounds = array<i64: 4>, scalar_prefetch = 0 : i64, scratch_operands = 0 : i64, tpu.core_type = #tpu.core_type<tc>, window_params = [{transform_indices = @transform_0, window_bounds = array<i64: 4, 512, 128>}, {pipeline_mode = #tpu.pipeline_mode<synchronous>, transform_indices = @transform_1, window_bounds = array<i64: 128, 128>}, {pipeline_mode = #tpu.pipeline_mode<synchronous>, transform_indices = @transform_2, window_bounds = array<i64: 1, 128>}, {transform_indices = @transform_3, window_bounds = array<i64: 512, 6>}]} {
    %c0 = arith.constant 0 : index
    %c0_0 = arith.constant 0 : index
    %0 = vector.load %arg2[%c0, %c0_0] : memref<128x128xf32, #tpu.memory_space<vmem>>, vector<128x128xf32>
    %c0_1 = arith.constant 0 : index
    %c0_2 = arith.constant 0 : index
    %c0_3 = arith.constant 0 : index
    %1 = vector.load %arg1[%c0_1, %c0_2, %c0_3] : memref<4x512x128xf32, #tpu.memory_space<vmem>>, vector<1x512x128xf32>
    %2 = vector.shape_cast %1 : vector<1x512x128xf32> to vector<512x128xf32>
    %cst = arith.constant dense<0.000000e+00> : vector<512x128xf32>
    %3 = tpu.matmul %2, %0, %cst {dimension_numbers = #tpu.dot_dimension_numbers<[1], [0], [0], [1], [0, 0, 1, 1], [], []>} : vector<512x128xf32>, vector<128x128xf32>, vector<512x128xf32> -> vector<512x128xf32>
    %c1 = arith.constant 1 : index
    %c0_4 = arith.constant 0 : index
    %c0_5 = arith.constant 0 : index
    %4 = vector.load %arg1[%c1, %c0_4, %c0_5] : memref<4x512x128xf32, #tpu.memory_space<vmem>>, vector<1x512x128xf32>
    %5 = vector.shape_cast %4 : vector<1x512x128xf32> to vector<512x128xf32>
    %cst_6 = arith.constant dense<0.000000e+00> : vector<512x128xf32>
    %6 = tpu.matmul %5, %0, %cst_6 {dimension_numbers = #tpu.dot_dimension_numbers<[1], [0], [0], [1], [0, 0, 1, 1], [], []>} : vector<512x128xf32>, vector<128x128xf32>, vector<512x128xf32> -> vector<512x128xf32>
    %7 = arith.maximumf %3, %6 : vector<512x128xf32>
    %c2 = arith.constant 2 : index
    %c0_7 = arith.constant 0 : index
    %c0_8 = arith.constant 0 : index
    %8 = vector.load %arg1[%c2, %c0_7, %c0_8] : memref<4x512x128xf32, #tpu.memory_space<vmem>>, vector<1x512x128xf32>
    %9 = vector.shape_cast %8 : vector<1x512x128xf32> to vector<512x128xf32>
    %cst_9 = arith.constant dense<0.000000e+00> : vector<512x128xf32>
    %10 = tpu.matmul %9, %0, %cst_9 {dimension_numbers = #tpu.dot_dimension_numbers<[1], [0], [0], [1], [0, 0, 1, 1], [], []>} : vector<512x128xf32>, vector<128x128xf32>, vector<512x128xf32> -> vector<512x128xf32>
    %11 = arith.maximumf %7, %10 : vector<512x128xf32>
    %c3 = arith.constant 3 : index
    %c0_10 = arith.constant 0 : index
    %c0_11 = arith.constant 0 : index
    %12 = vector.load %arg1[%c3, %c0_10, %c0_11] : memref<4x512x128xf32, #tpu.memory_space<vmem>>, vector<1x512x128xf32>
    %13 = vector.shape_cast %12 : vector<1x512x128xf32> to vector<512x128xf32>
    %cst_12 = arith.constant dense<0.000000e+00> : vector<512x128xf32>
    %14 = tpu.matmul %13, %0, %cst_12 {dimension_numbers = #tpu.dot_dimension_numbers<[1], [0], [0], [1], [0, 0, 1, 1], [], []>} : vector<512x128xf32>, vector<128x128xf32>, vector<512x128xf32> -> vector<512x128xf32>
    %15 = arith.maximumf %11, %14 : vector<512x128xf32>
    %c0_13 = arith.constant 0 : index
    %c0_14 = arith.constant 0 : index
    %16 = vector.load %arg3[%c0_13, %c0_14] : memref<1x128xf32, #tpu.memory_space<vmem>>, vector<1x128xf32>
    %17 = vector.broadcast %16 : vector<1x128xf32> to vector<512x128xf32>
    %18 = arith.addf %15, %17 : vector<512x128xf32>
    %cst_15 = arith.constant 0.000000e+00 : f32
    %19 = vector.broadcast %cst_15 : f32 to vector<512x128xf32>
    %20 = arith.maximumf %18, %19 : vector<512x128xf32>
    %21 = vector.extract_strided_slice %20 {offsets = [0, 0], sizes = [512, 6], strides = [1, 1]} : vector<512x128xf32> to vector<512x6xf32>
    %c0_16 = arith.constant 0 : index
    %c0_17 = arith.constant 0 : index
    %22 = vector.load %arg4[%c0_16, %c0_17] : memref<512x6xf32, #tpu.memory_space<vmem>>, vector<512x6xf32>
    tpu.vector_store %arg4[%c0_16, %c0_17], %21 {strides = array<i32>} : memref<512x6xf32, #tpu.memory_space<vmem>>, vector<512x6xf32>,
    return
  }
  func.func @transform_0(%arg0: i32) -> (i32, i32, i32) {
    %c0_i32 = arith.constant 0 : i32
    %c0_i32_0 = arith.constant 0 : i32
    %c0_i32_1 = arith.constant 0 : i32
    return %c0_i32, %arg0, %c0_i32_0 : i32, i32, i32
  }
  func.func @transform_1(%arg0: i32) -> (i32, i32) {
    %c0_i32 = arith.constant 0 : i32
    %c0_i32_0 = arith.constant 0 : i32
    %c0_i32_1 = arith.constant 0 : i32
    return %c0_i32, %c0_i32_0 : i32, i32
  }
  func.func @transform_2(%arg0: i32) -> (i32, i32) {
    %c0_i32 = arith.constant 0 : i32
    %c0_i32_0 = arith.constant 0 : i32
    %c0_i32_1 = arith.constant 0 : i32
    return %c0_i32, %c0_i32_0 : i32, i32
  }
  func.func @transform_3(%arg0: i32) -> (i32, i32) {
    %c0_i32 = arith.constant 0 : i32
    %c0_i32_0 = arith.constant 0 : i32
    return %arg0, %c0_i32 : i32, i32
  }
}

module attributes {stable_mosaic.version = 11 : i64} {
  func.func @_conv_pool_kernel(%arg0: i32, %arg1: memref<4x104x256xf32, #tpu.memory_space<vmem>>, %arg2: memref<256x128xf32, #tpu.memory_space<vmem>>, %arg3: memref<1x128xf32, #tpu.memory_space<vmem>>, %arg4: memref<104x32xf32, #tpu.memory_space<vmem>>) attributes {dimension_semantics = [#tpu.dimension_semantics<parallel>], iteration_bounds = array<i64: 1>, scalar_prefetch = 0 : i64, scratch_operands = 0 : i64, tpu.core_type = #tpu.core_type<tc>, window_params = [{transform_indices = @transform_0, window_bounds = array<i64: 4, 104, 256>}, {pipeline_mode = #tpu.pipeline_mode<synchronous>, transform_indices = @transform_1, window_bounds = array<i64: 256, 128>}, {pipeline_mode = #tpu.pipeline_mode<synchronous>, transform_indices = @transform_2, window_bounds = array<i64: 1, 128>}, {transform_indices = @transform_3, window_bounds = array<i64: 104, 32>}]} {
    %c0 = arith.constant 0 : index
    %c0_0 = arith.constant 0 : index
    %0 = vector.load %arg2[%c0, %c0_0] : memref<256x128xf32, #tpu.memory_space<vmem>>, vector<256x128xf32>
    %c0_1 = arith.constant 0 : index
    %c0_2 = arith.constant 0 : index
    %c0_3 = arith.constant 0 : index
    %1 = vector.load %arg1[%c0_1, %c0_2, %c0_3] : memref<4x104x256xf32, #tpu.memory_space<vmem>>, vector<1x104x256xf32>
    %2 = vector.shape_cast %1 : vector<1x104x256xf32> to vector<104x256xf32>
    %cst = arith.constant dense<0.000000e+00> : vector<104x128xf32>
    %3 = tpu.matmul %2, %0, %cst {dimension_numbers = #tpu.dot_dimension_numbers<[1], [0], [0], [1], [0, 0, 1, 1], [], []>} : vector<104x256xf32>, vector<256x128xf32>, vector<104x128xf32> -> vector<104x128xf32>
    %c1 = arith.constant 1 : index
    %c0_4 = arith.constant 0 : index
    %c0_5 = arith.constant 0 : index
    %4 = vector.load %arg1[%c1, %c0_4, %c0_5] : memref<4x104x256xf32, #tpu.memory_space<vmem>>, vector<1x104x256xf32>
    %5 = vector.shape_cast %4 : vector<1x104x256xf32> to vector<104x256xf32>
    %cst_6 = arith.constant dense<0.000000e+00> : vector<104x128xf32>
    %6 = tpu.matmul %5, %0, %cst_6 {dimension_numbers = #tpu.dot_dimension_numbers<[1], [0], [0], [1], [0, 0, 1, 1], [], []>} : vector<104x256xf32>, vector<256x128xf32>, vector<104x128xf32> -> vector<104x128xf32>
    %7 = arith.maximumf %3, %6 : vector<104x128xf32>
    %c2 = arith.constant 2 : index
    %c0_7 = arith.constant 0 : index
    %c0_8 = arith.constant 0 : index
    %8 = vector.load %arg1[%c2, %c0_7, %c0_8] : memref<4x104x256xf32, #tpu.memory_space<vmem>>, vector<1x104x256xf32>
    %9 = vector.shape_cast %8 : vector<1x104x256xf32> to vector<104x256xf32>
    %cst_9 = arith.constant dense<0.000000e+00> : vector<104x128xf32>
    %10 = tpu.matmul %9, %0, %cst_9 {dimension_numbers = #tpu.dot_dimension_numbers<[1], [0], [0], [1], [0, 0, 1, 1], [], []>} : vector<104x256xf32>, vector<256x128xf32>, vector<104x128xf32> -> vector<104x128xf32>
    %11 = arith.maximumf %7, %10 : vector<104x128xf32>
    %c3 = arith.constant 3 : index
    %c0_10 = arith.constant 0 : index
    %c0_11 = arith.constant 0 : index
    %12 = vector.load %arg1[%c3, %c0_10, %c0_11] : memref<4x104x256xf32, #tpu.memory_space<vmem>>, vector<1x104x256xf32>
    %13 = vector.shape_cast %12 : vector<1x104x256xf32> to vector<104x256xf32>
    %cst_12 = arith.constant dense<0.000000e+00> : vector<104x128xf32>
    %14 = tpu.matmul %13, %0, %cst_12 {dimension_numbers = #tpu.dot_dimension_numbers<[1], [0], [0], [1], [0, 0, 1, 1], [], []>} : vector<104x256xf32>, vector<256x128xf32>, vector<104x128xf32> -> vector<104x128xf32>
    %15 = arith.maximumf %11, %14 : vector<104x128xf32>
    %c0_13 = arith.constant 0 : index
    %c0_14 = arith.constant 0 : index
    %16 = vector.load %arg3[%c0_13, %c0_14] : memref<1x128xf32, #tpu.memory_space<vmem>>, vector<1x128xf32>
    %17 = vector.broadcast %16 : vector<1x128xf32> to vector<104x128xf32>
    %18 = arith.addf %15, %17 : vector<104x128xf32>
    %cst_15 = arith.constant 0.000000e+00 : f32
    %19 = vector.broadcast %cst_15 : f32 to vector<104x128xf32>
    %20 = arith.maximumf %18, %19 : vector<104x128xf32>
    %21 = vector.extract_strided_slice %20 {offsets = [0, 0], sizes = [104, 32], strides = [1, 1]} : vector<104x128xf32> to vector<104x32xf32>
    %c0_16 = arith.constant 0 : index
    %c0_17 = arith.constant 0 : index
    %22 = vector.load %arg4[%c0_16, %c0_17] : memref<104x32xf32, #tpu.memory_space<vmem>>, vector<104x32xf32>
    tpu.vector_store %arg4[%c0_16, %c0_17], %21 {strides = array<i32>} : memref<104x32xf32, #tpu.memory_space<vmem>>, vector<104x32xf32>,
    return
  }
  func.func @transform_0(%arg0: i32) -> (i32, i32, i32) {
    %c0_i32 = arith.constant 0 : i32
    %c0_i32_0 = arith.constant 0 : i32
    %c0_i32_1 = arith.constant 0 : i32
    return %c0_i32, %arg0, %c0_i32_0 : i32, i32, i32
  }
  func.func @transform_1(%arg0: i32) -> (i32, i32) {
    %c0_i32 = arith.constant 0 : i32
    %c0_i32_0 = arith.constant 0 : i32
    %c0_i32_1 = arith.constant 0 : i32
    return %c0_i32, %c0_i32_0 : i32, i32
  }
  func.func @transform_2(%arg0: i32) -> (i32, i32) {
    %c0_i32 = arith.constant 0 : i32
    %c0_i32_0 = arith.constant 0 : i32
    %c0_i32_1 = arith.constant 0 : i32
    return %c0_i32, %c0_i32_0 : i32, i32
  }
  func.func @transform_3(%arg0: i32) -> (i32, i32) {
    %c0_i32 = arith.constant 0 : i32
    %c0_i32_0 = arith.constant 0 : i32
    return %arg0, %c0_i32 : i32, i32
  }
}

module attributes {stable_mosaic.version = 11 : i64} {
  func.func @_head_kernel(%arg0: i32, %arg1: memref<4x8x896xf32, #tpu.memory_space<vmem>>, %arg2: memref<896x128xf32, #tpu.memory_space<vmem>>, %arg3: memref<1x128xf32, #tpu.memory_space<vmem>>, %arg4: memref<128x128xf32, #tpu.memory_space<vmem>>, %arg5: memref<1x128xf32, #tpu.memory_space<vmem>>, %arg6: memref<8x1xf32, #tpu.memory_space<vmem>>) attributes {dimension_semantics = [#tpu.dimension_semantics<arbitrary>], iteration_bounds = array<i64: 1>, scalar_prefetch = 0 : i64, scratch_operands = 0 : i64, tpu.core_type = #tpu.core_type<tc>, window_params = [{pipeline_mode = #tpu.pipeline_mode<synchronous>, transform_indices = @transform_0, window_bounds = array<i64: 4, 8, 896>}, {pipeline_mode = #tpu.pipeline_mode<synchronous>, transform_indices = @transform_1, window_bounds = array<i64: 896, 128>}, {pipeline_mode = #tpu.pipeline_mode<synchronous>, transform_indices = @transform_2, window_bounds = array<i64: 1, 128>}, {pipeline_mode = #tpu.pipeline_mode<synchronous>, transform_indices = @transform_3, window_bounds = array<i64: 128, 128>}, {pipeline_mode = #tpu.pipeline_mode<synchronous>, transform_indices = @transform_4, window_bounds = array<i64: 1, 128>}, {pipeline_mode = #tpu.pipeline_mode<synchronous>, transform_indices = @transform_5, window_bounds = array<i64: 8, 1>}]} {
    %c0 = arith.constant 0 : index
    %c0_0 = arith.constant 0 : index
    %0 = vector.load %arg2[%c0, %c0_0] : memref<896x128xf32, #tpu.memory_space<vmem>>, vector<896x128xf32>
    %c0_1 = arith.constant 0 : index
    %c0_2 = arith.constant 0 : index
    %c0_3 = arith.constant 0 : index
    %1 = vector.load %arg1[%c0_1, %c0_2, %c0_3] : memref<4x8x896xf32, #tpu.memory_space<vmem>>, vector<1x8x896xf32>
    %2 = vector.shape_cast %1 : vector<1x8x896xf32> to vector<8x896xf32>
    %cst = arith.constant dense<0.000000e+00> : vector<8x128xf32>
    %3 = tpu.matmul %2, %0, %cst {dimension_numbers = #tpu.dot_dimension_numbers<[1], [0], [0], [1], [0, 0, 1, 1], [], []>} : vector<8x896xf32>, vector<896x128xf32>, vector<8x128xf32> -> vector<8x128xf32>
    %c1 = arith.constant 1 : index
    %c0_4 = arith.constant 0 : index
    %c0_5 = arith.constant 0 : index
    %4 = vector.load %arg1[%c1, %c0_4, %c0_5] : memref<4x8x896xf32, #tpu.memory_space<vmem>>, vector<1x8x896xf32>
    %5 = vector.shape_cast %4 : vector<1x8x896xf32> to vector<8x896xf32>
    %cst_6 = arith.constant dense<0.000000e+00> : vector<8x128xf32>
    %6 = tpu.matmul %5, %0, %cst_6 {dimension_numbers = #tpu.dot_dimension_numbers<[1], [0], [0], [1], [0, 0, 1, 1], [], []>} : vector<8x896xf32>, vector<896x128xf32>, vector<8x128xf32> -> vector<8x128xf32>
    %7 = arith.maximumf %3, %6 : vector<8x128xf32>
    %c2 = arith.constant 2 : index
    %c0_7 = arith.constant 0 : index
    %c0_8 = arith.constant 0 : index
    %8 = vector.load %arg1[%c2, %c0_7, %c0_8] : memref<4x8x896xf32, #tpu.memory_space<vmem>>, vector<1x8x896xf32>
    %9 = vector.shape_cast %8 : vector<1x8x896xf32> to vector<8x896xf32>
    %cst_9 = arith.constant dense<0.000000e+00> : vector<8x128xf32>
    %10 = tpu.matmul %9, %0, %cst_9 {dimension_numbers = #tpu.dot_dimension_numbers<[1], [0], [0], [1], [0, 0, 1, 1], [], []>} : vector<8x896xf32>, vector<896x128xf32>, vector<8x128xf32> -> vector<8x128xf32>
    %11 = arith.maximumf %7, %10 : vector<8x128xf32>
    %c3 = arith.constant 3 : index
    %c0_10 = arith.constant 0 : index
    %c0_11 = arith.constant 0 : index
    %12 = vector.load %arg1[%c3, %c0_10, %c0_11] : memref<4x8x896xf32, #tpu.memory_space<vmem>>, vector<1x8x896xf32>
    %13 = vector.shape_cast %12 : vector<1x8x896xf32> to vector<8x896xf32>
    %cst_12 = arith.constant dense<0.000000e+00> : vector<8x128xf32>
    %14 = tpu.matmul %13, %0, %cst_12 {dimension_numbers = #tpu.dot_dimension_numbers<[1], [0], [0], [1], [0, 0, 1, 1], [], []>} : vector<8x896xf32>, vector<896x128xf32>, vector<8x128xf32> -> vector<8x128xf32>
    %15 = arith.maximumf %11, %14 : vector<8x128xf32>
    %c0_13 = arith.constant 0 : index
    %c0_14 = arith.constant 0 : index
    %16 = vector.load %arg3[%c0_13, %c0_14] : memref<1x128xf32, #tpu.memory_space<vmem>>, vector<1x128xf32>
    %17 = vector.broadcast %16 : vector<1x128xf32> to vector<8x128xf32>
    %18 = arith.addf %15, %17 : vector<8x128xf32>
    %cst_15 = arith.constant 0.000000e+00 : f32
    %19 = vector.broadcast %cst_15 : f32 to vector<8x128xf32>
    %20 = arith.maximumf %18, %19 : vector<8x128xf32>
    %c0_16 = arith.constant 0 : index
    %c0_17 = arith.constant 0 : index
    %21 = vector.load %arg4[%c0_16, %c0_17] : memref<128x128xf32, #tpu.memory_space<vmem>>, vector<128x128xf32>
    %cst_18 = arith.constant dense<0.000000e+00> : vector<8x128xf32>
    %22 = tpu.matmul %20, %21, %cst_18 {dimension_numbers = #tpu.dot_dimension_numbers<[1], [0], [0], [1], [0, 0, 1, 1], [], []>} : vector<8x128xf32>, vector<128x128xf32>, vector<8x128xf32> -> vector<8x128xf32>
    %c0_19 = arith.constant 0 : index
    %c0_20 = arith.constant 0 : index
    %23 = vector.load %arg5[%c0_19, %c0_20] : memref<1x128xf32, #tpu.memory_space<vmem>>, vector<1x128xf32>
    %24 = vector.broadcast %23 : vector<1x128xf32> to vector<8x128xf32>
    %25 = arith.addf %22, %24 : vector<8x128xf32>
    %cst_21 = arith.constant 0.000000e+00 : f32
    %26 = vector.broadcast %cst_21 : f32 to vector<8x128xf32>
    %27 = arith.subf %26, %25 : vector<8x128xf32>
    %28 = math.exp %27 : vector<8x128xf32>
    %cst_22 = arith.constant 1.000000e+00 : f32
    %29 = vector.broadcast %cst_22 : f32 to vector<8x128xf32>
    %30 = arith.addf %29, %28 : vector<8x128xf32>
    %cst_23 = arith.constant 1.000000e+00 : f32
    %31 = vector.broadcast %cst_23 : f32 to vector<8x128xf32>
    %32 = arith.divf %31, %30 : vector<8x128xf32>
    %33 = vector.extract_strided_slice %32 {offsets = [0, 0], sizes = [8, 1], strides = [1, 1]} : vector<8x128xf32> to vector<8x1xf32>
    %c0_24 = arith.constant 0 : index
    %c0_25 = arith.constant 0 : index
    %34 = vector.load %arg6[%c0_24, %c0_25] : memref<8x1xf32, #tpu.memory_space<vmem>>, vector<8x1xf32>
    tpu.vector_store %arg6[%c0_24, %c0_25], %33 {strides = array<i32>} : memref<8x1xf32, #tpu.memory_space<vmem>>, vector<8x1xf32>,
    return
  }
  func.func @transform_0(%arg0: i32) -> (i32, i32, i32) {
    %c0_i32 = arith.constant 0 : i32
    %c0_i32_0 = arith.constant 0 : i32
    %c0_i32_1 = arith.constant 0 : i32
    %c0_i32_2 = arith.constant 0 : i32
    return %c0_i32, %c0_i32_0, %c0_i32_1 : i32, i32, i32
  }
  func.func @transform_1(%arg0: i32) -> (i32, i32) {
    %c0_i32 = arith.constant 0 : i32
    %c0_i32_0 = arith.constant 0 : i32
    %c0_i32_1 = arith.constant 0 : i32
    return %c0_i32, %c0_i32_0 : i32, i32
  }
  func.func @transform_2(%arg0: i32) -> (i32, i32) {
    %c0_i32 = arith.constant 0 : i32
    %c0_i32_0 = arith.constant 0 : i32
    %c0_i32_1 = arith.constant 0 : i32
    return %c0_i32, %c0_i32_0 : i32, i32
  }
  func.func @transform_3(%arg0: i32) -> (i32, i32) {
    %c0_i32 = arith.constant 0 : i32
    %c0_i32_0 = arith.constant 0 : i32
    %c0_i32_1 = arith.constant 0 : i32
    return %c0_i32, %c0_i32_0 : i32, i32
  }
  func.func @transform_4(%arg0: i32) -> (i32, i32) {
    %c0_i32 = arith.constant 0 : i32
    %c0_i32_0 = arith.constant 0 : i32
    %c0_i32_1 = arith.constant 0 : i32
    return %c0_i32, %c0_i32_0 : i32, i32
  }
  func.func @transform_5(%arg0: i32) -> (i32, i32) {
    %c0_i32 = arith.constant 0 : i32
    %c0_i32_0 = arith.constant 0 : i32
    %c0_i32_1 = arith.constant 0 : i32
    return %c0_i32, %c0_i32_0 : i32, i32
  }
}

</mosaic_0001>

<bundles_post_ra>
// kernel: net_forward.3
= control target key start
LH: loop header
LB: loop body
LE: loop exit
PB: predicated region body
PF: predicated region fallthrough
CT: control target
= control target key end

     0   :  { %s4732_s12 = smov 0   ;;  %s4734_s13 = smov 0   ;;  %s6461_s0 = inlined_call_operand.vmem [shape: f32[4,2048,128], index: 0, kind: input, shape index: {}]   ;;  %s6462_s1 = inlined_call_operand.vmem [shape: f32[128,128], index: 1, kind: input, shape index: {}]   ;;  %s6463_s2 = inlined_call_operand.vmem [shape: f32[1,128], index: 2, kind: input, shape index: {}]   ;;  %s6464_s3 = inlined_call_operand.vmem [shape: f32[2048,6], index: 3, kind: output, shape index: {}]  }
   0x1   :  { %s4736_s14 = smov 0  }
   0x2 LB: > { %s3497_s15 = sadd.s32 4294967295, %s4710_s14   ;;  %s4749_s16 = sadd.s32 1, %s4710_s14   ;;  %s4710_s14 = sphi %s4736_s14, %s6765_s14   ;;  %s4706_s13 = sphi %s4734_s13, %s6764_s13   ;;  %s4702_s12 = sphi %s4732_s12, %s6763_s12  }
   0x3   : > { %s17_s17 = ssub.s32 %s4710_s14, %s4749_s16  ;;  %s20_s18 = sadd.s32 1, %s4706_s13 }
   0x4   : > { %p18_p0 = scmp.eq.s32.totalorder %s17_s17, 0  ;;  %p27_p1 = scmp.ne.s32.totalorder %s4706_s13, %s4702_s12 }
   0x5   : > { %p28_p2 = scmp.eq.s32.totalorder %s4710_s14, 0  ;;  %p3500_p4 = scmp.ge.s32.totalorder %s4710_s14, 4 }
   0x6   : > { %s4758_s19 = scalar_select %p18_p0, %s4706_s13, %s20_s18  }
   0x7   : > { %p29_p3 = por %p28_p2, %p27_p1  ;;  %127 = sbr.rel (%p3500_p4) target bundleno = 146 (0x92), region = 24 }
   0xe   : > { %130 = sbr.rel (!%p29_p3) target bundleno = 146 (0x92), region = 28  ;;  %s132_s20 = sand.u32 (%p29_p3), 1, %s4706_s13  }
   0xf   : > { %s3703_s21 = sshll.u32 (%p29_p3), %s4710_s14, 9  ;;  %s3501_s22 = sshll.u32 (%p29_p3), %s132_s20, 11 }
  0x10   : > { %s4766_s25 = scalar_lea.vmem (%p29_p3), %s6461_s0, %s3703_s21  ;;  %s4771_s26 = scalar_lea.vmem (%p29_p3), [#allocation2], %s3501_s22 }
  0x11   : > { %v675_v0 = vld [vmem:[%s4766_s25] sm:$0xff] (%p29_p3)  ;;  %v677_v1 = vld [vmem:[%s4766_s25 + $0x8] sm:$0xff] (%p29_p3)  ;;  %v679_v2 = vld [vmem:[%s4766_s25 + $0x10] sm:$0xff] (%p29_p3) }
  0x12   : > { %676 = vst [vmem:[%s4771_s26] sm:$0xff] (%p29_p3), %v675_v0  ;;  %678 = vst [vmem:[%s4771_s26 + $0x8] sm:$0xff] (%p29_p3), %v677_v1  ;;  %v681_v3 = vld [vmem:[%s4766_s25 + $0x18] sm:$0xff] (%p29_p3)  ;;  %v683_v4 = vld [vmem:[%s4766_s25 + $0x20] sm:$0xff] (%p29_p3) }
  0x13   : > { %680 = vst [vmem:[%s4771_s26 + $0x10] sm:$0xff] (%p29_p3), %v679_v2  ;;  %v685_v5 = vld [vmem:[%s4766_s25 + $0x28] sm:$0xff] (%p29_p3)  ;;  %682 = vst [vmem:[%s4771_s26 + $0x18] sm:$0xff] (%p29_p3), %v681_v3  ;;  %v687_v6 = vld [vmem:[%s4766_s25 + $0x30] sm:$0xff] (%p29_p3) }
  0x14   : > { %684 = vst [vmem:[%s4771_s26 + $0x20] sm:$0xff] (%p29_p3), %v683_v4  ;;  %686 = vst [vmem:[%s4771_s26 + $0x28] sm:$0xff] (%p29_p3), %v685_v5  ;;  %v689_v7 = vld [vmem:[%s4766_s25 + $0x38] sm:$0xff] (%p29_p3)  ;;  %v691_v8 = vld [vmem:[%s4766_s25 + $0x40] sm:$0xff] (%p29_p3) }
  0x15   : > { %688 = vst [vmem:[%s4771_s26 + $0x30] sm:$0xff] %v687_v6  ;;  %690 = vst [vmem:[%s4771_s26 + $0x38] sm:$0xff] %v689_v7  ;;  %v693_v9 = vld [vmem:[%s4766_s25 + $0x48] sm:$0xff]  ;;  %v695_v10 = vld [vmem:[%s4766_s25 + $0x50] sm:$0xff] }
  0x16   : > { %692 = vst [vmem:[%s4771_s26 + $0x40] sm:$0xff] %v691_v8  ;;  %v697_v11 = vld [vmem:[%s4766_s25 + $0x58] sm:$0xff]  ;;  %694 = vst [vmem:[%s4771_s26 + $0x48] sm:$0xff] %v693_v9  ;;  %v699_v12 = vld [vmem:[%s4766_s25 + $0x60] sm:$0xff] }
  0x17   : > { %696 = vst [vmem:[%s4771_s26 + $0x50] sm:$0xff] %v695_v10  ;;  %698 = vst [vmem:[%s4771_s26 + $0x58] sm:$0xff] %v697_v11  ;;  %v701_v13 = vld [vmem:[%s4766_s25 + $0x68] sm:$0xff]  ;;  %v703_v14 = vld [vmem:[%s4766_s25 + $0x70] sm:$0xff] }
  0x18   : > { %700 = vst [vmem:[%s4771_s26 + $0x60] sm:$0xff] %v699_v12  ;;  %702 = vst [vmem:[%s4771_s26 + $0x68] sm:$0xff] %v701_v13  ;;  %v705_v15 = vld [vmem:[%s4766_s25 + $0x78] sm:$0xff]  ;;  %v707_v16 = vld [vmem:[%s4766_s25 + $0x80] sm:$0xff] }
  0x19   : > { %704 = vst [vmem:[%s4771_s26 + $0x70] sm:$0xff] %v703_v14  ;;  %v709_v17 = vld [vmem:[%s4766_s25 + $0x88] sm:$0xff]  ;;  %706 = vst [vmem:[%s4771_s26 + $0x78] sm:$0xff] %v705_v15  ;;  %v711_v18 = vld [vmem:[%s4766_s25 + $0x90] sm:$0xff] }
  0x1a   : > { %708 = vst [vmem:[%s4771_s26 + $0x80] sm:$0xff] %v707_v16  ;;  %710 = vst [vmem:[%s4771_s26 + $0x88] sm:$0xff] %v709_v17  ;;  %v713_v19 = vld [vmem:[%s4766_s25 + $0x98] sm:$0xff]  ;;  %v715_v20 = vld [vmem:[%s4766_s25 + $0xa0] sm:$0xff] }
  0x1b   : > { %712 = vst [vmem:[%s4771_s26 + $0x90] sm:$0xff] %v711_v18  ;;  %714 = vst [vmem:[%s4771_s26 + $0x98] sm:$0xff] %v713_v19  ;;  %v717_v21 = vld [vmem:[%s4766_s25 + $0xa8] sm:$0xff]  ;;  %v719_v22 = vld [vmem:[%s4766_s25 + $0xb0] sm:$0xff] }
  0x1c   : > { %716 = vst [vmem:[%s4771_s26 + $0xa0] sm:$0xff] %v715_v20  ;;  %v721_v23 = vld [vmem:[%s4766_s25 + $0xb8] sm:$0xff]  ;;  %718 = vst [vmem:[%s4771_s26 + $0xa8] sm:$0xff] %v717_v21  ;;  %v723_v24 = vld [vmem:[%s4766_s25 + $0xc0] sm:$0xff] }
  0x1d   : > { %720 = vst [vmem:[%s4771_s26 + $0xb0] sm:$0xff] %v719_v22  ;;  %722 = vst [vmem:[%s4771_s26 + $0xb8] sm:$0xff] %v721_v23  ;;  %v725_v25 = vld [vmem:[%s4766_s25 + $0xc8] sm:$0xff]  ;;  %v727_v26 = vld [vmem:[%s4766_s25 + $0xd0] sm:$0xff] }
  0x1e   : > { %724 = vst [vmem:[%s4771_s26 + $0xc0] sm:$0xff] %v723_v24  ;;  %726 = vst [vmem:[%s4771_s26 + $0xc8] sm:$0xff] %v725_v25  ;;  %v729_v27 = vld [vmem:[%s4766_s25 + $0xd8] sm:$0xff]  ;;  %v731_v28 = vld [vmem:[%s4766_s25 + $0xe0] sm:$0xff] }
  0x1f   : > { %728 = vst [vmem:[%s4771_s26 + $0xd0] sm:$0xff] %v727_v26  ;;  %v733_v29 = vld [vmem:[%s4766_s25 + $0xe8] sm:$0xff]  ;;  %730 = vst [vmem:[%s4771_s26 + $0xd8] sm:$0xff] %v729_v27  ;;  %v735_v30 = vld [vmem:[%s4766_s25 + $0xf0] sm:$0xff] }
  0x20   : > { %732 = vst [vmem:[%s4771_s26 + $0xe0] sm:$0xff] %v731_v28  ;;  %734 = vst [vmem:[%s4771_s26 + $0xe8] sm:$0xff] %v733_v29  ;;  %v737_v31 = vld [vmem:[%s4766_s25 + $0xf8] sm:$0xff]  ;;  %v739_v32 = vld [vmem:[%s4766_s25 + $0x100] sm:$0xff] }
  0x21   : > { %736 = vst [vmem:[%s4771_s26 + $0xf0] sm:$0xff] %v735_v30  ;;  %738 = vst [vmem:[%s4771_s26 + $0xf8] sm:$0xff] %v737_v31  ;;  %v741_v33 = vld [vmem:[%s4766_s25 + $0x108] sm:$0xff]  ;;  %v743_v34 = vld [vmem:[%s4766_s25 + $0x110] sm:$0xff] }
  0x22   : > { %740 = vst [vmem:[%s4771_s26 + $0x100] sm:$0xff] %v739_v32  ;;  %v745_v35 = vld [vmem:[%s4766_s25 + $0x118] sm:$0xff]  ;;  %742 = vst [vmem:[%s4771_s26 + $0x108] sm:$0xff] %v741_v33  ;;  %v747_v36 = vld [vmem:[%s4766_s25 + $0x120] sm:$0xff] }
  0x23   : > { %744 = vst [vmem:[%s4771_s26 + $0x110] sm:$0xff] %v743_v34  ;;  %746 = vst [vmem:[%s4771_s26 + $0x118] sm:$0xff] %v745_v35  ;;  %v749_v37 = vld [vmem:[%s4766_s25 + $0x128] sm:$0xff]  ;;  %v751_v38 = vld [vmem:[%s4766_s25 + $0x130] sm:$0xff] }
  0x24   : > { %748 = vst [vmem:[%s4771_s26 + $0x120] sm:$0xff] %v747_v36  ;;  %750 = vst [vmem:[%s4771_s26 + $0x128] sm:$0xff] %v749_v37  ;;  %v753_v39 = vld [vmem:[%s4766_s25 + $0x138] sm:$0xff]  ;;  %v755_v40 = vld [vmem:[%s4766_s25 + $0x140] sm:$0xff] }
  0x25   : > { %752 = vst [vmem:[%s4771_s26 + $0x130] sm:$0xff] %v751_v38  ;;  %v757_v41 = vld [vmem:[%s4766_s25 + $0x148] sm:$0xff]  ;;  %754 = vst [vmem:[%s4771_s26 + $0x138] sm:$0xff] %v753_v39  ;;  %v759_v42 = vld [vmem:[%s4766_s25 + $0x150] sm:$0xff] }
  0x26   : > { %756 = vst [vmem:[%s4771_s26 + $0x140] sm:$0xff] %v755_v40  ;;  %758 = vst [vmem:[%s4771_s26 + $0x148] sm:$0xff] %v757_v41  ;;  %v761_v43 = vld [vmem:[%s4766_s25 + $0x158] sm:$0xff]  ;;  %v763_v44 = vld [vmem:[%s4766_s25 + $0x160] sm:$0xff] }
  0x27   : > { %760 = vst [vmem:[%s4771_s26 + $0x150] sm:$0xff] %v759_v42  ;;  %762 = vst [vmem:[%s4771_s26 + $0x158] sm:$0xff] %v761_v43  ;;  %v765_v45 = vld [vmem:[%s4766_s25 + $0x168] sm:$0xff]  ;;  %v767_v46 = vld [vmem:[%s4766_s25 + $0x170] sm:$0xff] }
  0x28   : > { %764 = vst [vmem:[%s4771_s26 + $0x160] sm:$0xff] %v763_v44  ;;  %v769_v47 = vld [vmem:[%s4766_s25 + $0x178] sm:$0xff]  ;;  %766 = vst [vmem:[%s4771_s26 + $0x168] sm:$0xff] %v765_v45  ;;  %v771_v48 = vld [vmem:[%s4766_s25 + $0x180] sm:$0xff] }
  0x29   : > { %768 = vst [vmem:[%s4771_s26 + $0x170] sm:$0xff] %v767_v46  ;;  %770 = vst [vmem:[%s4771_s26 + $0x178] sm:$0xff] %v769_v47  ;;  %v773_v49 = vld [vmem:[%s4766_s25 + $0x188] sm:$0xff]  ;;  %v775_v50 = vld [vmem:[%s4766_s25 + $0x190] sm:$0xff] }
  0x2a   : > { %772 = vst [vmem:[%s4771_s26 + $0x180] sm:$0xff] %v771_v48  ;;  %774 = vst [vmem:[%s4771_s26 + $0x188] sm:$0xff] %v773_v49  ;;  %v777_v51 = vld [vmem:[%s4766_s25 + $0x198] sm:$0xff]  ;;  %v779_v52 = vld [vmem:[%s4766_s25 + $0x1a0] sm:$0xff] }
  0x2b   : > { %776 = vst [vmem:[%s4771_s26 + $0x190] sm:$0xff] %v775_v50  ;;  %v781_v53 = vld [vmem:[%s4766_s25 + $0x1a8] sm:$0xff]  ;;  %778 = vst [vmem:[%s4771_s26 + $0x198] sm:$0xff] %v777_v51  ;;  %v783_v54 = vld [vmem:[%s4766_s25 + $0x1b0] sm:$0xff] }
  0x2c   : > { %780 = vst [vmem:[%s4771_s26 + $0x1a0] sm:$0xff] %v779_v52  ;;  %782 = vst [vmem:[%s4771_s26 + $0x1a8] sm:$0xff] %v781_v53  ;;  %v785_v55 = vld [vmem:[%s4766_s25 + $0x1b8] sm:$0xff]  ;;  %v787_v56 = vld [vmem:[%s4766_s25 + $0x1c0] sm:$0xff] }
  0x2d   : > { %784 = vst [vmem:[%s4771_s26 + $0x1b0] sm:$0xff] %v783_v54  ;;  %786 = vst [vmem:[%s4771_s26 + $0x1b8] sm:$0xff] %v785_v55  ;;  %v789_v57 = vld [vmem:[%s4766_s25 + $0x1c8] sm:$0xff]  ;;  %v791_v58 = vld [vmem:[%s4766_s25 + $0x1d0] sm:$0xff] }
  0x2e   : > { %788 = vst [vmem:[%s4771_s26 + $0x1c0] sm:$0xff] %v787_v56  ;;  %v793_v59 = vld [vmem:[%s4766_s25 + $0x1d8] sm:$0xff]  ;;  %790 = vst [vmem:[%s4771_s26 + $0x1c8] sm:$0xff] %v789_v57  ;;  %v795_v60 = vld [vmem:[%s4766_s25 + $0x1e0] sm:$0xff] }
  0x2f   : > { %792 = vst [vmem:[%s4771_s26 + $0x1d0] sm:$0xff] %v791_v58  ;;  %794 = vst [vmem:[%s4771_s26 + $0x1d8] sm:$0xff] %v793_v59  ;;  %v797_v61 = vld [vmem:[%s4766_s25 + $0x1e8] sm:$0xff]  ;;  %v799_v62 = vld [vmem:[%s4766_s25 + $0x1f0] sm:$0xff] }
  0x30   : > { %796 = vst [vmem:[%s4771_s26 + $0x1e0] sm:$0xff] %v795_v60  ;;  %798 = vst [vmem:[%s4771_s26 + $0x1e8] sm:$0xff] %v797_v61  ;;  %v801_v63 = vld [vmem:[%s4766_s25 + $0x1f8] sm:$0xff]  ;;  %v803_v0 = vld [vmem:[%s4766_s25 + $0x800] sm:$0xff] }
  0x31   : > { %800 = vst [vmem:[%s4771_s26 + $0x1f0] sm:$0xff] %v799_v62  ;;  %v805_v1 = vld [vmem:[%s4766_s25 + $0x808] sm:$0xff]  ;;  %802 = vst [vmem:[%s4771_s26 + $0x1f8] sm:$0xff] %v801_v63  ;;  %v807_v2 = vld [vmem:[%s4766_s25 + $0x810] sm:$0xff] }
  0x32   : > { %804 = vst [vmem:[%s4771_s26 + $0x200] sm:$0xff] %v803_v0  ;;  %806 = vst [vmem:[%s4771_s26 + $0x208] sm:$0xff] %v805_v1  ;;  %v809_v3 = vld [vmem:[%s4766_s25 + $0x818] sm:$0xff]  ;;  %v811_v4 = vld [vmem:[%s4766_s25 + $0x820] sm:$0xff] }
  0x33   : > { %808 = vst [vmem:[%s4771_s26 + $0x210] sm:$0xff] %v807_v2  ;;  %810 = vst [vmem:[%s4771_s26 + $0x218] sm:$0xff] %v809_v3  ;;  %v813_v5 = vld [vmem:[%s4766_s25 + $0x828] sm:$0xff]  ;;  %v815_v6 = vld [vmem:[%s4766_s25 + $0x830] sm:$0xff] }
  0x34   : > { %812 = vst [vmem:[%s4771_s26 + $0x220] sm:$0xff] %v811_v4  ;;  %v817_v7 = vld [vmem:[%s4766_s25 + $0x838] sm:$0xff]  ;;  %814 = vst [vmem:[%s4771_s26 + $0x228] sm:$0xff] %v813_v5  ;;  %v819_v8 = vld [vmem:[%s4766_s25 + $0x840] sm:$0xff] }
  0x35   : > { %816 = vst [vmem:[%s4771_s26 + $0x230] sm:$0xff] %v815_v6  ;;  %818 = vst [vmem:[%s4771_s26 + $0x238] sm:$0xff] %v817_v7  ;;  %v821_v9 = vld [vmem:[%s4766_s25 + $0x848] sm:$0xff]  ;;  %v823_v10 = vld [vmem:[%s4766_s25 + $0x850] sm:$0xff] }
  0x36   : > { %820 = vst [vmem:[%s4771_s26 + $0x240] sm:$0xff] %v819_v8  ;;  %822 = vst [vmem:[%s4771_s26 + $0x248] sm:$0xff] %v821_v9  ;;  %v825_v11 = vld [vmem:[%s4766_s25 + $0x858] sm:$0xff]  ;;  %v827_v12 = vld [vmem:[%s4766_s25 + $0x860] sm:$0xff] }
  0x37   : > { %824 = vst [vmem:[%s4771_s26 + $0x250] sm:$0xff] %v823_v10  ;;  %v829_v13 = vld [vmem:[%s4766_s25 + $0x868] sm:$0xff]  ;;  %826 = vst [vmem:[%s4771_s26 + $0x258] sm:$0xff] %v825_v11  ;;  %v831_v14 = vld [vmem:[%s4766_s25 + $0x870] sm:$0xff] }
  0x38   : > { %828 = vst [vmem:[%s4771_s26 + $0x260] sm:$0xff] %v827_v12  ;;  %830 = vst [vmem:[%s4771_s26 + $0x268] sm:$0xff] %v829_v13  ;;  %v833_v15 = vld [vmem:[%s4766_s25 + $0x878] sm:$0xff]  ;;  %v835_v16 = vld [vmem:[%s4766_s25 + $0x880] sm:$0xff] }
  0x39   : > { %832 = vst [vmem:[%s4771_s26 + $0x270] sm:$0xff] %v831_v14  ;;  %834 = vst [vmem:[%s4771_s26 + $0x278] sm:$0xff] %v833_v15  ;;  %v837_v17 = vld [vmem:[%s4766_s25 + $0x888] sm:$0xff]  ;;  %v839_v18 = vld [vmem:[%s4766_s25 + $0x890] sm:$0xff] }
  0x3a   : > { %836 = vst [vmem:[%s4771_s26 + $0x280] sm:$0xff] %v835_v16  ;;  %v841_v19 = vld [vmem:[%s4766_s25 + $0x898] sm:$0xff]  ;;  %838 = vst [vmem:[%s4771_s26 + $0x288] sm:$0xff] %v837_v17  ;;  %v843_v20 = vld [vmem:[%s4766_s25 + $0x8a0] sm:$0xff] }
  0x3b   : > { %840 = vst [vmem:[%s4771_s26 + $0x290] sm:$0xff] %v839_v18  ;;  %842 = vst [vmem:[%s4771_s26 + $0x298] sm:$0xff] %v841_v19  ;;  %v845_v21 = vld [vmem:[%s4766_s25 + $0x8a8] sm:$0xff]  ;;  %v847_v22 = vld [vmem:[%s4766_s25 + $0x8b0] sm:$0xff] }
  0x3c   : > { %844 = vst [vmem:[%s4771_s26 + $0x2a0] sm:$0xff] %v843_v20  ;;  %846 = vst [vmem:[%s4771_s26 + $0x2a8] sm:$0xff] %v845_v21  ;;  %v849_v23 = vld [vmem:[%s4766_s25 + $0x8b8] sm:$0xff]  ;;  %v851_v24 = vld [vmem:[%s4766_s25 + $0x8c0] sm:$0xff] }
  0x3d   : > { %848 = vst [vmem:[%s4771_s26 + $0x2b0] sm:$0xff] %v847_v22  ;;  %v853_v25 = vld [vmem:[%s4766_s25 + $0x8c8] sm:$0xff]  ;;  %850 = vst [vmem:[%s4771_s26 + $0x2b8] sm:$0xff] %v849_v23  ;;  %v855_v26 = vld [vmem:[%s4766_s25 + $0x8d0] sm:$0xff] }
  0x3e   : > { %852 = vst [vmem:[%s4771_s26 + $0x2c0] sm:$0xff] %v851_v24  ;;  %854 = vst [vmem:[%s4771_s26 + $0x2c8] sm:$0xff] %v853_v25  ;;  %v857_v27 = vld [vmem:[%s4766_s25 + $0x8d8] sm:$0xff]  ;;  %v859_v28 = vld [vmem:[%s4766_s25 + $0x8e0] sm:$0xff] }
  0x3f   : > { %856 = vst [vmem:[%s4771_s26 + $0x2d0] sm:$0xff] %v855_v26  ;;  %858 = vst [vmem:[%s4771_s26 + $0x2d8] sm:$0xff] %v857_v27  ;;  %v861_v29 = vld [vmem:[%s4766_s25 + $0x8e8] sm:$0xff]  ;;  %v863_v30 = vld [vmem:[%s4766_s25 + $0x8f0] sm:$0xff] }
  0x40   : > { %860 = vst [vmem:[%s4771_s26 + $0x2e0] sm:$0xff] %v859_v28  ;;  %v865_v31 = vld [vmem:[%s4766_s25 + $0x8f8] sm:$0xff]  ;;  %862 = vst [vmem:[%s4771_s26 + $0x2e8] sm:$0xff] %v861_v29  ;;  %v867_v32 = vld [vmem:[%s4766_s25 + $0x900] sm:$0xff] }
  0x41   : > { %864 = vst [vmem:[%s4771_s26 + $0x2f0] sm:$0xff] %v863_v30  ;;  %866 = vst [vmem:[%s4771_s26 + $0x2f8] sm:$0xff] %v865_v31  ;;  %v869_v33 = vld [vmem:[%s4766_s25 + $0x908] sm:$0xff]  ;;  %v871_v34 = vld [vmem:[%s4766_s25 + $0x910] sm:$0xff] }
  0x42   : > { %868 = vst [vmem:[%s4771_s26 + $0x300] sm:$0xff] %v867_v32  ;;  %870 = vst [vmem:[%s4771_s26 + $0x308] sm:$0xff] %v869_v33  ;;  %v873_v35 = vld [vmem:[%s4766_s25 + $0x918] sm:$0xff]  ;;  %v875_v36 = vld [vmem:[%s4766_s25 + $0x920] sm:$0xff] }
  0x43   : > { %872 = vst [vmem:[%s4771_s26 + $0x310] sm:$0xff] %v871_v34  ;;  %v877_v37 = vld [vmem:[%s4766_s25 + $0x928] sm:$0xff]  ;;  %874 = vst [vmem:[%s4771_s26 + $0x318] sm:$0xff] %v873_v35  ;;  %v879_v38 = vld [vmem:[%s4766_s25 + $0x930] sm:$0xff] }
  0x44   : > { %876 = vst [vmem:[%s4771_s26 + $0x320] sm:$0xff] %v875_v36  ;;  %878 = vst [vmem:[%s4771_s26 + $0x328] sm:$0xff] %v877_v37  ;;  %v881_v39 = vld [vmem:[%s4766_s25 + $0x938] sm:$0xff]  ;;  %v883_v40 = vld [vmem:[%s4766_s25 + $0x940] sm:$0xff] }
  0x45   : > { %880 = vst [vmem:[%s4771_s26 + $0x330] sm:$0xff] %v879_v38  ;;  %882 = vst [vmem:[%s4771_s26 + $0x338] sm:$0xff] %v881_v39  ;;  %v885_v41 = vld [vmem:[%s4766_s25 + $0x948] sm:$0xff]  ;;  %v887_v42 = vld [vmem:[%s4766_s25 + $0x950] sm:$0xff] }
  0x46   : > { %884 = vst [vmem:[%s4771_s26 + $0x340] sm:$0xff] %v883_v40  ;;  %v889_v43 = vld [vmem:[%s4766_s25 + $0x958] sm:$0xff]  ;;  %886 = vst [vmem:[%s4771_s26 + $0x348] sm:$0xff] %v885_v41  ;;  %v891_v44 = vld [vmem:[%s4766_s25 + $0x960] sm:$0xff] }
  0x47   : > { %888 = vst [vmem:[%s4771_s26 + $0x350] sm:$0xff] %v887_v42  ;;  %890 = vst [vmem:[%s4771_s26 + $0x358] sm:$0xff] %v889_v43  ;;  %v893_v45 = vld [vmem:[%s4766_s25 + $0x968] sm:$0xff]  ;;  %v895_v46 = vld [vmem:[%s4766_s25 + $0x970] sm:$0xff] }
  0x48   : > { %892 = vst [vmem:[%s4771_s26 + $0x360] sm:$0xff] %v891_v44  ;;  %894 = vst [vmem:[%s4771_s26 + $0x368] sm:$0xff] %v893_v45  ;;  %v897_v47 = vld [vmem:[%s4766_s25 + $0x978] sm:$0xff]  ;;  %v899_v48 = vld [vmem:[%s4766_s25 + $0x980] sm:$0xff] }
  0x49   : > { %896 = vst [vmem:[%s4771_s26 + $0x370] sm:$0xff] %v895_v46  ;;  %v901_v49 = vld [vmem:[%s4766_s25 + $0x988] sm:$0xff]  ;;  %898 = vst [vmem:[%s4771_s26 + $0x378] sm:$0xff] %v897_v47  ;;  %v903_v50 = vld [vmem:[%s4766_s25 + $0x990] sm:$0xff] }
  0x4a   : > { %900 = vst [vmem:[%s4771_s26 + $0x380] sm:$0xff] %v899_v48  ;;  %902 = vst [vmem:[%s4771_s26 + $0x388] sm:$0xff] %v901_v49  ;;  %v905_v51 = vld [vmem:[%s4766_s25 + $0x998] sm:$0xff]  ;;  %v907_v52 = vld [vmem:[%s4766_s25 + $0x9a0] sm:$0xff] }
  0x4b   : > { %904 = vst [vmem:[%s4771_s26 + $0x390] sm:$0xff] %v903_v50  ;;  %906 = vst [vmem:[%s4771_s26 + $0x398] sm:$0xff] %v905_v51  ;;  %v909_v53 = vld [vmem:[%s4766_s25 + $0x9a8] sm:$0xff]  ;;  %v911_v54 = vld [vmem:[%s4766_s25 + $0x9b0] sm:$0xff] }
  0x4c   : > { %908 = vst [vmem:[%s4771_s26 + $0x3a0] sm:$0xff] %v907_v52  ;;  %v913_v55 = vld [vmem:[%s4766_s25 + $0x9b8] sm:$0xff]  ;;  %910 = vst [vmem:[%s4771_s26 + $0x3a8] sm:$0xff] %v909_v53  ;;  %v915_v56 = vld [vmem:[%s4766_s25 + $0x9c0] sm:$0xff] }
  0x4d   : > { %912 = vst [vmem:[%s4771_s26 + $0x3b0] sm:$0xff] %v911_v54  ;;  %914 = vst [vmem:[%s4771_s26 + $0x3b8] sm:$0xff] %v913_v55  ;;  %v917_v57 = vld [vmem:[%s4766_s25 + $0x9c8] sm:$0xff]  ;;  %v919_v58 = vld [vmem:[%s4766_s25 + $0x9d0] sm:$0xff] }
  0x4e   : > { %916 = vst [vmem:[%s4771_s26 + $0x3c0] sm:$0xff] %v915_v56  ;;  %918 = vst [vmem:[%s4771_s26 + $0x3c8] sm:$0xff] %v917_v57  ;;  %v921_v59 = vld [vmem:[%s4766_s25 + $0x9d8] sm:$0xff]  ;;  %v923_v60 = vld [vmem:[%s4766_s25 + $0x9e0] sm:$0xff] }
  0x4f   : > { %920 = vst [vmem:[%s4771_s26 + $0x3d0] sm:$0xff] %v919_v58  ;;  %v925_v61 = vld [vmem:[%s4766_s25 + $0x9e8] sm:$0xff]  ;;  %922 = vst [vmem:[%s4771_s26 + $0x3d8] sm:$0xff] %v921_v59  ;;  %v927_v62 = vld [vmem:[%s4766_s25 + $0x9f0] sm:$0xff] }
  0x50   : > { %924 = vst [vmem:[%s4771_s26 + $0x3e0] sm:$0xff] %v923_v60  ;;  %926 = vst [vmem:[%s4771_s26 + $0x3e8] sm:$0xff] %v925_v61  ;;  %v929_v63 = vld [vmem:[%s4766_s25 + $0x9f8] sm:$0xff]  ;;  %v931_v0 = vld [vmem:[%s4766_s25 + $0x1000] sm:$0xff] }
  0x51   : > { %928 = vst [vmem:[%s4771_s26 + $0x3f0] sm:$0xff] %v927_v62  ;;  %930 = vst [vmem:[%s4771_s26 + $0x3f8] sm:$0xff] %v929_v63  ;;  %v933_v1 = vld [vmem:[%s4766_s25 + $0x1008] sm:$0xff]  ;;  %v935_v2 = vld [vmem:[%s4766_s25 + $0x1010] sm:$0xff] }
  0x52   : > { %932 = vst [vmem:[%s4771_s26 + $0x400] sm:$0xff] %v931_v0  ;;  %v937_v3 = vld [vmem:[%s4766_s25 + $0x1018] sm:$0xff]  ;;  %934 = vst [vmem:[%s4771_s26 + $0x408] sm:$0xff] %v933_v1  ;;  %v939_v4 = vld [vmem:[%s4766_s25 + $0x1020] sm:$0xff] }
  0x53   : > { %936 = vst [vmem:[%s4771_s26 + $0x410] sm:$0xff] %v935_v2  ;;  %938 = vst [vmem:[%s4771_s26 + $0x418] sm:$0xff] %v937_v3  ;;  %v941_v5 = vld [vmem:[%s4766_s25 + $0x1028] sm:$0xff]  ;;  %v943_v6 = vld [vmem:[%s4766_s25 + $0x1030] sm:$0xff] }
  0x54   : > { %940 = vst [vmem:[%s4771_s26 + $0x420] sm:$0xff] %v939_v4  ;;  %942 = vst [vmem:[%s4771_s26 + $0x428] sm:$0xff] %v941_v5  ;;  %v945_v7 = vld [vmem:[%s4766_s25 + $0x1038] sm:$0xff]  ;;  %v947_v8 = vld [vmem:[%s4766_s25 + $0x1040] sm:$0xff] }
  0x55   : > { %944 = vst [vmem:[%s4771_s26 + $0x430] sm:$0xff] %v943_v6  ;;  %v949_v9 = vld [vmem:[%s4766_s25 + $0x1048] sm:$0xff]  ;;  %946 = vst [vmem:[%s4771_s26 + $0x438] sm:$0xff] %v945_v7  ;;  %v951_v10 = vld [vmem:[%s4766_s25 + $0x1050] sm:$0xff] }
  0x56   : > { %948 = vst [vmem:[%s4771_s26 + $0x440] sm:$0xff] %v947_v8  ;;  %950 = vst [vmem:[%s4771_s26 + $0x448] sm:$0xff] %v949_v9  ;;  %v953_v11 = vld [vmem:[%s4766_s25 + $0x1058] sm:$0xff]  ;;  %v955_v12 = vld [vmem:[%s4766_s25 + $0x1060] sm:$0xff] }
  0x57   : > { %952 = vst [vmem:[%s4771_s26 + $0x450] sm:$0xff] %v951_v10  ;;  %954 = vst [vmem:[%s4771_s26 + $0x458] sm:$0xff] %v953_v11  ;;  %v957_v13 = vld [vmem:[%s4766_s25 + $0x1068] sm:$0xff]  ;;  %v959_v14 = vld [vmem:[%s4766_s25 + $0x1070] sm:$0xff] }
  0x58   : > { %956 = vst [vmem:[%s4771_s26 + $0x460] sm:$0xff] %v955_v12  ;;  %v961_v15 = vld [vmem:[%s4766_s25 + $0x1078] sm:$0xff]  ;;  %958 = vst [vmem:[%s4771_s26 + $0x468] sm:$0xff] %v957_v13  ;;  %v963_v16 = vld [vmem:[%s4766_s25 + $0x1080] sm:$0xff] }
  0x59   : > { %960 = vst [vmem:[%s4771_s26 + $0x470] sm:$0xff] %v959_v14  ;;  %962 = vst [vmem:[%s4771_s26 + $0x478] sm:$0xff] %v961_v15  ;;  %v965_v17 = vld [vmem:[%s4766_s25 + $0x1088] sm:$0xff]  ;;  %v967_v18 = vld [vmem:[%s4766_s25 + $0x1090] sm:$0xff] }
  0x5a   : > { %964 = vst [vmem:[%s4771_s26 + $0x480] sm:$0xff] %v963_v16  ;;  %966 = vst [vmem:[%s4771_s26 + $0x488] sm:$0xff] %v965_v17  ;;  %v969_v19 = vld [vmem:[%s4766_s25 + $0x1098] sm:$0xff]  ;;  %v971_v20 = vld [vmem:[%s4766_s25 + $0x10a0] sm:$0xff] }
  0x5b   : > { %968 = vst [vmem:[%s4771_s26 + $0x490] sm:$0xff] %v967_v18  ;;  %v973_v21 = vld [vmem:[%s4766_s25 + $0x10a8] sm:$0xff]  ;;  %970 = vst [vmem:[%s4771_s26 + $0x498] sm:$0xff] %v969_v19  ;;  %v975_v22 = vld [vmem:[%s4766_s25 + $0x10b0] sm:$0xff] }
  0x5c   : > { %972 = vst [vmem:[%s4771_s26 + $0x4a0] sm:$0xff] %v971_v20  ;;  %974 = vst [vmem:[%s4771_s26 + $0x4a8] sm:$0xff] %v973_v21  ;;  %v977_v23 = vld [vmem:[%s4766_s25 + $0x10b8] sm:$0xff]  ;;  %v979_v24 = vld [vmem:[%s4766_s25 + $0x10c0] sm:$0xff] }
  0x5d   : > { %976 = vst [vmem:[%s4771_s26 + $0x4b0] sm:$0xff] %v975_v22  ;;  %978 = vst [vmem:[%s4771_s26 + $0x4b8] sm:$0xff] %v977_v23  ;;  %v981_v25 = vld [vmem:[%s4766_s25 + $0x10c8] sm:$0xff]  ;;  %v983_v26 = vld [vmem:[%s4766_s25 + $0x10d0] sm:$0xff] }
  0x5e   : > { %980 = vst [vmem:[%s4771_s26 + $0x4c0] sm:$0xff] %v979_v24  ;;  %v985_v27 = vld [vmem:[%s4766_s25 + $0x10d8] sm:$0xff]  ;;  %982 = vst [vmem:[%s4771_s26 + $0x4c8] sm:$0xff] %v981_v25  ;;  %v987_v28 = vld [vmem:[%s4766_s25 + $0x10e0] sm:$0xff] }
  0x5f   : > { %984 = vst [vmem:[%s4771_s26 + $0x4d0] sm:$0xff] %v983_v26  ;;  %986 = vst [vmem:[%s4771_s26 + $0x4d8] sm:$0xff] %v985_v27  ;;  %v989_v29 = vld [vmem:[%s4766_s25 + $0x10e8] sm:$0xff]  ;;  %v991_v30 = vld [vmem:[%s4766_s25 + $0x10f0] sm:$0xff] }
  0x60   : > { %988 = vst [vmem:[%s4771_s26 + $0x4e0] sm:$0xff] %v987_v28  ;;  %990 = vst [vmem:[%s4771_s26 + $0x4e8] sm:$0xff] %v989_v29  ;;  %v993_v31 = vld [vmem:[%s4766_s25 + $0x10f8] sm:$0xff]  ;;  %v995_v32 = vld [vmem:[%s4766_s25 + $0x1100] sm:$0xff] }
  0x61   : > { %992 = vst [vmem:[%s4771_s26 + $0x4f0] sm:$0xff] %v991_v30  ;;  %v997_v33 = vld [vmem:[%s4766_s25 + $0x1108] sm:$0xff]  ;;  %994 = vst [vmem:[%s4771_s26 + $0x4f8] sm:$0xff] %v993_v31  ;;  %v999_v34 = vld [vmem:[%s4766_s25 + $0x1110] sm:$0xff] }
  0x62   : > { %996 = vst [vmem:[%s4771_s26 + $0x500] sm:$0xff] %v995_v32  ;;  %998 = vst [vmem:[%s4771_s26 + $0x508] sm:$0xff] %v997_v33  ;;  %v1001_v35 = vld [vmem:[%s4766_s25 + $0x1118] sm:$0xff]  ;;  %v1003_v36 = vld [vmem:[%s4766_s25 + $0x1120] sm:$0xff] }
  0x63   : > { %1000 = vst [vmem:[%s4771_s26 + $0x510] sm:$0xff] %v999_v34  ;;  %1002 = vst [vmem:[%s4771_s26 + $0x518] sm:$0xff] %v1001_v35  ;;  %v1005_v37 = vld [vmem:[%s4766_s25 + $0x1128] sm:$0xff]  ;;  %v1007_v38 = vld [vmem:[%s4766_s25 + $0x1130] sm:$0xff] }
  0x64   : > { %1004 = vst [vmem:[%s4771_s26 + $0x520] sm:$0xff] %v1003_v36  ;;  %v1009_v39 = vld [vmem:[%s4766_s25 + $0x1138] sm:$0xff]  ;;  %1006 = vst [vmem:[%s4771_s26 + $0x528] sm:$0xff] %v1005_v37  ;;  %v1011_v40 = vld [vmem:[%s4766_s25 + $0x1140] sm:$0xff] }
  0x65   : > { %1008 = vst [vmem:[%s4771_s26 + $0x530] sm:$0xff] %v1007_v38  ;;  %1010 = vst [vmem:[%s4771_s26 + $0x538] sm:$0xff] %v1009_v39  ;;  %v1013_v41 = vld [vmem:[%s4766_s25 + $0x1148] sm:$0xff]  ;;  %v1015_v42 = vld [vmem:[%s4766_s25 + $0x1150] sm:$0xff] }
  0x66   : > { %1012 = vst [vmem:[%s4771_s26 + $0x540] sm:$0xff] %v1011_v40  ;;  %1014 = vst [vmem:[%s4771_s26 + $0x548] sm:$0xff] %v1013_v41  ;;  %v1017_v43 = vld [vmem:[%s4766_s25 + $0x1158] sm:$0xff]  ;;  %v1019_v44 = vld [vmem:[%s4766_s25 + $0x1160] sm:$0xff] }
  0x67   : > { %1016 = vst [vmem:[%s4771_s26 + $0x550] sm:$0xff] %v1015_v42  ;;  %v1021_v45 = vld [vmem:[%s4766_s25 + $0x1168] sm:$0xff]  ;;  %1018 = vst [vmem:[%s4771_s26 + $0x558] sm:$0xff] %v1017_v43  ;;  %v1023_v46 = vld [vmem:[%s4766_s25 + $0x1170] sm:$0xff] }
  0x68   : > { %1020 = vst [vmem:[%s4771_s26 + $0x560] sm:$0xff] %v1019_v44  ;;  %1022 = vst [vmem:[%s4771_s26 + $0x568] sm:$0xff] %v1021_v45  ;;  %v1025_v47 = vld [vmem:[%s4766_s25 + $0x1178] sm:$0xff]  ;;  %v1027_v48 = vld [vmem:[%s4766_s25 + $0x1180] sm:$0xff] }
  0x69   : > { %1024 = vst [vmem:[%s4771_s26 + $0x570] sm:$0xff] %v1023_v46  ;;  %1026 = vst [vmem:[%s4771_s26 + $0x578] sm:$0xff] %v1025_v47  ;;  %v1029_v49 = vld [vmem:[%s4766_s25 + $0x1188] sm:$0xff]  ;;  %v1031_v50 = vld [vmem:[%s4766_s25 + $0x1190] sm:$0xff] }
  0x6a   : > { %1028 = vst [vmem:[%s4771_s26 + $0x580] sm:$0xff] %v1027_v48  ;;  %v1033_v51 = vld [vmem:[%s4766_s25 + $0x1198] sm:$0xff]  ;;  %1030 = vst [vmem:[%s4771_s26 + $0x588] sm:$0xff] %v1029_v49  ;;  %v1035_v52 = vld [vmem:[%s4766_s25 + $0x11a0] sm:$0xff] }
  0x6b   : > { %1032 = vst [vmem:[%s4771_s26 + $0x590] sm:$0xff] %v1031_v50  ;;  %1034 = vst [vmem:[%s4771_s26 + $0x598] sm:$0xff] %v1033_v51  ;;  %v1037_v53 = vld [vmem:[%s4766_s25 + $0x11a8] sm:$0xff]  ;;  %v1039_v54 = vld [vmem:[%s4766_s25 + $0x11b0] sm:$0xff] }
  0x6c   : > { %1036 = vst [vmem:[%s4771_s26 + $0x5a0] sm:$0xff] %v1035_v52  ;;  %1038 = vst [vmem:[%s4771_s26 + $0x5a8] sm:$0xff] %v1037_v53  ;;  %v1041_v55 = vld [vmem:[%s4766_s25 + $0x11b8] sm:$0xff]  ;;  %v1043_v56 = vld [vmem:[%s4766_s25 + $0x11c0] sm:$0xff] }
  0x6d   : > { %1040 = vst [vmem:[%s4771_s26 + $0x5b0] sm:$0xff] %v1039_v54  ;;  %v1045_v57 = vld [vmem:[%s4766_s25 + $0x11c8] sm:$0xff]  ;;  %1042 = vst [vmem:[%s4771_s26 + $0x5b8] sm:$0xff] %v1041_v55  ;;  %v1047_v58 = vld [vmem:[%s4766_s25 + $0x11d0] sm:$0xff] }
  0x6e   : > { %1044 = vst [vmem:[%s4771_s26 + $0x5c0] sm:$0xff] %v1043_v56  ;;  %1046 = vst [vmem:[%s4771_s26 + $0x5c8] sm:$0xff] %v1045_v57  ;;  %v1049_v59 = vld [vmem:[%s4766_s25 + $0x11d8] sm:$0xff]  ;;  %v1051_v60 = vld [vmem:[%s4766_s25 + $0x11e0] sm:$0xff] }
  0x6f   : > { %1048 = vst [vmem:[%s4771_s26 + $0x5d0] sm:$0xff] %v1047_v58  ;;  %1050 = vst [vmem:[%s4771_s26 + $0x5d8] sm:$0xff] %v1049_v59  ;;  %v1053_v61 = vld [vmem:[%s4766_s25 + $0x11e8] sm:$0xff]  ;;  %v1055_v62 = vld [vmem:[%s4766_s25 + $0x11f0] sm:$0xff] }
  0x70   : > { %1052 = vst [vmem:[%s4771_s26 + $0x5e0] sm:$0xff] %v1051_v60  ;;  %v1057_v63 = vld [vmem:[%s4766_s25 + $0x11f8] sm:$0xff]  ;;  %1054 = vst [vmem:[%s4771_s26 + $0x5e8] sm:$0xff] %v1053_v61  ;;  %v1059_v0 = vld [vmem:[%s4766_s25 + $0x1800] sm:$0xff] }
  0x71   : > { %1056 = vst [vmem:[%s4771_s26 + $0x5f0] sm:$0xff] %v1055_v62  ;;  %1058 = vst [vmem:[%s4771_s26 + $0x5f8] sm:$0xff] %v1057_v63  ;;  %v1061_v1 = vld [vmem:[%s4766_s25 + $0x1808] sm:$0xff]  ;;  %v1063_v2 = vld [vmem:[%s4766_s25 + $0x1810] sm:$0xff] }
  0x72   : > { %1060 = vst [vmem:[%s4771_s26 + $0x600] sm:$0xff] %v1059_v0  ;;  %1062 = vst [vmem:[%s4771_s26 + $0x608] sm:$0xff] %v1061_v1  ;;  %v1065_v3 = vld [vmem:[%s4766_s25 + $0x1818] sm:$0xff]  ;;  %v1067_v4 = vld [vmem:[%s4766_s25 + $0x1820] sm:$0xff] }
  0x73   : > { %1064 = vst [vmem:[%s4771_s26 + $0x610] sm:$0xff] %v1063_v2  ;;  %v1069_v5 = vld [vmem:[%s4766_s25 + $0x1828] sm:$0xff]  ;;  %1066 = vst [vmem:[%s4771_s26 + $0x618] sm:$0xff] %v1065_v3  ;;  %v1071_v6 = vld [vmem:[%s4766_s25 + $0x1830] sm:$0xff] }
  0x74   : > { %1068 = vst [vmem:[%s4771_s26 + $0x620] sm:$0xff] %v1067_v4  ;;  %1070 = vst [vmem:[%s4771_s26 + $0x628] sm:$0xff] %v1069_v5  ;;  %v1073_v7 = vld [vmem:[%s4766_s25 + $0x1838] sm:$0xff]  ;;  %v1075_v8 = vld [vmem:[%s4766_s25 + $0x1840] sm:$0xff] }
  0x75   : > { %1072 = vst [vmem:[%s4771_s26 + $0x630] sm:$0xff] %v1071_v6  ;;  %1074 = vst [vmem:[%s4771_s26 + $0x638] sm:$0xff] %v1073_v7  ;;  %v1077_v9 = vld [vmem:[%s4766_s25 + $0x1848] sm:$0xff]  ;;  %v1079_v10 = vld [vmem:[%s4766_s25 + $0x1850] sm:$0xff] }
  0x76   : > { %1076 = vst [vmem:[%s4771_s26 + $0x640] sm:$0xff] %v1075_v8  ;;  %v1081_v11 = vld [vmem:[%s4766_s25 + $0x1858] sm:$0xff]  ;;  %1078 = vst [vmem:[%s4771_s26 + $0x648] sm:$0xff] %v1077_v9  ;;  %v1083_v12 = vld [vmem:[%s4766_s25 + $0x1860] sm:$0xff] }
  0x77   : > { %1080 = vst [vmem:[%s4771_s26 + $0x650] sm:$0xff] %v1079_v10  ;;  %1082 = vst [vmem:[%s4771_s26 + $0x658] sm:$0xff] %v1081_v11  ;;  %v1085_v13 = vld [vmem:[%s4766_s25 + $0x1868] sm:$0xff]  ;;  %v1087_v14 = vld [vmem:[%s4766_s25 + $0x1870] sm:$0xff] }
  0x78   : > { %1084 = vst [vmem:[%s4771_s26 + $0x660] sm:$0xff] %v1083_v12  ;;  %1086 = vst [vmem:[%s4771_s26 + $0x668] sm:$0xff] %v1085_v13  ;;  %v1089_v15 = vld [vmem:[%s4766_s25 + $0x1878] sm:$0xff]  ;;  %v1091_v16 = vld [vmem:[%s4766_s25 + $0x1880] sm:$0xff] }
  0x79   : > { %1088 = vst [vmem:[%s4771_s26 + $0x670] sm:$0xff] %v1087_v14  ;;  %v1093_v17 = vld [vmem:[%s4766_s25 + $0x1888] sm:$0xff]  ;;  %1090 = vst [vmem:[%s4771_s26 + $0x678] sm:$0xff] %v1089_v15  ;;  %v1095_v18 = vld [vmem:[%s4766_s25 + $0x1890] sm:$0xff] }
  0x7a   : > { %1092 = vst [vmem:[%s4771_s26 + $0x680] sm:$0xff] %v1091_v16  ;;  %1094 = vst [vmem:[%s4771_s26 + $0x688] sm:$0xff] %v1093_v17  ;;  %v1097_v19 = vld [vmem:[%s4766_s25 + $0x1898] sm:$0xff]  ;;  %v1099_v20 = vld [vmem:[%s4766_s25 + $0x18a0] sm:$0xff] }
  0x7b   : > { %1096 = vst [vmem:[%s4771_s26 + $0x690] sm:$0xff] %v1095_v18  ;;  %1098 = vst [vmem:[%s4771_s26 + $0x698] sm:$0xff] %v1097_v19  ;;  %v1101_v21 = vld [vmem:[%s4766_s25 + $0x18a8] sm:$0xff]  ;;  %v1103_v22 = vld [vmem:[%s4766_s25 + $0x18b0] sm:$0xff] }
  0x7c   : > { %1100 = vst [vmem:[%s4771_s26 + $0x6a0] sm:$0xff] %v1099_v20  ;;  %v1105_v23 = vld [vmem:[%s4766_s25 + $0x18b8] sm:$0xff]  ;;  %1102 = vst [vmem:[%s4771_s26 + $0x6a8] sm:$0xff] %v1101_v21  ;;  %v1107_v24 = vld [vmem:[%s4766_s25 + $0x18c0] sm:$0xff] }
  0x7d   : > { %1104 = vst [vmem:[%s4771_s26 + $0x6b0] sm:$0xff] %v1103_v22  ;;  %1106 = vst [vmem:[%s4771_s26 + $0x6b8] sm:$0xff] %v1105_v23  ;;  %v1109_v25 = vld [vmem:[%s4766_s25 + $0x18c8] sm:$0xff]  ;;  %v1111_v26 = vld [vmem:[%s4766_s25 + $0x18d0] sm:$0xff] }
  0x7e   : > { %1108 = vst [vmem:[%s4771_s26 + $0x6c0] sm:$0xff] %v1107_v24  ;;  %1110 = vst [vmem:[%s4771_s26 + $0x6c8] sm:$0xff] %v1109_v25  ;;  %v1113_v27 = vld [vmem:[%s4766_s25 + $0x18d8] sm:$0xff]  ;;  %v1115_v28 = vld [vmem:[%s4766_s25 + $0x18e0] sm:$0xff] }
  0x7f   : > { %1112 = vst [vmem:[%s4771_s26 + $0x6d0] sm:$0xff] %v1111_v26  ;;  %v1117_v29 = vld [vmem:[%s4766_s25 + $0x18e8] sm:$0xff]  ;;  %1114 = vst [vmem:[%s4771_s26 + $0x6d8] sm:$0xff] %v1113_v27  ;;  %v1119_v30 = vld [vmem:[%s4766_s25 + $0x18f0] sm:$0xff] }
  0x80   : > { %1116 = vst [vmem:[%s4771_s26 + $0x6e0] sm:$0xff] %v1115_v28  ;;  %1118 = vst [vmem:[%s4771_s26 + $0x6e8] sm:$0xff] %v1117_v29  ;;  %v1121_v31 = vld [vmem:[%s4766_s25 + $0x18f8] sm:$0xff]  ;;  %v1123_v32 = vld [vmem:[%s4766_s25 + $0x1900] sm:$0xff] }
  0x81   : > { %1120 = vst [vmem:[%s4771_s26 + $0x6f0] sm:$0xff] %v1119_v30  ;;  %1122 = vst [vmem:[%s4771_s26 + $0x6f8] sm:$0xff] %v1121_v31  ;;  %v1125_v33 = vld [vmem:[%s4766_s25 + $0x1908] sm:$0xff]  ;;  %v1127_v34 = vld [vmem:[%s4766_s25 + $0x1910] sm:$0xff] }
  0x82   : > { %1124 = vst [vmem:[%s4771_s26 + $0x700] sm:$0xff] %v1123_v32  ;;  %v1129_v35 = vld [vmem:[%s4766_s25 + $0x1918] sm:$0xff]  ;;  %1126 = vst [vmem:[%s4771_s26 + $0x708] sm:$0xff] %v1125_v33  ;;  %v1131_v36 = vld [vmem:[%s4766_s25 + $0x1920] sm:$0xff] }
  0x83   : > { %1128 = vst [vmem:[%s4771_s26 + $0x710] sm:$0xff] %v1127_v34  ;;  %1130 = vst [vmem:[%s4771_s26 + $0x718] sm:$0xff] %v1129_v35  ;;  %v1133_v37 = vld [vmem:[%s4766_s25 + $0x1928] sm:$0xff]  ;;  %v1135_v38 = vld [vmem:[%s4766_s25 + $0x1930] sm:$0xff] }
  0x84   : > { %1132 = vst [vmem:[%s4771_s26 + $0x720] sm:$0xff] %v1131_v36  ;;  %1134 = vst [vmem:[%s4771_s26 + $0x728] sm:$0xff] %v1133_v37  ;;  %v1137_v39 = vld [vmem:[%s4766_s25 + $0x1938] sm:$0xff]  ;;  %v1139_v40 = vld [vmem:[%s4766_s25 + $0x1940] sm:$0xff] }
  0x85   : > { %1136 = vst [vmem:[%s4771_s26 + $0x730] sm:$0xff] %v1135_v38  ;;  %v1141_v41 = vld [vmem:[%s4766_s25 + $0x1948] sm:$0xff]  ;;  %1138 = vst [vmem:[%s4771_s26 + $0x738] sm:$0xff] %v1137_v39  ;;  %v1143_v42 = vld [vmem:[%s4766_s25 + $0x1950] sm:$0xff] }
  0x86   : > { %1140 = vst [vmem:[%s4771_s26 + $0x740] sm:$0xff] %v1139_v40  ;;  %1142 = vst [vmem:[%s4771_s26 + $0x748] sm:$0xff] %v1141_v41  ;;  %v1145_v43 = vld [vmem:[%s4766_s25 + $0x1958] sm:$0xff]  ;;  %v1147_v44 = vld [vmem:[%s4766_s25 + $0x1960] sm:$0xff] }
  0x87   : > { %1144 = vst [vmem:[%s4771_s26 + $0x750] sm:$0xff] %v1143_v42  ;;  %1146 = vst [vmem:[%s4771_s26 + $0x758] sm:$0xff] %v1145_v43  ;;  %v1149_v45 = vld [vmem:[%s4766_s25 + $0x1968] sm:$0xff]  ;;  %v1151_v46 = vld [vmem:[%s4766_s25 + $0x1970] sm:$0xff] }
  0x88   : > { %1148 = vst [vmem:[%s4771_s26 + $0x760] sm:$0xff] %v1147_v44  ;;  %v1153_v47 = vld [vmem:[%s4766_s25 + $0x1978] sm:$0xff]  ;;  %1150 = vst [vmem:[%s4771_s26 + $0x768] sm:$0xff] %v1149_v45  ;;  %v1155_v48 = vld [vmem:[%s4766_s25 + $0x1980] sm:$0xff] }
  0x89   : > { %1152 = vst [vmem:[%s4771_s26 + $0x770] sm:$0xff] %v1151_v46  ;;  %1154 = vst [vmem:[%s4771_s26 + $0x778] sm:$0xff] %v1153_v47  ;;  %v1157_v49 = vld [vmem:[%s4766_s25 + $0x1988] sm:$0xff]  ;;  %v1159_v50 = vld [vmem:[%s4766_s25 + $0x1990] sm:$0xff] }
  0x8a   : > { %1156 = vst [vmem:[%s4771_s26 + $0x780] sm:$0xff] %v1155_v48  ;;  %1158 = vst [vmem:[%s4771_s26 + $0x788] sm:$0xff] %v1157_v49  ;;  %v1161_v51 = vld [vmem:[%s4766_s25 + $0x1998] sm:$0xff]  ;;  %v1163_v52 = vld [vmem:[%s4766_s25 + $0x19a0] sm:$0xff] }
  0x8b   : > { %1160 = vst [vmem:[%s4771_s26 + $0x790] sm:$0xff] %v1159_v50  ;;  %v1165_v53 = vld [vmem:[%s4766_s25 + $0x19a8] sm:$0xff]  ;;  %1162 = vst [vmem:[%s4771_s26 + $0x798] sm:$0xff] %v1161_v51  ;;  %v1167_v54 = vld [vmem:[%s4766_s25 + $0x19b0] sm:$0xff] }
  0x8c   : > { %1164 = vst [vmem:[%s4771_s26 + $0x7a0] sm:$0xff] %v1163_v52  ;;  %1166 = vst [vmem:[%s4771_s26 + $0x7a8] sm:$0xff] %v1165_v53  ;;  %v1169_v55 = vld [vmem:[%s4766_s25 + $0x19b8] sm:$0xff]  ;;  %v1171_v56 = vld [vmem:[%s4766_s25 + $0x19c0] sm:$0xff] }
  0x8d   : > { %1168 = vst [vmem:[%s4771_s26 + $0x7b0] sm:$0xff] %v1167_v54  ;;  %1170 = vst [vmem:[%s4771_s26 + $0x7b8] sm:$0xff] %v1169_v55  ;;  %v1173_v57 = vld [vmem:[%s4766_s25 + $0x19c8] sm:$0xff]  ;;  %v1175_v58 = vld [vmem:[%s4766_s25 + $0x19d0] sm:$0xff] }
  0x8e   : > { %1172 = vst [vmem:[%s4771_s26 + $0x7c0] sm:$0xff] %v1171_v56  ;;  %v1177_v59 = vld [vmem:[%s4766_s25 + $0x19d8] sm:$0xff]  ;;  %1174 = vst [vmem:[%s4771_s26 + $0x7c8] sm:$0xff] %v1173_v57  ;;  %v1179_v60 = vld [vmem:[%s4766_s25 + $0x19e0] sm:$0xff] }
  0x8f   : > { %1176 = vst [vmem:[%s4771_s26 + $0x7d0] sm:$0xff] %v1175_v58  ;;  %1178 = vst [vmem:[%s4771_s26 + $0x7d8] sm:$0xff] %v1177_v59  ;;  %v1181_v61 = vld [vmem:[%s4766_s25 + $0x19e8] sm:$0xff]  ;;  %v1183_v62 = vld [vmem:[%s4766_s25 + $0x19f0] sm:$0xff] }
  0x90   : > { %1180 = vst [vmem:[%s4771_s26 + $0x7e0] sm:$0xff] %v1179_v60  ;;  %1182 = vst [vmem:[%s4771_s26 + $0x7e8] sm:$0xff] %v1181_v61  ;;  %v1185_v63 = vld [vmem:[%s4766_s25 + $0x19f8] sm:$0xff] }
  0x91   : > { %1184 = vst [vmem:[%s4771_s26 + $0x7f0] sm:$0xff] %v1183_v62  ;;  %1186 = vst [vmem:[%s4771_s26 + $0x7f8] sm:$0xff] %v1185_v63 }
  0x92 PF: > { %p3504_p5 = scmp.ge.s32.totalorder %s4710_s14, 1  ;;  %p1191_p6 = scmp.lt.s32.totalorder %s4710_s14, 5 }
  0x94   : > { %p1192_p7 = pnand %p3504_p5, %p1191_p6 }
  0x96   : > { %1195 = sbr.rel (%p1192_p7) target bundleno = 666 (0x29a), region = 66 }
  0x9d   : > { %v1228_v0 = vld [vmem:[%s6462_s1] sm:$0xff]  ;;  %v1229_v1 = vld [vmem:[%s6462_s1 + $0x8] sm:$0xff]  ;;  %v1230_v2 = vld [vmem:[%s6462_s1 + $0x10] sm:$0xff]  ;;  %s1198_s6 = sand.u32 1, %s4702_s12   ;;  %s3506_s18 = sshll.u32 %s3497_s15, 6  ;;  %vm3370_vm0 = vcmask 48128  }
  0x9e   : > { %v5294_v3 = vpack.c.bf16 %v1229_v1, %v1228_v0  ;;  %v1231_v4 = vld [vmem:[%s6462_s1 + $0x18] sm:$0xff]  ;;  %s3505_s9 = sshll.u32 %s1198_s6, 11  ;;  %v1232_v6 = vld [vmem:[%s6462_s1 + $0x20] sm:$0xff]  ;;  %v1233_v7 = vld [vmem:[%s6462_s1 + $0x28] sm:$0xff]  ;;  %p1223_p8 = scmp.lt.s32.totalorder %s3506_s18, 255 }
  0x9f   : > { %v5299_v5 = vpack.c.bf16 %v1231_v4, %v1230_v2  ;;  %v5313_v8 = vpack.c.bf16 %v1233_v7, %v1232_v6  ;;  %s5315_s12 = scalar_lea.vmem [#allocation2], %s3505_s9  ;;  %v1234_v11 = vld [vmem:[%s6462_s1 + $0x30] sm:$0xff]  ;;  %v1235_v12 = vld [vmem:[%s6462_s1 + $0x38] sm:$0xff]  ;;  %v1236_v14 = vld [vmem:[%s6462_s1 + $0x40] sm:$0xff] }
  0xa0   : > { %4537 = vmatprep.subr.bf16.mxu0 %v5294_v3  ;;  %4569 = vmatprep.subr.bf16.mxu1 %v5294_v3  ;;  %v1244_v9 = vld [vmem:[%s5315_s12] sm:$0xff]  ;;  %v5329_v13 = vpack.c.bf16 %v1235_v12, %v1234_v11  ;;  %v1237_v15 = vld [vmem:[%s6462_s1 + $0x48] sm:$0xff]  ;;  %v1238_v17 = vld [vmem:[%s6462_s1 + $0x50] sm:$0xff]  ;;  %s6767_s18 = smov (!%p1223_p8, %s3506_s18), 255 }
  0xa1   : > { %4539 = vmatpush3.bf16.msra.mxu0 %v5294_v3  ;;  %4571 = vmatpush3.bf16.msra.mxu1 %v5294_v3  ;;  %v3508_v10 = vld [vmem:[%s5315_s12 + $0x200] sm:$0xff]  ;;  %v5341_v16 = vpack.c.bf16 %v1237_v15, %v1236_v14  ;;  %v1239_v18 = vld [vmem:[%s6462_s1 + $0x58] sm:$0xff]  ;;  %v1241_v21 = vld [vmem:[%s6462_s1 + $0x68] sm:$0xff] }
  0xa2   : > { %4541 = vmatprep.subr.bf16.mxu0 %v5299_v5  ;;  %4573 = vmatprep.subr.bf16.mxu1 %v5299_v5  ;;  %v5353_v19 = vpack.c.bf16 %v1239_v18, %v1238_v17  ;;  %v1240_v20 = vld [vmem:[%s6462_s1 + $0x60] sm:$0xff]  ;;  %v1242_v23 = vld [vmem:[%s6462_s1 + $0x70] sm:$0xff]  ;;  %v1243_v24 = vld [vmem:[%s6462_s1 + $0x78] sm:$0xff] }
  0xa3   : > { %4056 = vmatprep.mubr.f32.mxu0 %v1244_v9  ;;  %4184 = vmatprep.mubr.f32.mxu1 %v3508_v10  ;;  %v5365_v22 = vpack.c.bf16 %v1241_v21, %v1240_v20  ;;  %v5377_v25 = vpack.c.bf16 %v1243_v24, %v1242_v23  ;;  %v1245_v26 = vld [vmem:[%s5315_s12 + $0x8] sm:$0xff]  ;;  %v1246_v28 = vld [vmem:[%s5315_s12 + $0x10] sm:$0xff]  ;;  %v1247_v30 = vld [vmem:[%s5315_s12 + $0x18] sm:$0xff] }
  0xa4   : > { %v3509_v27 = vld [vmem:[%s5315_s12 + $0x208] sm:$0xff]  ;;  %v3510_v29 = vld [vmem:[%s5315_s12 + $0x210] sm:$0xff]  ;;  %v3511_v31 = vld [vmem:[%s5315_s12 + $0x218] sm:$0xff] }
  0xa5   : > { %4543 = vmatpush3.bf16.msra.mxu0 %v5299_v5  ;;  %4575 = vmatpush3.bf16.msra.mxu1 %v5299_v5  ;;  %v1248_v32 = vld [vmem:[%s5315_s12 + $0x20] sm:$0xff]  ;;  %v1249_v34 = vld [vmem:[%s5315_s12 + $0x28] sm:$0xff]  ;;  %v1250_v36 = vld [vmem:[%s5315_s12 + $0x30] sm:$0xff] }
  0xa6   : > { %4545 = vmatprep.subr.bf16.mxu0 %v5313_v8  ;;  %4577 = vmatprep.subr.bf16.mxu1 %v5313_v8  ;;  %v3512_v33 = vld [vmem:[%s5315_s12 + $0x220] sm:$0xff]  ;;  %v3513_v35 = vld [vmem:[%s5315_s12 + $0x228] sm:$0xff]  ;;  %v3514_v37 = vld [vmem:[%s5315_s12 + $0x230] sm:$0xff] }
  0xa7   : > { %v1251_v38 = vld [vmem:[%s5315_s12 + $0x38] sm:$0xff]  ;;  %v1252_v40 = vld [vmem:[%s5315_s12 + $0x40] sm:$0xff]  ;;  %v1253_v42 = vld [vmem:[%s5315_s12 + $0x48] sm:$0xff] }
  0xa8   : > { %v3515_v39 = vld [vmem:[%s5315_s12 + $0x238] sm:$0xff]  ;;  %v3516_v41 = vld [vmem:[%s5315_s12 + $0x240] sm:$0xff]  ;;  %v3517_v43 = vld [vmem:[%s5315_s12 + $0x248] sm:$0xff] }
  0xa9   : > { %4547 = vmatpush3.bf16.msra.mxu0 %v5313_v8  ;;  %4579 = vmatpush3.bf16.msra.mxu1 %v5313_v8  ;;  %v1254_v44 = vld [vmem:[%s5315_s12 + $0x50] sm:$0xff]  ;;  %v1255_v46 = vld [vmem:[%s5315_s12 + $0x58] sm:$0xff]  ;;  %v1256_v48 = vld [vmem:[%s5315_s12 + $0x60] sm:$0xff] }
  0xaa   : > { %4549 = vmatprep.subr.bf16.mxu0 %v5329_v13  ;;  %4581 = vmatprep.subr.bf16.mxu1 %v5329_v13  ;;  %v3518_v45 = vld [vmem:[%s5315_s12 + $0x250] sm:$0xff]  ;;  %v3519_v47 = vld [vmem:[%s5315_s12 + $0x258] sm:$0xff]  ;;  %v3520_v49 = vld [vmem:[%s5315_s12 + $0x260] sm:$0xff] }
  0xab   : > { %v1257_v50 = vld [vmem:[%s5315_s12 + $0x68] sm:$0xff]  ;;  %v1258_v52 = vld [vmem:[%s5315_s12 + $0x70] sm:$0xff]  ;;  %v1259_v54 = vld [vmem:[%s5315_s12 + $0x78] sm:$0xff] }
  0xac   : > { %v3521_v51 = vld [vmem:[%s5315_s12 + $0x268] sm:$0xff]  ;;  %v3522_v53 = vld [vmem:[%s5315_s12 + $0x270] sm:$0xff]  ;;  %v3523_v55 = vld [vmem:[%s5315_s12 + $0x278] sm:$0xff] }
  0xad   : > { %4551 = vmatpush3.bf16.msra.mxu0 %v5329_v13  ;;  %4583 = vmatpush3.bf16.msra.mxu1 %v5329_v13  ;;  %v1260_v56 = vld [vmem:[%s5315_s12 + $0x80] sm:$0xff]  ;;  %v1261_v58 = vld [vmem:[%s5315_s12 + $0x88] sm:$0xff]  ;;  %v1262_v60 = vld [vmem:[%s5315_s12 + $0x90] sm:$0xff] }
  0xae   : > { %4553 = vmatprep.subr.bf16.mxu0 %v5341_v16  ;;  %4585 = vmatprep.subr.bf16.mxu1 %v5341_v16  ;;  %v3524_v57 = vld [vmem:[%s5315_s12 + $0x280] sm:$0xff]  ;;  %v3525_v59 = vld [vmem:[%s5315_s12 + $0x288] sm:$0xff]  ;;  %v3526_v61 = vld [vmem:[%s5315_s12 + $0x290] sm:$0xff] }
  0xaf   : > { %v1263_v62 = vld [vmem:[%s5315_s12 + $0x98] sm:$0xff]  ;;  %v1264_v0 = vld [vmem:[%s5315_s12 + $0xa0] sm:$0xff]  ;;  %v1265_v2 = vld [vmem:[%s5315_s12 + $0xa8] sm:$0xff] }
  0xb0   : > { %v3527_v63 = vld [vmem:[%s5315_s12 + $0x298] sm:$0xff]  ;;  %v3528_v1 = vld [vmem:[%s5315_s12 + $0x2a0] sm:$0xff]  ;;  %v1266_v4 = vld [vmem:[%s5315_s12 + $0xb0] sm:$0xff] }
  0xb1   : > { %4555 = vmatpush3.bf16.msra.mxu0 %v5341_v16  ;;  %4587 = vmatpush3.bf16.msra.mxu1 %v5341_v16  ;;  %v1267_v6 = vld [vmem:[%s5315_s12 + $0xb8] sm:$0xff]  ;;  %v3532_v9 = vld [vmem:[%s5315_s12 + $0x2c0] sm:$0xff]  ;;  %v1269_v10 = vld [vmem:[%s5315_s12 + $0xc8] sm:$0xff] }
  0xb2   : > { %4557 = vmatprep.subr.bf16.mxu0 %v5353_v19  ;;  %4589 = vmatprep.subr.bf16.mxu1 %v5353_v19  ;;  %v3531_v7 = vld [vmem:[%s5315_s12 + $0x2b8] sm:$0xff]  ;;  %v3533_v11 = vld [vmem:[%s5315_s12 + $0x2c8] sm:$0xff]  ;;  %v1270_v12 = vld [vmem:[%s5315_s12 + $0xd0] sm:$0xff] }
  0xb3   : > { %v1271_v14 = vld [vmem:[%s5315_s12 + $0xd8] sm:$0xff]  ;;  %v3536_v17 = vld [vmem:[%s5315_s12 + $0x2e0] sm:$0xff]  ;;  %v1273_v18 = vld [vmem:[%s5315_s12 + $0xe8] sm:$0xff] }
  0xb4   : > { %v3535_v15 = vld [vmem:[%s5315_s12 + $0x2d8] sm:$0xff]  ;;  %v1274_v20 = vld [vmem:[%s5315_s12 + $0xf0] sm:$0xff]  ;;  %v1276_v24 = vld [vmem:[%s5315_s12 + $0x100] sm:$0xff] }
  0xb5   : > { %4559 = vmatpush3.bf16.msra.mxu0 %v5353_v19  ;;  %4591 = vmatpush3.bf16.msra.mxu1 %v5353_v19  ;;  %v3538_v21 = vld [vmem:[%s5315_s12 + $0x2f0] sm:$0xff]  ;;  %v3539_v23 = vld [vmem:[%s5315_s12 + $0x2f8] sm:$0xff] }
  0xb6   : > { %4561 = vmatprep.subr.bf16.mxu0 %v5365_v22  ;;  %4593 = vmatprep.subr.bf16.mxu1 %v5365_v22 }
  0xb9   : > { %4563 = vmatpush3.bf16.msra.mxu0 %v5365_v22  ;;  %4595 = vmatpush3.bf16.msra.mxu1 %v5365_v22 }
  0xba   : > { %4565 = vmatprep.subr.bf16.mxu0 %v5377_v25  ;;  %4597 = vmatprep.subr.bf16.mxu1 %v5377_v25 }
  0xbd   : > { %4567 = vmatpush3.bf16.msra.mxu0 %v5377_v25  ;;  %4599 = vmatpush3.bf16.msra.mxu1 %v5377_v25 }
  0xbe   : > { %4601 = vmatprep.subr.bf16.mxu0 %v5294_v3  ;;  %4633 = vmatprep.subr.bf16.mxu1 %v5294_v3 }
  0xc0   : > { %4057 = vmatmul.mubr.f32.vlgmr.msra.gmra.mrb[0].mxu0 %v1245_v26  ;;  %4185 = vmatmul.mubr.f32.vlgmr.msra.gmra.mrb[0].mxu1 %v3509_v27  ;;  %v1277_v26 = vld [vmem:[%s5315_s12 + $0x108] sm:$0xff] }
  0xc1   : > { %4603 = vmatpush3.bf16.msra.mxu0 %v5294_v3  ;;  %4059 = vmatprep.mubr.f32.mxu0 %v1246_v28  ;;  %v3541_v27 = vld [vmem:[%s5315_s12 + $0x308] sm:$0xff]  ;;  %v1278_v28 = vld [vmem:[%s5315_s12 + $0x110] sm:$0xff] }
  0xc2   : > { %4187 = vmatprep.mubr.f32.mxu1 %v3510_v29  ;;  %4635 = vmatpush3.bf16.msra.mxu1 %v5294_v3  ;;  %v3529_v3 = vld [vmem:[%s5315_s12 + $0x2a8] sm:$0xff]  ;;  %v3542_v29 = vld [vmem:[%s5315_s12 + $0x310] sm:$0xff] }
  0xc3   : > { %4605 = vmatprep.subr.bf16.mxu0 %v5299_v5  ;;  %4637 = vmatprep.subr.bf16.mxu1 %v5299_v5 }
  0xc4   : > { %4060 = vmatmul.mubr.f32.gmra.mrb[2].mxu0 %v1247_v30  ;;  %4188 = vmatmul.mubr.f32.gmra.mrb[2].mxu1 %v3511_v31  ;;  %v1279_v30 = vld [vmem:[%s5315_s12 + $0x118] sm:$0xff] }
  0xc5   : > { %4062 = vmatprep.mubr.f32.mxu0 %v1248_v32  ;;  %4190 = vmatprep.mubr.f32.mxu1 %v3512_v33  ;;  %v3543_v31 = vld [vmem:[%s5315_s12 + $0x318] sm:$0xff]  ;;  %v1280_v32 = vld [vmem:[%s5315_s12 + $0x120] sm:$0xff] }
  0xc6   : > { %4607 = vmatpush3.bf16.msra.mxu0 %v5299_v5  ;;  %4639 = vmatpush3.bf16.msra.mxu1 %v5299_v5  ;;  %v3530_v5 = vld [vmem:[%s5315_s12 + $0x2b0] sm:$0xff]  ;;  %v3544_v33 = vld [vmem:[%s5315_s12 + $0x320] sm:$0xff] }
  0xc7   : > { %4609 = vmatprep.subr.bf16.mxu0 %v5313_v8  ;;  %4641 = vmatprep.subr.bf16.mxu1 %v5313_v8 }
  0xc8   : > { %4063 = vmatmul.mubr.f32.gmra.mrb[4].mxu0 %v1249_v34  ;;  %4191 = vmatmul.mubr.f32.gmra.mrb[4].mxu1 %v3513_v35  ;;  %v1281_v34 = vld [vmem:[%s5315_s12 + $0x128] sm:$0xff] }
  0xc9   : > { %4065 = vmatprep.mubr.f32.mxu0 %v1250_v36  ;;  %4193 = vmatprep.mubr.f32.mxu1 %v3514_v37  ;;  %v3545_v35 = vld [vmem:[%s5315_s12 + $0x328] sm:$0xff]  ;;  %v1282_v36 = vld [vmem:[%s5315_s12 + $0x130] sm:$0xff] }
  0xca   : > { %4611 = vmatpush3.bf16.msra.mxu0 %v5313_v8  ;;  %4643 = vmatpush3.bf16.msra.mxu1 %v5313_v8  ;;  %v1268_v8 = vld [vmem:[%s5315_s12 + $0xc0] sm:$0xff]  ;;  %v3546_v37 = vld [vmem:[%s5315_s12 + $0x330] sm:$0xff] }
  0xcb   : > { %4613 = vmatprep.subr.bf16.mxu0 %v5329_v13  ;;  %4645 = vmatprep.subr.bf16.mxu1 %v5329_v13 }
  0xcc   : > { %4066 = vmatmul.mubr.f32.gmra.mrb[6].mxu0 %v1251_v38  ;;  %4194 = vmatmul.mubr.f32.gmra.mrb[6].mxu1 %v3515_v39  ;;  %v1283_v38 = vld [vmem:[%s5315_s12 + $0x138] sm:$0xff] }
  0xcd   : > { %4068 = vmatprep.mubr.f32.mxu0 %v1252_v40  ;;  %4196 = vmatprep.mubr.f32.mxu1 %v3516_v41  ;;  %v3547_v39 = vld [vmem:[%s5315_s12 + $0x338] sm:$0xff]  ;;  %v1284_v40 = vld [vmem:[%s5315_s12 + $0x140] sm:$0xff] }
  0xce   : > { %4615 = vmatpush3.bf16.msra.mxu0 %v5329_v13  ;;  %4647 = vmatpush3.bf16.msra.mxu1 %v5329_v13  ;;  %v3534_v13 = vld [vmem:[%s5315_s12 + $0x2d0] sm:$0xff]  ;;  %v3548_v41 = vld [vmem:[%s5315_s12 + $0x340] sm:$0xff] }
  0xcf   : > { %4617 = vmatprep.subr.bf16.mxu0 %v5341_v16  ;;  %4649 = vmatprep.subr.bf16.mxu1 %v5341_v16 }
  0xd0   : > { %4069 = vmatmul.mubr.f32.gmra.mrb[8].mxu0 %v1253_v42  ;;  %4197 = vmatmul.mubr.f32.gmra.mrb[8].mxu1 %v3517_v43  ;;  %v1285_v42 = vld [vmem:[%s5315_s12 + $0x148] sm:$0xff] }
  0xd1   : > { %4071 = vmatprep.mubr.f32.mxu0 %v1254_v44  ;;  %4199 = vmatprep.mubr.f32.mxu1 %v3518_v45  ;;  %v3549_v43 = vld [vmem:[%s5315_s12 + $0x348] sm:$0xff]  ;;  %v1286_v44 = vld [vmem:[%s5315_s12 + $0x150] sm:$0xff] }
  0xd2   : > { %4619 = vmatpush3.bf16.msra.mxu0 %v5341_v16  ;;  %4651 = vmatpush3.bf16.msra.mxu1 %v5341_v16  ;;  %v1272_v16 = vld [vmem:[%s5315_s12 + $0xe0] sm:$0xff]  ;;  %v3550_v45 = vld [vmem:[%s5315_s12 + $0x350] sm:$0xff] }
  0xd3   : > { %4621 = vmatprep.subr.bf16.mxu0 %v5353_v19  ;;  %4653 = vmatprep.subr.bf16.mxu1 %v5353_v19 }
  0xd4   : > { %4072 = vmatmul.mubr.f32.gmra.mrb[10].mxu0 %v1255_v46  ;;  %4200 = vmatmul.mubr.f32.gmra.mrb[10].mxu1 %v3519_v47  ;;  %v1287_v46 = vld [vmem:[%s5315_s12 + $0x158] sm:$0xff] }
  0xd5   : > { %4074 = vmatprep.mubr.f32.mxu0 %v1256_v48  ;;  %4202 = vmatprep.mubr.f32.mxu1 %v3520_v49  ;;  %v3551_v47 = vld [vmem:[%s5315_s12 + $0x358] sm:$0xff]  ;;  %v1288_v48 = vld [vmem:[%s5315_s12 + $0x160] sm:$0xff] }
  0xd6   : > { %4623 = vmatpush3.bf16.msra.mxu0 %v5353_v19  ;;  %4655 = vmatpush3.bf16.msra.mxu1 %v5353_v19  ;;  %v3537_v19 = vld [vmem:[%s5315_s12 + $0x2e8] sm:$0xff]  ;;  %v3552_v49 = vld [vmem:[%s5315_s12 + $0x360] sm:$0xff] }
  0xd7   : > { %4625 = vmatprep.subr.bf16.mxu0 %v5365_v22  ;;  %4657 = vmatprep.subr.bf16.mxu1 %v5365_v22 }
  0xd8   : > { %4075 = vmatmul.mubr.f32.gmra.mrb[12].mxu0 %v1257_v50  ;;  %4203 = vmatmul.mubr.f32.gmra.mrb[12].mxu1 %v3521_v51  ;;  %v1289_v50 = vld [vmem:[%s5315_s12 + $0x168] sm:$0xff] }
  0xd9   : > { %4077 = vmatprep.mubr.f32.mxu0 %v1258_v52  ;;  %4205 = vmatprep.mubr.f32.mxu1 %v3522_v53  ;;  %v3553_v51 = vld [vmem:[%s5315_s12 + $0x368] sm:$0xff]  ;;  %v1290_v52 = vld [vmem:[%s5315_s12 + $0x170] sm:$0xff] }
  0xda   : > { %4627 = vmatpush3.bf16.msra.mxu0 %v5365_v22  ;;  %4659 = vmatpush3.bf16.msra.mxu1 %v5365_v22  ;;  %v1275_v22 = vld [vmem:[%s5315_s12 + $0xf8] sm:$0xff]  ;;  %v3554_v53 = vld [vmem:[%s5315_s12 + $0x370] sm:$0xff] }
  0xdb   : > { %4629 = vmatprep.subr.bf16.mxu0 %v5377_v25  ;;  %4661 = vmatprep.subr.bf16.mxu1 %v5377_v25 }
  0xdc   : > { %4078 = vmatmul.mubr.f32.gmra.mrb[14].mxu0 %v1259_v54  ;;  %4206 = vmatmul.mubr.f32.gmra.mrb[14].mxu1 %v3523_v55  ;;  %v1291_v54 = vld [vmem:[%s5315_s12 + $0x178] sm:$0xff] }
  0xdd   : > { %4080 = vmatprep.mubr.f32.mxu0 %v1260_v56  ;;  %4208 = vmatprep.mubr.f32.mxu1 %v3524_v57  ;;  %v3555_v55 = vld [vmem:[%s5315_s12 + $0x378] sm:$0xff]  ;;  %v1292_v56 = vld [vmem:[%s5315_s12 + $0x180] sm:$0xff] }
  0xde   : > { %4631 = vmatpush3.bf16.msra.mxu0 %v5377_v25  ;;  %4663 = vmatpush3.bf16.msra.mxu1 %v5377_v25  ;;  %v3540_v25 = vld [vmem:[%s5315_s12 + $0x300] sm:$0xff] }
  0xdf   : > { %v3556_v57 = vld [vmem:[%s5315_s12 + $0x380] sm:$0xff] }
  0xe0   : > { %4081 = vmatmul.mubr.f32.gmra.mrb[16].mxu0 %v1261_v58  ;;  %4209 = vmatmul.mubr.f32.gmra.mrb[16].mxu1 %v3525_v59  ;;  %v1293_v58 = vld [vmem:[%s5315_s12 + $0x188] sm:$0xff] }
  0xe1   : > { %4083 = vmatprep.mubr.f32.mxu0 %v1262_v60  ;;  %4211 = vmatprep.mubr.f32.mxu1 %v3526_v61  ;;  %v3557_v59 = vld [vmem:[%s5315_s12 + $0x388] sm:$0xff]  ;;  %v1294_v60 = vld [vmem:[%s5315_s12 + $0x190] sm:$0xff] }
  0xe2   : > { %v3558_v61 = vld [vmem:[%s5315_s12 + $0x390] sm:$0xff] }
  0xe4   : > { %4084 = vmatmul.mubr.f32.gmra.mrb[18].mxu0 %v1263_v62  ;;  %4212 = vmatmul.mubr.f32.gmra.mrb[18].mxu1 %v3527_v63  ;;  %v1295_v62 = vld [vmem:[%s5315_s12 + $0x198] sm:$0xff] }
  0xe5   : > { %4086 = vmatprep.mubr.f32.mxu0 %v1264_v0  ;;  %4214 = vmatprep.mubr.f32.mxu1 %v3528_v1  ;;  %v3559_v63 = vld [vmem:[%s5315_s12 + $0x398] sm:$0xff]  ;;  %v1296_v0 = vld [vmem:[%s5315_s12 + $0x1a0] sm:$0xff] }
  0xe6   : > { %v3560_v1 = vld [vmem:[%s5315_s12 + $0x3a0] sm:$0xff] }
  0xe8   : > { %4087 = vmatmul.mubr.f32.gmra.mrb[20].mxu0 %v1265_v2  ;;  %4215 = vmatmul.mubr.f32.gmra.mrb[20].mxu1 %v3529_v3  ;;  %v1297_v2 = vld [vmem:[%s5315_s12 + $0x1a8] sm:$0xff] }
  0xe9   : > { %4089 = vmatprep.mubr.f32.mxu0 %v1266_v4  ;;  %4217 = vmatprep.mubr.f32.mxu1 %v3530_v5  ;;  %v3561_v3 = vld [vmem:[%s5315_s12 + $0x3a8] sm:$0xff]  ;;  %v1298_v4 = vld [vmem:[%s5315_s12 + $0x1b0] sm:$0xff] }
  0xea   : > { %v3562_v5 = vld [vmem:[%s5315_s12 + $0x3b0] sm:$0xff] }
  0xec   : > { %4090 = vmatmul.mubr.f32.gmra.mrb[22].mxu0 %v1267_v6  ;;  %4218 = vmatmul.mubr.f32.gmra.mrb[22].mxu1 %v3531_v7  ;;  %v1299_v6 = vld [vmem:[%s5315_s12 + $0x1b8] sm:$0xff] }
  0xed   : > { %4092 = vmatprep.mubr.f32.mxu0 %v1268_v8  ;;  %4220 = vmatprep.mubr.f32.mxu1 %v3532_v9  ;;  %v3563_v7 = vld [vmem:[%s5315_s12 + $0x3b8] sm:$0xff]  ;;  %v1300_v8 = vld [vmem:[%s5315_s12 + $0x1c0] sm:$0xff] }
  0xee   : > { %v3564_v9 = vld [vmem:[%s5315_s12 + $0x3c0] sm:$0xff] }
  0xf0   : > { %4093 = vmatmul.mubr.f32.gmra.mrb[24].mxu0 %v1269_v10  ;;  %4221 = vmatmul.mubr.f32.gmra.mrb[24].mxu1 %v3533_v11  ;;  %v1301_v10 = vld [vmem:[%s5315_s12 + $0x1c8] sm:$0xff] }
  0xf1   : > { %4095 = vmatprep.mubr.f32.mxu0 %v1270_v12  ;;  %4223 = vmatprep.mubr.f32.mxu1 %v3534_v13  ;;  %v3565_v11 = vld [vmem:[%s5315_s12 + $0x3c8] sm:$0xff]  ;;  %v1302_v12 = vld [vmem:[%s5315_s12 + $0x1d0] sm:$0xff] }
  0xf2   : > { %v3566_v13 = vld [vmem:[%s5315_s12 + $0x3d0] sm:$0xff] }
  0xf4   : > { %4096 = vmatmul.mubr.f32.gmra.mrb[26].mxu0 %v1271_v14  ;;  %4224 = vmatmul.mubr.f32.gmra.mrb[26].mxu1 %v3535_v15  ;;  %v1303_v14 = vld [vmem:[%s5315_s12 + $0x1d8] sm:$0xff] }
  0xf5   : > { %4098 = vmatprep.mubr.f32.mxu0 %v1272_v16  ;;  %4226 = vmatprep.mubr.f32.mxu1 %v3536_v17  ;;  %v3567_v15 = vld [vmem:[%s5315_s12 + $0x3d8] sm:$0xff]  ;;  %v1304_v16 = vld [vmem:[%s5315_s12 + $0x1e0] sm:$0xff] }
  0xf6   : > { %v3568_v17 = vld [vmem:[%s5315_s12 + $0x3e0] sm:$0xff] }
  0xf8   : > { %4099 = vmatmul.mubr.f32.gmra.mrb[28].mxu0 %v1273_v18  ;;  %4227 = vmatmul.mubr.f32.gmra.mrb[28].mxu1 %v3537_v19  ;;  %v1305_v18 = vld [vmem:[%s5315_s12 + $0x1e8] sm:$0xff] }
  0xf9   : > { %4101 = vmatprep.mubr.f32.mxu0 %v1274_v20  ;;  %4229 = vmatprep.mubr.f32.mxu1 %v3538_v21  ;;  %v3569_v19 = vld [vmem:[%s5315_s12 + $0x3e8] sm:$0xff]  ;;  %v1306_v20 = vld [vmem:[%s5315_s12 + $0x1f0] sm:$0xff] }
  0xfa   : > { %v3570_v21 = vld [vmem:[%s5315_s12 + $0x3f0] sm:$0xff] }
  0xfc   : > { %4102 = vmatmul.mubr.f32.gmra.mrb[30].mxu0 %v1275_v22  ;;  %4230 = vmatmul.mubr.f32.gmra.mrb[30].mxu1 %v3539_v23  ;;  %v1307_v22 = vld [vmem:[%s5315_s12 + $0x1f8] sm:$0xff] }
  0xfd   : > { %4104 = vmatprep.mubr.f32.mxu0 %v1276_v24  ;;  %4232 = vmatprep.mubr.f32.mxu1 %v3540_v25  ;;  %v3571_v23 = vld [vmem:[%s5315_s12 + $0x3f8] sm:$0xff]  ;;  %v3572_v24 = vld [vmem:[%s5315_s12 + $0x400] sm:$0xff] }
  0xfe   : > { %v3636_v25 = vld [vmem:[%s5315_s12 + $0x600] sm:$0xff] }
 0x100   : > { %4105 = vmatmul.mubr.f32.gmra.mrb[32].mxu0 %v1277_v26  ;;  %4233 = vmatmul.mubr.f32.gmra.mrb[32].mxu1 %v3541_v27  ;;  %v3573_v26 = vld [vmem:[%s5315_s12 + $0x408] sm:$0xff] }
 0x101   : > { %4107 = vmatprep.mubr.f32.mxu0 %v1278_v28  ;;  %4235 = vmatprep.mubr.f32.mxu1 %v3542_v29  ;;  %v3637_v27 = vld [vmem:[%s5315_s12 + $0x608] sm:$0xff]  ;;  %v3574_v28 = vld [vmem:[%s5315_s12 + $0x410] sm:$0xff] }
 0x102   : > { %v3638_v29 = vld [vmem:[%s5315_s12 + $0x610] sm:$0xff] }
 0x104   : > { %4108 = vmatmul.mubr.f32.gmra.mrb[34].mxu0 %v1279_v30  ;;  %4236 = vmatmul.mubr.f32.gmra.mrb[34].mxu1 %v3543_v31  ;;  %v3575_v30 = vld [vmem:[%s5315_s12 + $0x418] sm:$0xff] }
 0x105   : > { %4110 = vmatprep.mubr.f32.mxu0 %v1280_v32  ;;  %4238 = vmatprep.mubr.f32.mxu1 %v3544_v33  ;;  %v3639_v31 = vld [vmem:[%s5315_s12 + $0x618] sm:$0xff]  ;;  %v3576_v32 = vld [vmem:[%s5315_s12 + $0x420] sm:$0xff] }
 0x106   : > { %v3640_v33 = vld [vmem:[%s5315_s12 + $0x620] sm:$0xff] }
 0x108   : > { %4111 = vmatmul.mubr.f32.gmra.mrb[36].mxu0 %v1281_v34  ;;  %4239 = vmatmul.mubr.f32.gmra.mrb[36].mxu1 %v3545_v35  ;;  %v3577_v34 = vld [vmem:[%s5315_s12 + $0x428] sm:$0xff] }
 0x109   : > { %4113 = vmatprep.mubr.f32.mxu0 %v1282_v36  ;;  %4241 = vmatprep.mubr.f32.mxu1 %v3546_v37  ;;  %v3641_v35 = vld [vmem:[%s5315_s12 + $0x628] sm:$0xff]  ;;  %v3578_v36 = vld [vmem:[%s5315_s12 + $0x430] sm:$0xff] }
 0x10a   : > { %v3642_v37 = vld [vmem:[%s5315_s12 + $0x630] sm:$0xff] }
 0x10c   : > { %4114 = vmatmul.mubr.f32.gmra.mrb[38].mxu0 %v1283_v38  ;;  %4242 = vmatmul.mubr.f32.gmra.mrb[38].mxu1 %v3547_v39  ;;  %v3579_v38 = vld [vmem:[%s5315_s12 + $0x438] sm:$0xff] }
 0x10d   : > { %4116 = vmatprep.mubr.f32.mxu0 %v1284_v40  ;;  %4244 = vmatprep.mubr.f32.mxu1 %v3548_v41  ;;  %v3643_v39 = vld [vmem:[%s5315_s12 + $0x638] sm:$0xff]  ;;  %v3580_v40 = vld [vmem:[%s5315_s12 + $0x440] sm:$0xff] }
 0x10e   : > { %v3644_v41 = vld [vmem:[%s5315_s12 + $0x640] sm:$0xff] }
 0x110   : > { %4117 = vmatmul.mubr.f32.gmra.mrb[40].mxu0 %v1285_v42  ;;  %4245 = vmatmul.mubr.f32.gmra.mrb[40].mxu1 %v3549_v43  ;;  %v3581_v42 = vld [vmem:[%s5315_s12 + $0x448] sm:$0xff] }
 0x111   : > { %4119 = vmatprep.mubr.f32.mxu0 %v1286_v44  ;;  %4247 = vmatprep.mubr.f32.mxu1 %v3550_v45  ;;  %v3645_v43 = vld [vmem:[%s5315_s12 + $0x648] sm:$0xff]  ;;  %v3582_v44 = vld [vmem:[%s5315_s12 + $0x450] sm:$0xff] }
 0x112   : > { %v3646_v45 = vld [vmem:[%s5315_s12 + $0x650] sm:$0xff] }
 0x114   : > { %4120 = vmatmul.mubr.f32.gmra.mrb[42].mxu0 %v1287_v46  ;;  %4248 = vmatmul.mubr.f32.gmra.mrb[42].mxu1 %v3551_v47  ;;  %v3583_v46 = vld [vmem:[%s5315_s12 + $0x458] sm:$0xff] }
 0x115   : > { %4122 = vmatprep.mubr.f32.mxu0 %v1288_v48  ;;  %4250 = vmatprep.mubr.f32.mxu1 %v3552_v49  ;;  %v3647_v47 = vld [vmem:[%s5315_s12 + $0x658] sm:$0xff]  ;;  %v3584_v48 = vld [vmem:[%s5315_s12 + $0x460] sm:$0xff] }
 0x116   : > { %v3648_v49 = vld [vmem:[%s5315_s12 + $0x660] sm:$0xff] }
 0x118   : > { %4123 = vmatmul.mubr.f32.gmra.mrb[44].mxu0 %v1289_v50  ;;  %4251 = vmatmul.mubr.f32.gmra.mrb[44].mxu1 %v3553_v51  ;;  %v3585_v50 = vld [vmem:[%s5315_s12 + $0x468] sm:$0xff] }
 0x119   : > { %4125 = vmatprep.mubr.f32.mxu0 %v1290_v52  ;;  %4253 = vmatprep.mubr.f32.mxu1 %v3554_v53  ;;  %v3649_v51 = vld [vmem:[%s5315_s12 + $0x668] sm:$0xff]  ;;  %v3586_v52 = vld [vmem:[%s5315_s12 + $0x470] sm:$0xff] }
 0x11a   : > { %v3650_v53 = vld [vmem:[%s5315_s12 + $0x670] sm:$0xff] }
 0x11c   : > { %4126 = vmatmul.mubr.f32.gmra.mrb[46].mxu0 %v1291_v54  ;;  %4254 = vmatmul.mubr.f32.gmra.mrb[46].mxu1 %v3555_v55  ;;  %v3587_v54 = vld [vmem:[%s5315_s12 + $0x478] sm:$0xff] }
 0x11d   : > { %4128 = vmatprep.mubr.f32.mxu0 %v1292_v56  ;;  %4256 = vmatprep.mubr.f32.mxu1 %v3556_v57  ;;  %v3651_v55 = vld [vmem:[%s5315_s12 + $0x678] sm:$0xff]  ;;  %v3588_v56 = vld [vmem:[%s5315_s12 + $0x480] sm:$0xff] }
 0x11e   : > { %v3652_v57 = vld [vmem:[%s5315_s12 + $0x680] sm:$0xff] }
 0x120   : > { %4129 = vmatmul.mubr.f32.gmra.mrb[48].mxu0 %v1293_v58  ;;  %4257 = vmatmul.mubr.f32.gmra.mrb[48].mxu1 %v3557_v59  ;;  %v3589_v58 = vld [vmem:[%s5315_s12 + $0x488] sm:$0xff] }
 0x121   : > { %4131 = vmatprep.mubr.f32.mxu0 %v1294_v60  ;;  %4259 = vmatprep.mubr.f32.mxu1 %v3558_v61  ;;  %v3653_v59 = vld [vmem:[%s5315_s12 + $0x688] sm:$0xff]  ;;  %v3590_v60 = vld [vmem:[%s5315_s12 + $0x490] sm:$0xff] }
 0x122   : > { %v3654_v61 = vld [vmem:[%s5315_s12 + $0x690] sm:$0xff] }
 0x124   : > { %4132 = vmatmul.mubr.f32.gmra.mrb[50].mxu0 %v1295_v62  ;;  %4260 = vmatmul.mubr.f32.gmra.mrb[50].mxu1 %v3559_v63  ;;  %v3591_v62 = vld [vmem:[%s5315_s12 + $0x498] sm:$0xff] }
 0x125   : > { %4134 = vmatprep.mubr.f32.mxu0 %v1296_v0  ;;  %4262 = vmatprep.mubr.f32.mxu1 %v3560_v1  ;;  %v3655_v63 = vld [vmem:[%s5315_s12 + $0x698] sm:$0xff]  ;;  %v3592_v0 = vld [vmem:[%s5315_s12 + $0x4a0] sm:$0xff] }
 0x126   : > { %v3656_v1 = vld [vmem:[%s5315_s12 + $0x6a0] sm:$0xff] }
 0x128   : > { %4135 = vmatmul.mubr.f32.gmra.mrb[52].mxu0 %v1297_v2  ;;  %4263 = vmatmul.mubr.f32.gmra.mrb[52].mxu1 %v3561_v3  ;;  %v3593_v2 = vld [vmem:[%s5315_s12 + $0x4a8] sm:$0xff] }
 0x129   : > { %4137 = vmatprep.mubr.f32.mxu0 %v1298_v4  ;;  %4265 = vmatprep.mubr.f32.mxu1 %v3562_v5  ;;  %v3657_v3 = vld [vmem:[%s5315_s12 + $0x6a8] sm:$0xff]  ;;  %v3594_v4 = vld [vmem:[%s5315_s12 + $0x4b0] sm:$0xff] }
 0x12a   : > { %v3658_v5 = vld [vmem:[%s5315_s12 + $0x6b0] sm:$0xff] }
 0x12c   : > { %4138 = vmatmul.mubr.f32.gmra.mrb[54].mxu0 %v1299_v6  ;;  %4266 = vmatmul.mubr.f32.gmra.mrb[54].mxu1 %v3563_v7  ;;  %v3595_v6 = vld [vmem:[%s5315_s12 + $0x4b8] sm:$0xff] }
 0x12d   : > { %4140 = vmatprep.mubr.f32.mxu0 %v1300_v8  ;;  %4268 = vmatprep.mubr.f32.mxu1 %v3564_v9  ;;  %v3659_v7 = vld [vmem:[%s5315_s12 + $0x6b8] sm:$0xff]  ;;  %v3596_v8 = vld [vmem:[%s5315_s12 + $0x4c0] sm:$0xff] }
 0x12e   : > { %v3660_v9 = vld [vmem:[%s5315_s12 + $0x6c0] sm:$0xff] }
 0x130   : > { %4141 = vmatmul.mubr.f32.gmra.mrb[56].mxu0 %v1301_v10  ;;  %4269 = vmatmul.mubr.f32.gmra.mrb[56].mxu1 %v3565_v11  ;;  %v3597_v10 = vld [vmem:[%s5315_s12 + $0x4c8] sm:$0xff] }
 0x131   : > { %4143 = vmatprep.mubr.f32.mxu0 %v1302_v12  ;;  %4271 = vmatprep.mubr.f32.mxu1 %v3566_v13  ;;  %v3661_v11 = vld [vmem:[%s5315_s12 + $0x6c8] sm:$0xff]  ;;  %v3598_v12 = vld [vmem:[%s5315_s12 + $0x4d0] sm:$0xff] }
 0x132   : > { %v3662_v13 = vld [vmem:[%s5315_s12 + $0x6d0] sm:$0xff] }
 0x134   : > { %4144 = vmatmul.mubr.f32.gmra.mrb[58].mxu0 %v1303_v14  ;;  %4272 = vmatmul.mubr.f32.gmra.mrb[58].mxu1 %v3567_v15  ;;  %v3599_v14 = vld [vmem:[%s5315_s12 + $0x4d8] sm:$0xff] }
 0x135   : > { %4146 = vmatprep.mubr.f32.mxu0 %v1304_v16  ;;  %4274 = vmatprep.mubr.f32.mxu1 %v3568_v17  ;;  %v3663_v15 = vld [vmem:[%s5315_s12 + $0x6d8] sm:$0xff]  ;;  %v3600_v16 = vld [vmem:[%s5315_s12 + $0x4e0] sm:$0xff] }
 0x136   : > { %v3664_v17 = vld [vmem:[%s5315_s12 + $0x6e0] sm:$0xff] }
 0x138   : > { %4147 = vmatmul.mubr.f32.gmra.mrb[60].mxu0 %v1305_v18  ;;  %4275 = vmatmul.mubr.f32.gmra.mrb[60].mxu1 %v3569_v19  ;;  %v3601_v18 = vld [vmem:[%s5315_s12 + $0x4e8] sm:$0xff] }
 0x139   : > { %4149 = vmatprep.mubr.f32.mxu0 %v1306_v20  ;;  %4277 = vmatprep.mubr.f32.mxu1 %v3570_v21  ;;  %v3665_v19 = vld [vmem:[%s5315_s12 + $0x6e8] sm:$0xff]  ;;  %v3602_v20 = vld [vmem:[%s5315_s12 + $0x4f0] sm:$0xff] }
 0x13a   : > { %v3666_v21 = vld [vmem:[%s5315_s12 + $0x6f0] sm:$0xff] }
 0x13c   : > { %4150 = vmatmul.mubr.f32.gmra.mrb[62].mxu0 %v1307_v22  ;;  %4278 = vmatmul.mubr.f32.gmra.mrb[62].mxu1 %v3571_v23  ;;  %v3603_v22 = vld [vmem:[%s5315_s12 + $0x4f8] sm:$0xff] }
 0x13d   : > { %4312 = vmatprep.mubr.f32.mxu0 %v3572_v24  ;;  %4440 = vmatprep.mubr.f32.mxu1 %v3636_v25  ;;  %v3667_v23 = vld [vmem:[%s5315_s12 + $0x6f8] sm:$0xff]  ;;  %v3604_v24 = vld [vmem:[%s5315_s12 + $0x500] sm:$0xff] }
 0x13e   : > { %v3668_v25 = vld [vmem:[%s5315_s12 + $0x700] sm:$0xff] }
 0x140   : > { %4313 = vmatmul.mubr.f32.vlgmr.msra.gmra.mrb[64].mxu0 %v3573_v26  ;;  %4441 = vmatmul.mubr.f32.vlgmr.msra.gmra.mrb[64].mxu1 %v3637_v27  ;;  %v3605_v26 = vld [vmem:[%s5315_s12 + $0x508] sm:$0xff] }
 0x141   : > { %4315 = vmatprep.mubr.f32.mxu0 %v3574_v28  ;;  %4443 = vmatprep.mubr.f32.mxu1 %v3638_v29  ;;  %v3669_v27 = vld [vmem:[%s5315_s12 + $0x708] sm:$0xff]  ;;  %v3606_v28 = vld [vmem:[%s5315_s12 + $0x510] sm:$0xff] }
 0x142   : > { %v3670_v29 = vld [vmem:[%s5315_s12 + $0x710] sm:$0xff] }
 0x144   : > { %4316 = vmatmul.mubr.f32.gmra.mrb[66].mxu0 %v3575_v30  ;;  %4444 = vmatmul.mubr.f32.gmra.mrb[66].mxu1 %v3639_v31  ;;  %v3607_v30 = vld [vmem:[%s5315_s12 + $0x518] sm:$0xff] }
 0x145   : > { %4318 = vmatprep.mubr.f32.mxu0 %v3576_v32  ;;  %4446 = vmatprep.mubr.f32.mxu1 %v3640_v33  ;;  %v3671_v31 = vld [vmem:[%s5315_s12 + $0x718] sm:$0xff]  ;;  %v3608_v32 = vld [vmem:[%s5315_s12 + $0x520] sm:$0xff] }
 0x146   : > { %v3672_v33 = vld [vmem:[%s5315_s12 + $0x720] sm:$0xff] }
 0x148   : > { %4319 = vmatmul.mubr.f32.gmra.mrb[68].mxu0 %v3577_v34  ;;  %4447 = vmatmul.mubr.f32.gmra.mrb[68].mxu1 %v3641_v35  ;;  %v3609_v34 = vld [vmem:[%s5315_s12 + $0x528] sm:$0xff] }
 0x149   : > { %4321 = vmatprep.mubr.f32.mxu0 %v3578_v36  ;;  %4449 = vmatprep.mubr.f32.mxu1 %v3642_v37  ;;  %v3673_v35 = vld [vmem:[%s5315_s12 + $0x728] sm:$0xff]  ;;  %v3610_v36 = vld [vmem:[%s5315_s12 + $0x530] sm:$0xff] }
 0x14a   : > { %v3674_v37 = vld [vmem:[%s5315_s12 + $0x730] sm:$0xff] }
 0x14c   : > { %4322 = vmatmul.mubr.f32.gmra.mrb[70].mxu0 %v3579_v38  ;;  %4450 = vmatmul.mubr.f32.gmra.mrb[70].mxu1 %v3643_v39  ;;  %v3611_v38 = vld [vmem:[%s5315_s12 + $0x538] sm:$0xff] }
 0x14d   : > { %4324 = vmatprep.mubr.f32.mxu0 %v3580_v40  ;;  %4452 = vmatprep.mubr.f32.mxu1 %v3644_v41  ;;  %v3675_v39 = vld [vmem:[%s5315_s12 + $0x738] sm:$0xff]  ;;  %v3612_v40 = vld [vmem:[%s5315_s12 + $0x540] sm:$0xff] }
 0x14e   : > { %v3676_v41 = vld [vmem:[%s5315_s12 + $0x740] sm:$0xff] }
 0x150   : > { %4325 = vmatmul.mubr.f32.gmra.mrb[72].mxu0 %v3581_v42  ;;  %4453 = vmatmul.mubr.f32.gmra.mrb[72].mxu1 %v3645_v43  ;;  %v3613_v42 = vld [vmem:[%s5315_s12 + $0x548] sm:$0xff] }
 0x151   : > { %4327 = vmatprep.mubr.f32.mxu0 %v3582_v44  ;;  %4455 = vmatprep.mubr.f32.mxu1 %v3646_v45  ;;  %v3677_v43 = vld [vmem:[%s5315_s12 + $0x748] sm:$0xff]  ;;  %v3614_v44 = vld [vmem:[%s5315_s12 + $0x550] sm:$0xff] }
 0x152   : > { %v3678_v45 = vld [vmem:[%s5315_s12 + $0x750] sm:$0xff] }
 0x154   : > { %4328 = vmatmul.mubr.f32.gmra.mrb[74].mxu0 %v3583_v46  ;;  %4456 = vmatmul.mubr.f32.gmra.mrb[74].mxu1 %v3647_v47  ;;  %v3615_v46 = vld [vmem:[%s5315_s12 + $0x558] sm:$0xff] }
 0x155   : > { %4330 = vmatprep.mubr.f32.mxu0 %v3584_v48  ;;  %4458 = vmatprep.mubr.f32.mxu1 %v3648_v49  ;;  %v3679_v47 = vld [vmem:[%s5315_s12 + $0x758] sm:$0xff]  ;;  %v3616_v48 = vld [vmem:[%s5315_s12 + $0x560] sm:$0xff] }
 0x156   : > { %v3680_v49 = vld [vmem:[%s5315_s12 + $0x760] sm:$0xff] }
 0x158   : > { %4331 = vmatmul.mubr.f32.gmra.mrb[76].mxu0 %v3585_v50  ;;  %4459 = vmatmul.mubr.f32.gmra.mrb[76].mxu1 %v3649_v51 }
 0x159   : > { %4333 = vmatprep.mubr.f32.mxu0 %v3586_v52  ;;  %4461 = vmatprep.mubr.f32.mxu1 %v3650_v53 }
 0x15c   : > { %4334 = vmatmul.mubr.f32.gmra.mrb[78].mxu0 %v3587_v54  ;;  %4462 = vmatmul.mubr.f32.gmra.mrb[78].mxu1 %v3651_v55 }
 0x15d   : > { %4336 = vmatprep.mubr.f32.mxu0 %v3588_v56  ;;  %4464 = vmatprep.mubr.f32.mxu1 %v3652_v57  ;;  %v3617_v56 = vld [vmem:[%s5315_s12 + $0x568] sm:$0xff] }
 0x15e   : > { %v3681_v57 = vld [vmem:[%s5315_s12 + $0x768] sm:$0xff] }
 0x160   : > { %4337 = vmatmul.mubr.f32.gmra.mrb[80].mxu0 %v3589_v58  ;;  %4465 = vmatmul.mubr.f32.gmra.mrb[80].mxu1 %v3653_v59  ;;  %v3618_v58 = vld [vmem:[%s5315_s12 + $0x570] sm:$0xff] }
 0x161   : > { %4339 = vmatprep.mubr.f32.mxu0 %v3590_v60  ;;  %4467 = vmatprep.mubr.f32.mxu1 %v3654_v61  ;;  %v3682_v59 = vld [vmem:[%s5315_s12 + $0x770] sm:$0xff] }
 0x164   : > { %4340 = vmatmul.mubr.f32.gmra.mrb[82].mxu0 %v3591_v62  ;;  %4468 = vmatmul.mubr.f32.gmra.mrb[82].mxu1 %v3655_v63 }
 0x165   : > { %4342 = vmatprep.mubr.f32.mxu0 %v3592_v0  ;;  %4470 = vmatprep.mubr.f32.mxu1 %v3656_v1 }
 0x168   : > { %4343 = vmatmul.mubr.f32.gmra.mrb[84].mxu0 %v3593_v2  ;;  %4471 = vmatmul.mubr.f32.gmra.mrb[84].mxu1 %v3657_v3  ;;  %v3619_v2 = vld [vmem:[%s5315_s12 + $0x578] sm:$0xff] }
 0x169   : > { %4345 = vmatprep.mubr.f32.mxu0 %v3594_v4  ;;  %4473 = vmatprep.mubr.f32.mxu1 %v3658_v5  ;;  %v3683_v3 = vld [vmem:[%s5315_s12 + $0x778] sm:$0xff]  ;;  %v3620_v4 = vld [vmem:[%s5315_s12 + $0x580] sm:$0xff] }
 0x16a   : > { %v3684_v5 = vld [vmem:[%s5315_s12 + $0x780] sm:$0xff] }
 0x16c   : > { %4346 = vmatmul.mubr.f32.gmra.mrb[86].mxu0 %v3595_v6  ;;  %4474 = vmatmul.mubr.f32.gmra.mrb[86].mxu1 %v3659_v7 }
 0x16d   : > { %4348 = vmatprep.mubr.f32.mxu0 %v3596_v8  ;;  %4476 = vmatprep.mubr.f32.mxu1 %v3660_v9 }
 0x170   : > { %4349 = vmatmul.mubr.f32.gmra.mrb[88].mxu0 %v3597_v10  ;;  %4477 = vmatmul.mubr.f32.gmra.mrb[88].mxu1 %v3661_v11 }
 0x171   : > { %4351 = vmatprep.mubr.f32.mxu0 %v3598_v12  ;;  %4479 = vmatprep.mubr.f32.mxu1 %v3662_v13  ;;  %v3621_v12 = vld [vmem:[%s5315_s12 + $0x588] sm:$0xff] }
 0x172   : > { %v3685_v13 = vld [vmem:[%s5315_s12 + $0x788] sm:$0xff] }
 0x174   : > { %4352 = vmatmul.mubr.f32.gmra.mrb[90].mxu0 %v3599_v14  ;;  %4480 = vmatmul.mubr.f32.gmra.mrb[90].mxu1 %v3663_v15  ;;  %v3622_v14 = vld [vmem:[%s5315_s12 + $0x590] sm:$0xff] }
 0x175   : > { %4354 = vmatprep.mubr.f32.mxu0 %v3600_v16  ;;  %4482 = vmatprep.mubr.f32.mxu1 %v3664_v17  ;;  %v3686_v15 = vld [vmem:[%s5315_s12 + $0x790] sm:$0xff] }
 0x178   : > { %4355 = vmatmul.mubr.f32.gmra.mrb[92].mxu0 %v3601_v18  ;;  %4483 = vmatmul.mubr.f32.gmra.mrb[92].mxu1 %v3665_v19 }
 0x179   : > { %4357 = vmatprep.mubr.f32.mxu0 %v3602_v20  ;;  %4485 = vmatprep.mubr.f32.mxu1 %v3666_v21 }
 0x17c   : > { %4358 = vmatmul.mubr.f32.gmra.mrb[94].mxu0 %v3603_v22  ;;  %4486 = vmatmul.mubr.f32.gmra.mrb[94].mxu1 %v3667_v23  ;;  %v3623_v22 = vld [vmem:[%s5315_s12 + $0x598] sm:$0xff] }
 0x17d   : > { %4360 = vmatprep.mubr.f32.mxu0 %v3604_v24  ;;  %4488 = vmatprep.mubr.f32.mxu1 %v3668_v25  ;;  %v3687_v23 = vld [vmem:[%s5315_s12 + $0x798] sm:$0xff]  ;;  %v3624_v24 = vld [vmem:[%s5315_s12 + $0x5a0] sm:$0xff] }
 0x17e   : > { %v3688_v25 = vld [vmem:[%s5315_s12 + $0x7a0] sm:$0xff] }
 0x180   : > { %4361 = vmatmul.mubr.f32.gmra.mrb[96].mxu0 %v3605_v26  ;;  %4489 = vmatmul.mubr.f32.gmra.mrb[96].mxu1 %v3669_v27 }
 0x181   : > { %4363 = vmatprep.mubr.f32.mxu0 %v3606_v28  ;;  %4491 = vmatprep.mubr.f32.mxu1 %v3670_v29 }
 0x184   : > { %4364 = vmatmul.mubr.f32.gmra.mrb[98].mxu0 %v3607_v30  ;;  %4492 = vmatmul.mubr.f32.gmra.mrb[98].mxu1 %v3671_v31 }
 0x185   : > { %4366 = vmatprep.mubr.f32.mxu0 %v3608_v32  ;;  %4494 = vmatprep.mubr.f32.mxu1 %v3672_v33  ;;  %v3625_v32 = vld [vmem:[%s5315_s12 + $0x5a8] sm:$0xff] }
 0x186   : > { %v3689_v33 = vld [vmem:[%s5315_s12 + $0x7a8] sm:$0xff] }
 0x188   : > { %4367 = vmatmul.mubr.f32.gmra.mrb[100].mxu0 %v3609_v34  ;;  %4495 = vmatmul.mubr.f32.gmra.mrb[100].mxu1 %v3673_v35  ;;  %v3626_v34 = vld [vmem:[%s5315_s12 + $0x5b0] sm:$0xff] }
 0x189   : > { %4369 = vmatprep.mubr.f32.mxu0 %v3610_v36  ;;  %4497 = vmatprep.mubr.f32.mxu1 %v3674_v37  ;;  %v3690_v35 = vld [vmem:[%s5315_s12 + $0x7b0] sm:$0xff] }
 0x18c   : > { %4370 = vmatmul.mubr.f32.gmra.mrb[102].mxu0 %v3611_v38  ;;  %4498 = vmatmul.mubr.f32.gmra.mrb[102].mxu1 %v3675_v39 }
 0x18d   : > { %4372 = vmatprep.mubr.f32.mxu0 %v3612_v40  ;;  %4500 = vmatprep.mubr.f32.mxu1 %v3676_v41 }
 0x190   : > { %4373 = vmatmul.mubr.f32.gmra.mrb[104].mxu0 %v3613_v42  ;;  %4501 = vmatmul.mubr.f32.gmra.mrb[104].mxu1 %v3677_v43  ;;  %v3627_v42 = vld [vmem:[%s5315_s12 + $0x5b8] sm:$0xff] }
 0x191   : > { %4375 = vmatprep.mubr.f32.mxu0 %v3614_v44  ;;  %4503 = vmatprep.mubr.f32.mxu1 %v3678_v45  ;;  %v3691_v43 = vld [vmem:[%s5315_s12 + $0x7b8] sm:$0xff]  ;;  %v3628_v44 = vld [vmem:[%s5315_s12 + $0x5c0] sm:$0xff] }
 0x192   : > { %v3692_v45 = vld [vmem:[%s5315_s12 + $0x7c0] sm:$0xff] }
 0x193   : > { %v5633_v50 = vpop.f32.mrb[0].mxu0  ;;  %v5635_v51 = vpop.f32.mrb[0].mxu1 }
 0x194   : > { %v5639_v53 = vpop.f32.mrb[1].mxu0  ;;  %v5641_v54 = vpop.f32.mrb[1].mxu1  ;;  %4376 = vmatmul.mubr.f32.gmra.mrb[106].mxu0 %v3615_v46  ;;  %4504 = vmatmul.mubr.f32.gmra.mrb[106].mxu1 %v3679_v47 }
 0x195   : > { %4378 = vmatprep.mubr.f32.mxu0 %v3616_v48  ;;  %4506 = vmatprep.mubr.f32.mxu1 %v3680_v49 }
 0x197   : > { %v5649_v60 = vpop.f32.mrb[2].mxu0  ;;  %v5651_v61 = vpop.f32.mrb[2].mxu1 }
 0x198   : > { %v5655_v63 = vpop.f32.mrb[3].mxu0  ;;  %v5657_v0 = vpop.f32.mrb[3].mxu1  ;;  %4379 = vmatmul.mubr.f32.gmra.mrb[108].mxu0 %v3617_v56  ;;  %4507 = vmatmul.mubr.f32.gmra.mrb[108].mxu1 %v3681_v57 }
 0x199   : > { %4381 = vmatprep.mubr.f32.mxu0 %v3618_v58  ;;  %4509 = vmatprep.mubr.f32.mxu1 %v3682_v59  ;;  %v3629_v58 = vld [vmem:[%s5315_s12 + $0x5c8] sm:$0xff] }
 0x19a   : > { %v3693_v59 = vld [vmem:[%s5315_s12 + $0x7c8] sm:$0xff] }
 0x19b   : > { %v5665_v6 = vpop.f32.mrb[4].mxu0  ;;  %v5667_v7 = vpop.f32.mrb[4].mxu1 }
 0x19c   : > { %v5671_v9 = vpop.f32.mrb[5].mxu0  ;;  %v5673_v10 = vpop.f32.mrb[5].mxu1  ;;  %4382 = vmatmul.mubr.f32.gmra.mrb[110].mxu0 %v3619_v2  ;;  %4510 = vmatmul.mubr.f32.gmra.mrb[110].mxu1 %v3683_v3  ;;  %v3630_v2 = vld [vmem:[%s5315_s12 + $0x5d0] sm:$0xff] }
 0x19d   : > { %4384 = vmatprep.mubr.f32.mxu0 %v3620_v4  ;;  %4512 = vmatprep.mubr.f32.mxu1 %v3684_v5  ;;  %v3694_v3 = vld [vmem:[%s5315_s12 + $0x7d0] sm:$0xff] }
 0x19f   : > { %v5681_v16 = vpop.f32.mrb[6].mxu0  ;;  %v5683_v17 = vpop.f32.mrb[6].mxu1 }
 0x1a0   : > { %v5687_v19 = vpop.f32.mrb[7].mxu0  ;;  %v5689_v20 = vpop.f32.mrb[7].mxu1  ;;  %4385 = vmatmul.mubr.f32.gmra.mrb[112].mxu0 %v3621_v12  ;;  %4513 = vmatmul.mubr.f32.gmra.mrb[112].mxu1 %v3685_v13 }
 0x1a1   : > { %4387 = vmatprep.mubr.f32.mxu0 %v3622_v14  ;;  %4515 = vmatprep.mubr.f32.mxu1 %v3686_v15 }
 0x1a3   : > { %v5697_v26 = vpop.f32.mrb[8].mxu0  ;;  %v5699_v27 = vpop.f32.mrb[8].mxu1 }
 0x1a4   : > { %v5703_v29 = vpop.f32.mrb[9].mxu0  ;;  %v5705_v30 = vpop.f32.mrb[9].mxu1  ;;  %4388 = vmatmul.mubr.f32.gmra.mrb[114].mxu0 %v3623_v22  ;;  %4516 = vmatmul.mubr.f32.gmra.mrb[114].mxu1 %v3687_v23  ;;  %v3631_v22 = vld [vmem:[%s5315_s12 + $0x5d8] sm:$0xff] }
 0x1a5   : > { %4390 = vmatprep.mubr.f32.mxu0 %v3624_v24  ;;  %4518 = vmatprep.mubr.f32.mxu1 %v3688_v25  ;;  %v3695_v23 = vld [vmem:[%s5315_s12 + $0x7d8] sm:$0xff]  ;;  %v3632_v24 = vld [vmem:[%s5315_s12 + $0x5e0] sm:$0xff] }
 0x1a6   : > { %v3696_v25 = vld [vmem:[%s5315_s12 + $0x7e0] sm:$0xff] }
 0x1a7   : > { %v5713_v36 = vpop.f32.mrb[10].mxu0  ;;  %v5715_v37 = vpop.f32.mrb[10].mxu1 }
 0x1a8   : > { %v5719_v39 = vpop.f32.mrb[11].mxu0  ;;  %v5721_v40 = vpop.f32.mrb[11].mxu1  ;;  %4391 = vmatmul.mubr.f32.gmra.mrb[116].mxu0 %v3625_v32  ;;  %4519 = vmatmul.mubr.f32.gmra.mrb[116].mxu1 %v3689_v33 }
 0x1a9   : > { %4393 = vmatprep.mubr.f32.mxu0 %v3626_v34  ;;  %4521 = vmatprep.mubr.f32.mxu1 %v3690_v35 }
 0x1ab   : > { %v5729_v46 = vpop.f32.mrb[12].mxu0  ;;  %v5731_v47 = vpop.f32.mrb[12].mxu1 }
 0x1ac   : > { %v5735_v49 = vpop.f32.mrb[13].mxu0  ;;  %v5737_v56 = vpop.f32.mrb[13].mxu1  ;;  %4394 = vmatmul.mubr.f32.gmra.mrb[118].mxu0 %v3627_v42  ;;  %4522 = vmatmul.mubr.f32.gmra.mrb[118].mxu1 %v3691_v43  ;;  %v3699_v43 = vld [vmem:[%s5315_s12 + $0x7f8] sm:$0xff] }
 0x1ad   : > { %4396 = vmatprep.mubr.f32.mxu0 %v3628_v44  ;;  %4524 = vmatprep.mubr.f32.mxu1 %v3692_v45  ;;  %v3633_v44 = vld [vmem:[%s5315_s12 + $0x5e8] sm:$0xff] }
 0x1ae   : > { %v3697_v45 = vld [vmem:[%s5315_s12 + $0x7e8] sm:$0xff] }
 0x1af   : > { %v5745_v4 = vpop.f32.mrb[14].mxu0  ;;  %v5747_v5 = vpop.f32.mrb[14].mxu1 }
 0x1b0   : > { %v5751_v13 = vpop.f32.mrb[15].mxu0  ;;  %v5753_v14 = vpop.f32.mrb[15].mxu1  ;;  %4397 = vmatmul.mubr.f32.gmra.mrb[120].mxu0 %v3629_v58  ;;  %4525 = vmatmul.mubr.f32.gmra.mrb[120].mxu1 %v3693_v59  ;;  %v3634_v58 = vld [vmem:[%s5315_s12 + $0x5f0] sm:$0xff] }
 0x1b1   : > { %4399 = vmatprep.mubr.f32.mxu0 %v3630_v2  ;;  %4527 = vmatprep.mubr.f32.mxu1 %v3694_v3  ;;  %v3698_v59 = vld [vmem:[%s5315_s12 + $0x7f0] sm:$0xff] }
 0x1b3   : > { %v5761_v32 = vpop.f32.mrb[16].mxu0  ;;  %v5763_v33 = vpop.f32.mrb[16].mxu1 }
 0x1b4   : > { %v5767_v35 = vpop.f32.mrb[17].mxu0  ;;  %v5769_v42 = vpop.f32.mrb[17].mxu1  ;;  %4400 = vmatmul.mubr.f32.gmra.mrb[122].mxu0 %v3631_v22  ;;  %4528 = vmatmul.mubr.f32.gmra.mrb[122].mxu1 %v3695_v23 }
 0x1b5   : > { %4402 = vmatprep.mubr.f32.mxu0 %v3632_v24  ;;  %4530 = vmatprep.mubr.f32.mxu1 %v3696_v25  ;;  %v3635_v25 = vld [vmem:[%s5315_s12 + $0x5f8] sm:$0xff]  ;;  %s3507_s12 = sshll.u32 %s6767_s18, 3 }
 0x1b6   : > { %s6075_s22 = scalar_lea.vmem %s6464_s3, %s3507_s12 }
 0x1b7   : > { %v5777_v2 = vpop.f32.mrb[18].mxu0  ;;  %v5779_v3 = vpop.f32.mrb[18].mxu1 }
 0x1b8   : > { %v5783_v22 = vpop.f32.mrb[19].mxu0  ;;  %v5785_v23 = vpop.f32.mrb[19].mxu1  ;;  %4403 = vmatmul.mubr.f32.gmra.mrb[124].mxu0 %v3633_v44  ;;  %4531 = vmatmul.mubr.f32.gmra.mrb[124].mxu1 %v3697_v45 }
 0x1b9   : > { %4405 = vmatprep.mubr.f32.mxu0 %v3634_v58  ;;  %4533 = vmatprep.mubr.f32.mxu1 %v3698_v59  ;;  %v6621_v59 = vmax.f32 %v5633_v50, %v5635_v51  ;;  %v6623_v50 = vmax.f32 %v5649_v60, %v5651_v61 }
 0x1bb   : > { %v5791_v15 = vpop.f32.mrb[20].mxu0  ;;  %v5793_v12 = vpop.f32.mrb[20].mxu1 }
 0x1bc   : > { %v5797_v57 = vpop.f32.mrb[21].mxu0  ;;  %v5799_v48 = vpop.f32.mrb[21].mxu1  ;;  %4406 = vmatmul.mubr.f32.gmra.mrb[126].mxu0 %v3635_v25  ;;  %4534 = vmatmul.mubr.f32.gmra.mrb[126].mxu1 %v3699_v43 }
 0x1bf   : > { %v5803_v45 = vpop.f32.mrb[22].mxu0  ;;  %v5805_v58 = vpop.f32.mrb[22].mxu1 }
 0x1c0   : > { %v5809_v24 = vpop.f32.mrb[23].mxu0  ;;  %v5811_v41 = vpop.f32.mrb[23].mxu1 }
 0x1c3   : > { %v5815_v38 = vpop.f32.mrb[24].mxu0  ;;  %v5817_v43 = vpop.f32.mrb[24].mxu1 }
 0x1c4   : > { %v5821_v44 = vpop.f32.mrb[25].mxu0  ;;  %v5823_v31 = vpop.f32.mrb[25].mxu1 }
 0x1c5   : > { %6543 = vst [vmem:[#allocation3_spill] sm:$0xff] %v5821_v44  ;;  %6544 = vst [vmem:[#allocation4_spill] sm:$0xff] %v5823_v31  ;;  %v6622_v31 = vmax.f32 %v5639_v53, %v5641_v54  ;;  %v6624_v54 = vmax.f32 %v5655_v63, %v5657_v0  ;;  %v6626_v63 = vmax.f32 %v5671_v9, %v5673_v10 }
 0x1c6   : > { %v6628_v10 = vmax.f32 %v5687_v19, %v5689_v20  ;;  %v6630_v20 = vmax.f32 %v5703_v29, %v5705_v30  ;;  %v6632_v30 = vmax.f32 %v5719_v39, %v5721_v40  ;;  %v6634_v40 = vmax.f32 %v5735_v49, %v5737_v56 }
 0x1c7   : > { %v5827_v28 = vpop.f32.mrb[26].mxu0  ;;  %v5829_v21 = vpop.f32.mrb[26].mxu1  ;;  %v6636_v56 = vmax.f32 %v5751_v13, %v5753_v14  ;;  %v6638_v14 = vmax.f32 %v5767_v35, %v5769_v42  ;;  %v6640_v42 = vmax.f32 %v5783_v22, %v5785_v23  ;;  %v6642_v23 = vmax.f32 %v5797_v57, %v5799_v48 }
 0x1c8   : > { %6545 = vst [vmem:[#allocation5_spill] sm:$0xff] %v5827_v28  ;;  %6546 = vst [vmem:[#allocation6_spill] sm:$0xff] %v5829_v21  ;;  %v5833_v18 = vpop.f32.mrb[27].mxu0  ;;  %v5835_v11 = vpop.f32.mrb[27].mxu1  ;;  %v6644_v57 = vmax.f32 %v5809_v24, %v5811_v41 }
 0x1c9   : > { %6547 = vst [vmem:[#allocation7_spill] sm:$0xff] %v5833_v18  ;;  %6548 = vst [vmem:[#allocation8_spill] sm:$0xff] %v5835_v11 }
 0x1cb   : > { %v5839_v8 = vpop.f32.mrb[28].mxu0  ;;  %v5841_v1 = vpop.f32.mrb[28].mxu1 }
 0x1cc   : > { %6549 = vst [vmem:[#allocation9_spill] sm:$0xff] %v5839_v8  ;;  %6550 = vst [vmem:[#allocation10_spill] sm:$0xff] %v5841_v1  ;;  %v5845_v62 = vpop.f32.mrb[29].mxu0  ;;  %v5847_v55 = vpop.f32.mrb[29].mxu1  ;;  %v6646_v24 = vld [vmem:[#allocation3_spill] sm:$0xff] }
 0x1cd   : > { %6551 = vst [vmem:[#allocation11_spill] sm:$0xff] %v5845_v62  ;;  %6552 = vst [vmem:[#allocation12_spill] sm:$0xff] %v5847_v55 }
 0x1cf   : > { %v5851_v52 = vpop.f32.mrb[30].mxu0  ;;  %v5853_v21 = vpop.f32.mrb[30].mxu1 }
 0x1d0   : > { %6553 = vst [vmem:[#allocation13_spill] sm:$0xff] %v5851_v52  ;;  %6554 = vst [vmem:[#allocation14_spill] sm:$0xff] %v5853_v21  ;;  %v5857_v11 = vpop.f32.mrb[31].mxu0  ;;  %v5859_v18 = vpop.f32.mrb[31].mxu1 }
 0x1d1   : > { %6555 = vst [vmem:[#allocation15_spill] sm:$0xff] %v5857_v11  ;;  %6556 = vst [vmem:[#allocation16_spill] sm:$0xff] %v5859_v18 }
 0x1d3   : > { %v5863_v1 = vpop.f32.mrb[32].mxu0  ;;  %v5865_v8 = vpop.f32.mrb[32].mxu1 }
 0x1d4   : > { %6557 = vst [vmem:[#allocation17_spill] sm:$0xff] %v5863_v1  ;;  %6558 = vst [vmem:[#allocation18_spill] sm:$0xff] %v5865_v8  ;;  %v5869_v55 = vpop.f32.mrb[33].mxu0  ;;  %v5871_v62 = vpop.f32.mrb[33].mxu1 }
 0x1d5   : > { %6559 = vst [vmem:[#allocation19_spill] sm:$0xff] %v5869_v55  ;;  %6560 = vst [vmem:[#allocation20_spill] sm:$0xff] %v5871_v62 }
 0x1d7   : > { %v5875_v21 = vpop.f32.mrb[34].mxu0  ;;  %v5877_v52 = vpop.f32.mrb[34].mxu1 }
 0x1d8   : > { %6561 = vst [vmem:[#allocation21_spill] sm:$0xff] %v5875_v21  ;;  %6562 = vst [vmem:[#allocation22_spill] sm:$0xff] %v5877_v52  ;;  %v5881_v18 = vpop.f32.mrb[35].mxu0  ;;  %v5883_v11 = vpop.f32.mrb[35].mxu1 }
 0x1d9   : > { %6563 = vst [vmem:[#allocation23_spill] sm:$0xff] %v5881_v18  ;;  %6564 = vst [vmem:[#allocation24_spill] sm:$0xff] %v5883_v11 }
 0x1db   : > { %v5887_v8 = vpop.f32.mrb[36].mxu0  ;;  %v5889_v1 = vpop.f32.mrb[36].mxu1 }
 0x1dc   : > { %6565 = vst [vmem:[#allocation25_spill] sm:$0xff] %v5887_v8  ;;  %6566 = vst [vmem:[#allocation26_spill] sm:$0xff] %v5889_v1  ;;  %v5893_v62 = vpop.f32.mrb[37].mxu0  ;;  %v5895_v55 = vpop.f32.mrb[37].mxu1 }
 0x1dd   : > { %6567 = vst [vmem:[#allocation27_spill] sm:$0xff] %v5893_v62  ;;  %6568 = vst [vmem:[#allocation28_spill] sm:$0xff] %v5895_v55 }
 0x1df   : > { %v5899_v52 = vpop.f32.mrb[38].mxu0  ;;  %v5901_v21 = vpop.f32.mrb[38].mxu1 }
 0x1e0   : > { %6569 = vst [vmem:[#allocation29_spill] sm:$0xff] %v5899_v52  ;;  %6570 = vst [vmem:[#allocation30_spill] sm:$0xff] %v5901_v21  ;;  %v5905_v11 = vpop.f32.mrb[39].mxu0  ;;  %v5907_v18 = vpop.f32.mrb[39].mxu1 }
 0x1e1   : > { %6571 = vst [vmem:[#allocation31_spill] sm:$0xff] %v5905_v11  ;;  %6572 = vst [vmem:[#allocation32_spill] sm:$0xff] %v5907_v18 }
 0x1e3   : > { %v5911_v1 = vpop.f32.mrb[40].mxu0  ;;  %v5913_v8 = vpop.f32.mrb[40].mxu1 }
 0x1e4   : > { %6573 = vst [vmem:[#allocation33_spill] sm:$0xff] %v5911_v1  ;;  %6574 = vst [vmem:[#allocation34_spill] sm:$0xff] %v5913_v8  ;;  %v5917_v55 = vpop.f32.mrb[41].mxu0  ;;  %v5919_v62 = vpop.f32.mrb[41].mxu1 }
 0x1e5   : > { %6575 = vst [vmem:[#allocation35_spill] sm:$0xff] %v5917_v55  ;;  %6576 = vst [vmem:[#allocation36_spill] sm:$0xff] %v5919_v62 }
 0x1e7   : > { %v5923_v21 = vpop.f32.mrb[42].mxu0  ;;  %v5925_v52 = vpop.f32.mrb[42].mxu1 }
 0x1e8   : > { %6577 = vst [vmem:[#allocation37_spill] sm:$0xff] %v5923_v21  ;;  %6578 = vst [vmem:[#allocation38_spill] sm:$0xff] %v5925_v52  ;;  %v5929_v18 = vpop.f32.mrb[43].mxu0  ;;  %v5931_v11 = vpop.f32.mrb[43].mxu1 }
 0x1e9   : > { %6579 = vst [vmem:[#allocation39_spill] sm:$0xff] %v5929_v18  ;;  %6580 = vst [vmem:[#allocation40_spill] sm:$0xff] %v5931_v11 }
 0x1eb   : > { %v5935_v8 = vpop.f32.mrb[44].mxu0  ;;  %v5937_v1 = vpop.f32.mrb[44].mxu1 }
 0x1ec   : > { %6581 = vst [vmem:[#allocation41_spill] sm:$0xff] %v5935_v8  ;;  %6582 = vst [vmem:[#allocation42_spill] sm:$0xff] %v5937_v1  ;;  %v5941_v62 = vpop.f32.mrb[45].mxu0  ;;  %v5943_v55 = vpop.f32.mrb[45].mxu1 }
 0x1ed   : > { %6583 = vst [vmem:[#allocation43_spill] sm:$0xff] %v5941_v62  ;;  %6584 = vst [vmem:[#allocation44_spill] sm:$0xff] %v5943_v55 }
 0x1ef   : > { %v5947_v52 = vpop.f32.mrb[46].mxu0  ;;  %v5949_v21 = vpop.f32.mrb[46].mxu1 }
 0x1f0   : > { %6585 = vst [vmem:[#allocation45_spill] sm:$0xff] %v5947_v52  ;;  %6586 = vst [vmem:[#allocation46_spill] sm:$0xff] %v5949_v21  ;;  %v5953_v11 = vpop.f32.mrb[47].mxu0  ;;  %v5955_v18 = vpop.f32.mrb[47].mxu1 }
 0x1f1   : > { %6587 = vst [vmem:[#allocation47_spill] sm:$0xff] %v5953_v11  ;;  %6588 = vst [vmem:[#allocation48_spill] sm:$0xff] %v5955_v18 }
 0x1f3   : > { %v5959_v1 = vpop.f32.mrb[48].mxu0  ;;  %v5961_v8 = vpop.f32.mrb[48].mxu1 }
 0x1f4   : > { %6589 = vst [vmem:[#allocation49_spill] sm:$0xff] %v5959_v1  ;;  %6590 = vst [vmem:[#allocation50_spill] sm:$0xff] %v5961_v8  ;;  %v5965_v55 = vpop.f32.mrb[49].mxu0  ;;  %v5967_v62 = vpop.f32.mrb[49].mxu1 }
 0x1f5   : > { %6591 = vst [vmem:[#allocation51_spill] sm:$0xff] %v5965_v55  ;;  %6592 = vst [vmem:[#allocation52_spill] sm:$0xff] %v5967_v62 }
 0x1f7   : > { %v5971_v21 = vpop.f32.mrb[50].mxu0  ;;  %v5973_v52 = vpop.f32.mrb[50].mxu1 }
 0x1f8   : > { %6593 = vst [vmem:[#allocation53_spill] sm:$0xff] %v5971_v21  ;;  %6594 = vst [vmem:[#allocation54_spill] sm:$0xff] %v5973_v52  ;;  %v5977_v18 = vpop.f32.mrb[51].mxu0  ;;  %v5979_v11 = vpop.f32.mrb[51].mxu1 }
 0x1f9   : > { %6595 = vst [vmem:[#allocation55_spill] sm:$0xff] %v5977_v18  ;;  %6596 = vst [vmem:[#allocation56_spill] sm:$0xff] %v5979_v11 }
 0x1fb   : > { %v5983_v8 = vpop.f32.mrb[52].mxu0  ;;  %v5985_v1 = vpop.f32.mrb[52].mxu1 }
 0x1fc   : > { %6597 = vst [vmem:[#allocation57_spill] sm:$0xff] %v5983_v8  ;;  %6598 = vst [vmem:[#allocation58_spill] sm:$0xff] %v5985_v1  ;;  %v5989_v62 = vpop.f32.mrb[53].mxu0  ;;  %v5991_v55 = vpop.f32.mrb[53].mxu1 }
 0x1fd   : > { %6599 = vst [vmem:[#allocation59_spill] sm:$0xff] %v5989_v62  ;;  %6600 = vst [vmem:[#allocation60_spill] sm:$0xff] %v5991_v55 }
 0x1ff   : > { %v5995_v52 = vpop.f32.mrb[54].mxu0  ;;  %v5997_v21 = vpop.f32.mrb[54].mxu1 }
 0x200   : > { %6601 = vst [vmem:[#allocation61_spill] sm:$0xff] %v5995_v52  ;;  %6602 = vst [vmem:[#allocation62_spill] sm:$0xff] %v5997_v21  ;;  %v6001_v11 = vpop.f32.mrb[55].mxu0  ;;  %v6003_v18 = vpop.f32.mrb[55].mxu1 }
 0x201   : > { %6603 = vst [vmem:[#allocation63_spill] sm:$0xff] %v6001_v11  ;;  %6604 = vst [vmem:[#allocation64_spill] sm:$0xff] %v6003_v18 }
 0x203   : > { %v6007_v1 = vpop.f32.mrb[56].mxu0  ;;  %v6009_v8 = vpop.f32.mrb[56].mxu1 }
 0x204   : > { %6605 = vst [vmem:[#allocation65_spill] sm:$0xff] %v6007_v1  ;;  %6606 = vst [vmem:[#allocation66_spill] sm:$0xff] %v6009_v8  ;;  %v6013_v55 = vpop.f32.mrb[57].mxu0  ;;  %v6015_v62 = vpop.f32.mrb[57].mxu1 }
 0x205   : > { %6607 = vst [vmem:[#allocation67_spill] sm:$0xff] %v6013_v55  ;;  %6608 = vst [vmem:[#allocation68_spill] sm:$0xff] %v6015_v62 }
 0x207   : > { %v6019_v21 = vpop.f32.mrb[58].mxu0  ;;  %v6021_v52 = vpop.f32.mrb[58].mxu1 }
 0x208   : > { %6609 = vst [vmem:[#allocation69_spill] sm:$0xff] %v6019_v21  ;;  %6610 = vst [vmem:[#allocation70_spill] sm:$0xff] %v6021_v52  ;;  %v6025_v18 = vpop.f32.mrb[59].mxu0  ;;  %v6027_v11 = vpop.f32.mrb[59].mxu1 }
 0x209   : > { %6611 = vst [vmem:[#allocation71_spill] sm:$0xff] %v6025_v18  ;;  %6612 = vst [vmem:[#allocation72_spill] sm:$0xff] %v6027_v11 }
 0x20b   : > { %v6031_v8 = vpop.f32.mrb[60].mxu0  ;;  %v6033_v1 = vpop.f32.mrb[60].mxu1 }
 0x20c   : > { %6613 = vst [vmem:[#allocation73_spill] sm:$0xff] %v6031_v8  ;;  %6614 = vst [vmem:[#allocation74_spill] sm:$0xff] %v6033_v1  ;;  %v6039_v62 = vpop.f32.mrb[61].mxu0  ;;  %v6041_v55 = vpop.f32.mrb[61].mxu1 }
 0x20d   : > { %6615 = vst [vmem:[#allocation75_spill] sm:$0xff] %v6039_v62  ;;  %6616 = vst [vmem:[#allocation76_spill] sm:$0xff] %v6041_v55 }
 0x20f   : > { %v6045_v52 = vpop.f32.mrb[62].mxu0  ;;  %v6047_v34 = vpop.f32.mrb[62].mxu1 }
 0x210   : > { %6617 = vst [vmem:[#allocation77_spill] sm:$0xff] %v6045_v52  ;;  %6618 = vst [vmem:[#allocation78_spill] sm:$0xff] %v6047_v34  ;;  %v6051_v18 = vpop.f32.mrb[63].mxu0  ;;  %v6053_v21 = vpop.f32.mrb[63].mxu1  ;;  %v6066_v34 = vld [vmem:[%s6463_s2] ss:$0 sm:$0xff] }
 0x211   : > { %6619 = vst [vmem:[#allocation79_spill] sm:$0xff] %v6051_v18  ;;  %6620 = vst [vmem:[#allocation80_spill] sm:$0xff] %v6053_v21 }
 0x213   : > { %v4314_v1 = vpop.f32.mrb[64].mxu0  ;;  %v4442_v8 = vpop.f32.mrb[64].mxu1 }
 0x214   : > { %v2658_v55 = vmax.f32 %v6621_v59, %v4314_v1  ;;  %v2338_v62 = vpop.f32.mrb[65].mxu0  ;;  %v2852_v28 = vpop.f32.mrb[65].mxu1 }
 0x215   : > { %v2657_v11 = vmax.f32 %v6622_v31, %v2338_v62  ;;  %v6625_v31 = vmax.f32 %v5665_v6, %v5667_v7  ;;  %v6627_v7 = vmax.f32 %v5681_v16, %v5683_v17  ;;  %v6629_v17 = vmax.f32 %v5697_v26, %v5699_v27 }
 0x216   : > { %v3172_v25 = vmax.f32 %v2658_v55, %v4442_v8  ;;  %v6631_v27 = vmax.f32 %v5713_v36, %v5715_v37  ;;  %v6633_v37 = vmax.f32 %v5729_v46, %v5731_v47  ;;  %v6635_v47 = vmax.f32 %v5745_v4, %v5747_v5 }
 0x217   : > { %v3171_v21 = vmax.f32 %v2657_v11, %v2852_v28  ;;  %v4317_v18 = vpop.f32.mrb[66].mxu0  ;;  %v4445_v52 = vpop.f32.mrb[66].mxu1  ;;  %v6637_v5 = vmax.f32 %v5761_v32, %v5763_v33  ;;  %v6639_v33 = vmax.f32 %v5777_v2, %v5779_v3  ;;  %v6641_v3 = vmax.f32 %v5791_v15, %v5793_v12 }
 0x218   : > { %v3243_v44 = vadd.f32 %v6066_v34, %v3172_v25  ;;  %v2660_v51 = vmax.f32 %v6623_v50, %v4317_v18  ;;  %v2348_v1 = vpop.f32.mrb[67].mxu0  ;;  %v2862_v59 = vpop.f32.mrb[67].mxu1  ;;  %v6643_v15 = vmax.f32 %v5803_v45, %v5805_v58  ;;  %v6645_v58 = vmax.f32 %v5815_v38, %v5817_v43  ;;  %v6649_v43 = vld [vmem:[#allocation5_spill] sm:$0xff] }
 0x219   : > { %v3242_v53 = vadd.f32 %v6066_v34, %v3171_v21  ;;  %v2659_v55 = vmax.f32 %v6624_v54, %v2348_v1 }
 0x21a   : > { %v3307_v62 = vmax.f32 %v3243_v44, 0.0  ;;  %v3174_v8 = vmax.f32 %v2660_v51, %v4445_v52 }
 0x21b   : > { %v3306_v60 = vmax.f32 %v3242_v53, 0.0  ;;  %v3173_v61 = vmax.f32 %v2659_v55, %v2862_v59  ;;  %v4320_v11 = vpop.f32.mrb[68].mxu0  ;;  %v4448_v18 = vpop.f32.mrb[68].mxu1 }
 0x21c   : > { %3372 = vst.msk [vmem:[%s6075_s22 + $0x8] sm:$0xff] %vm3370_vm0, %v3307_v62  ;;  %v3245_v28 = vadd.f32 %v6066_v34, %v3174_v8  ;;  %v2662_v25 = vmax.f32 %v6625_v31, %v4320_v11  ;;  %v2358_v21 = vpop.f32.mrb[69].mxu0  ;;  %v2872_v50 = vpop.f32.mrb[69].mxu1 }
 0x21d   : > { %3371 = vst.msk [vmem:[%s6075_s22] sm:$0xff] %vm3370_vm0, %v3306_v60  ;;  %v3244_v52 = vadd.f32 %v6066_v34, %v3173_v61  ;;  %v2661_v0 = vmax.f32 %v6626_v63, %v2358_v21 }
 0x21e   : > { %v3309_v44 = vmax.f32 %v3245_v28, 0.0  ;;  %v3176_v51 = vmax.f32 %v2662_v25, %v4448_v18 }
 0x21f   : > { %v3308_v1 = vmax.f32 %v3244_v52, 0.0  ;;  %v3175_v59 = vmax.f32 %v2661_v0, %v2872_v50  ;;  %v4323_v53 = vpop.f32.mrb[70].mxu0  ;;  %v4451_v54 = vpop.f32.mrb[70].mxu1 }
 0x220   : > { %3374 = vst.msk [vmem:[%s6075_s22 + $0x18] sm:$0xff] %vm3370_vm0, %v3309_v44  ;;  %v3247_v6 = vadd.f32 %v6066_v34, %v3176_v51  ;;  %v2664_v55 = vmax.f32 %v6627_v7, %v4323_v53  ;;  %v2368_v62 = vpop.f32.mrb[71].mxu0  ;;  %v2882_v8 = vpop.f32.mrb[71].mxu1 }
 0x221   : > { %3373 = vst.msk [vmem:[%s6075_s22 + $0x10] sm:$0xff] %vm3370_vm0, %v3308_v1  ;;  %v3246_v9 = vadd.f32 %v6066_v34, %v3175_v59  ;;  %v2663_v60 = vmax.f32 %v6628_v10, %v2368_v62 }
 0x222   : > { %v3311_v61 = vmax.f32 %v3247_v6, 0.0  ;;  %v3178_v11 = vmax.f32 %v2664_v55, %v4451_v54 }
 0x223   : > { %v3310_v18 = vmax.f32 %v3246_v9, 0.0  ;;  %v3177_v28 = vmax.f32 %v2663_v60, %v2882_v8  ;;  %v4326_v31 = vpop.f32.mrb[72].mxu0  ;;  %v4454_v25 = vpop.f32.mrb[72].mxu1 }
 0x224   : > { %3376 = vst.msk [vmem:[%s6075_s22 + $0x28] sm:$0xff] %vm3370_vm0, %v3311_v61  ;;  %v3249_v16 = vadd.f32 %v6066_v34, %v3178_v11  ;;  %v2666_v21 = vmax.f32 %v6629_v17, %v4326_v31  ;;  %v2378_v50 = vpop.f32.mrb[73].mxu0  ;;  %v2892_v52 = vpop.f32.mrb[73].mxu1 }
 0x225   : > { %3375 = vst.msk [vmem:[%s6075_s22 + $0x20] sm:$0xff] %vm3370_vm0, %v3310_v18  ;;  %v3248_v19 = vadd.f32 %v6066_v34, %v3177_v28  ;;  %v2665_v63 = vmax.f32 %v6630_v20, %v2378_v50 }
 0x226   : > { %v3313_v0 = vmax.f32 %v3249_v16, 0.0  ;;  %v3180_v44 = vmax.f32 %v2666_v21, %v4454_v25 }
 0x227   : > { %v3312_v51 = vmax.f32 %v3248_v19, 0.0  ;;  %v3179_v1 = vmax.f32 %v2665_v63, %v2892_v52  ;;  %v4329_v59 = vpop.f32.mrb[74].mxu0  ;;  %v4457_v53 = vpop.f32.mrb[74].mxu1 }
 0x228   : > { %3378 = vst.msk [vmem:[%s6075_s22 + $0x38] sm:$0xff] %vm3370_vm0, %v3313_v0  ;;  %v3251_v26 = vadd.f32 %v6066_v34, %v3180_v44  ;;  %v2668_v54 = vmax.f32 %v6631_v27, %v4329_v59  ;;  %v2388_v6 = vpop.f32.mrb[75].mxu0  ;;  %v2902_v7 = vpop.f32.mrb[75].mxu1 }
 0x229   : > { %3377 = vst.msk [vmem:[%s6075_s22 + $0x30] sm:$0xff] %vm3370_vm0, %v3312_v51  ;;  %v3250_v29 = vadd.f32 %v6066_v34, %v3179_v1  ;;  %v2667_v55 = vmax.f32 %v6632_v30, %v2388_v6 }
 0x22a   : > { %v3315_v62 = vmax.f32 %v3251_v26, 0.0  ;;  %v3182_v8 = vmax.f32 %v2668_v54, %v4457_v53 }
 0x22b   : > { %v3314_v9 = vmax.f32 %v3250_v29, 0.0  ;;  %v3181_v10 = vmax.f32 %v2667_v55, %v2902_v7  ;;  %v4332_v60 = vpop.f32.mrb[76].mxu0  ;;  %v4460_v61 = vpop.f32.mrb[76].mxu1 }
 0x22c   : > { %3380 = vst.msk [vmem:[%s6075_s22 + $0x48] sm:$0xff] %vm3370_vm0, %v3315_v62  ;;  %v3253_v36 = vadd.f32 %v6066_v34, %v3182_v8  ;;  %v2670_v11 = vmax.f32 %v6633_v37, %v4332_v60  ;;  %v2398_v18 = vpop.f32.mrb[77].mxu0  ;;  %v2912_v28 = vpop.f32.mrb[77].mxu1 }
 0x22d   : > { %3379 = vst.msk [vmem:[%s6075_s22 + $0x40] sm:$0xff] %vm3370_vm0, %v3314_v9  ;;  %v3252_v39 = vadd.f32 %v6066_v34, %v3181_v10  ;;  %v2669_v31 = vmax.f32 %v6634_v40, %v2398_v18 }
 0x22e   : > { %v3317_v25 = vmax.f32 %v3253_v36, 0.0  ;;  %v3184_v16 = vmax.f32 %v2670_v11, %v4460_v61 }
 0x22f   : > { %v3316_v17 = vmax.f32 %v3252_v39, 0.0  ;;  %v3183_v21 = vmax.f32 %v2669_v31, %v2912_v28  ;;  %v4335_v50 = vpop.f32.mrb[78].mxu0  ;;  %v4463_v52 = vpop.f32.mrb[78].mxu1 }
 0x230   : > { %3382 = vst.msk [vmem:[%s6075_s22 + $0x58] sm:$0xff] %vm3370_vm0, %v3317_v25  ;;  %v3255_v46 = vadd.f32 %v6066_v34, %v3184_v16  ;;  %v2672_v19 = vmax.f32 %v6635_v47, %v4335_v50  ;;  %v2408_v20 = vpop.f32.mrb[79].mxu0  ;;  %v2922_v63 = vpop.f32.mrb[79].mxu1 }
 0x231   : > { %3381 = vst.msk [vmem:[%s6075_s22 + $0x50] sm:$0xff] %vm3370_vm0, %v3316_v17  ;;  %v3254_v49 = vadd.f32 %v6066_v34, %v3183_v21  ;;  %v2671_v0 = vmax.f32 %v6636_v56, %v2408_v20 }
 0x232   : > { %v3319_v44 = vmax.f32 %v3255_v46, 0.0  ;;  %v3186_v51 = vmax.f32 %v2672_v19, %v4463_v52 }
 0x233   : > { %v3318_v1 = vmax.f32 %v3254_v49, 0.0  ;;  %v3185_v59 = vmax.f32 %v2671_v0, %v2922_v63  ;;  %v4338_v53 = vpop.f32.mrb[80].mxu0  ;;  %v4466_v26 = vpop.f32.mrb[80].mxu1 }
 0x234   : > { %3384 = vst.msk [vmem:[%s6075_s22 + $0x68] sm:$0xff] %vm3370_vm0, %v3319_v44  ;;  %v3257_v4 = vadd.f32 %v6066_v34, %v3186_v51  ;;  %v2674_v27 = vmax.f32 %v6637_v5, %v4338_v53  ;;  %v2418_v54 = vpop.f32.mrb[81].mxu0  ;;  %v2932_v6 = vpop.f32.mrb[81].mxu1 }
 0x235   : > { %3383 = vst.msk [vmem:[%s6075_s22 + $0x60] sm:$0xff] %vm3370_vm0, %v3318_v1  ;;  %v3256_v13 = vadd.f32 %v6066_v34, %v3185_v59  ;;  %v2673_v7 = vmax.f32 %v6638_v14, %v2418_v54 }
 0x236   : > { %v3321_v29 = vmax.f32 %v3257_v4, 0.0  ;;  %v3188_v30 = vmax.f32 %v2674_v27, %v4466_v26  ;;  %v6647_v27 = vld [vmem:[#allocation4_spill] sm:$0xff] }
 0x237   : > { %v3320_v55 = vmax.f32 %v3256_v13, 0.0  ;;  %v3187_v62 = vmax.f32 %v2673_v7, %v2932_v6  ;;  %v4341_v8 = vpop.f32.mrb[82].mxu0  ;;  %v4469_v9 = vpop.f32.mrb[82].mxu1  ;;  %v6648_v54 = vmax.f32 %v6646_v24, %v6647_v27 }
 0x238   : > { %3386 = vst.msk [vmem:[%s6075_s22 + $0x78] sm:$0xff] %vm3370_vm0, %v3321_v29  ;;  %v3259_v32 = vadd.f32 %v6066_v34, %v3188_v30  ;;  %v2676_v10 = vmax.f32 %v6639_v33, %v4341_v8  ;;  %v2428_v60 = vpop.f32.mrb[83].mxu0  ;;  %v2942_v61 = vpop.f32.mrb[83].mxu1 }
 0x239   : > { %3385 = vst.msk [vmem:[%s6075_s22 + $0x70] sm:$0xff] %vm3370_vm0, %v3320_v55  ;;  %v3258_v35 = vadd.f32 %v6066_v34, %v3187_v62  ;;  %v2675_v36 = vmax.f32 %v6640_v42, %v2428_v60  ;;  %v6650_v62 = vld [vmem:[#allocation6_spill] sm:$0xff]  ;;  %v6652_v60 = vld [vmem:[#allocation7_spill] sm:$0xff] }
 0x23a   : > { %v3323_v37 = vmax.f32 %v3259_v32, 0.0  ;;  %v3190_v11 = vmax.f32 %v2676_v10, %v4469_v9  ;;  %v6651_v8 = vmax.f32 %v6649_v43, %v6650_v62 }
 0x23b   : > { %v3322_v18 = vmax.f32 %v3258_v35, 0.0  ;;  %v3189_v28 = vmax.f32 %v2675_v36, %v2942_v61  ;;  %v4344_v39 = vpop.f32.mrb[84].mxu0  ;;  %v4472_v40 = vpop.f32.mrb[84].mxu1  ;;  %v6653_v61 = vld [vmem:[#allocation8_spill] sm:$0xff] }
 0x23c   : > { %3388 = vst.msk [vmem:[%s6075_s22 + $0x88] sm:$0xff] %vm3370_vm0, %v3323_v37  ;;  %v3261_v2 = vadd.f32 %v6066_v34, %v3190_v11  ;;  %v2678_v31 = vmax.f32 %v6641_v3, %v4344_v39  ;;  %v2438_v25 = vpop.f32.mrb[85].mxu0  ;;  %v2952_v16 = vpop.f32.mrb[85].mxu1  ;;  %v6654_v35 = vmax.f32 %v6652_v60, %v6653_v61  ;;  %v6656_v3 = vld [vmem:[#allocation10_spill] sm:$0xff] }
 0x23d   : > { %3387 = vst.msk [vmem:[%s6075_s22 + $0x80] sm:$0xff] %vm3370_vm0, %v3322_v18  ;;  %v3260_v22 = vadd.f32 %v6066_v34, %v3189_v28  ;;  %v2677_v17 = vmax.f32 %v6642_v23, %v2438_v25 }
 0x23e   : > { %v3325_v21 = vmax.f32 %v3261_v2, 0.0  ;;  %v3192_v50 = vmax.f32 %v2678_v31, %v4472_v40  ;;  %v6655_v2 = vld [vmem:[#allocation9_spill] sm:$0xff] }
 0x23f   : > { %v3324_v52 = vmax.f32 %v3260_v22, 0.0  ;;  %v3191_v46 = vmax.f32 %v2677_v17, %v2952_v16  ;;  %v4347_v47 = vpop.f32.mrb[86].mxu0  ;;  %v4475_v19 = vpop.f32.mrb[86].mxu1  ;;  %v6657_v31 = vmax.f32 %v6655_v2, %v6656_v3  ;;  %v6658_v17 = vld [vmem:[#allocation11_spill] sm:$0xff] }
 0x240   : > { %3390 = vst.msk [vmem:[%s6075_s22 + $0x98] sm:$0xff] %vm3370_vm0, %v3325_v21  ;;  %v3263_v12 = vadd.f32 %v6066_v34, %v3192_v50  ;;  %v2680_v20 = vmax.f32 %v6643_v15, %v4347_v47  ;;  %v2448_v63 = vpop.f32.mrb[87].mxu0  ;;  %v2962_v49 = vpop.f32.mrb[87].mxu1  ;;  %v6659_v21 = vld [vmem:[#allocation12_spill] sm:$0xff] }
 0x241   : > { %3389 = vst.msk [vmem:[%s6075_s22 + $0x90] sm:$0xff] %vm3370_vm0, %v3324_v52  ;;  %v3262_v48 = vadd.f32 %v6066_v34, %v3191_v46  ;;  %v2679_v56 = vmax.f32 %v6644_v57, %v2448_v63  ;;  %v6660_v50 = vmax.f32 %v6658_v17, %v6659_v21 }
 0x242   : > { %v3327_v0 = vmax.f32 %v3263_v12, 0.0  ;;  %v3194_v44 = vmax.f32 %v2680_v20, %v4475_v19 }
 0x243   : > { %v3326_v51 = vmax.f32 %v3262_v48, 0.0  ;;  %v3193_v1 = vmax.f32 %v2679_v56, %v2962_v49  ;;  %v4350_v59 = vpop.f32.mrb[88].mxu0  ;;  %v4478_v53 = vpop.f32.mrb[88].mxu1  ;;  %v6661_v49 = vld [vmem:[#allocation13_spill] sm:$0xff]  ;;  %v6662_v48 = vld [vmem:[#allocation14_spill] sm:$0xff] }
 0x244   : > { %3392 = vst.msk [vmem:[%s6075_s22 + $0xa8] sm:$0xff] %vm3370_vm0, %v3327_v0  ;;  %v3265_v45 = vadd.f32 %v6066_v34, %v3194_v44  ;;  %v2682_v26 = vmax.f32 %v6645_v58, %v4350_v59  ;;  %v2458_v4 = vpop.f32.mrb[89].mxu0  ;;  %v2972_v5 = vpop.f32.mrb[89].mxu1  ;;  %v6663_v57 = vmax.f32 %v6661_v49, %v6662_v48  ;;  %v6665_v59 = vld [vmem:[#allocation16_spill] sm:$0xff] }
 0x245   : > { %3391 = vst.msk [vmem:[%s6075_s22 + $0xa0] sm:$0xff] %vm3370_vm0, %v3326_v51  ;;  %v3264_v41 = vadd.f32 %v6066_v34, %v3193_v1  ;;  %v2681_v6 = vmax.f32 %v6648_v54, %v2458_v4  ;;  %v6664_v1 = vld [vmem:[#allocation15_spill] sm:$0xff]  ;;  %v6667_v54 = vld [vmem:[#allocation17_spill] sm:$0xff] }
 0x246   : > { %v3329_v13 = vmax.f32 %v3265_v45, 0.0  ;;  %v3196_v14 = vmax.f32 %v2682_v26, %v4478_v53  ;;  %v6666_v53 = vmax.f32 %v6664_v1, %v6665_v59 }
 0x247   : > { %v3328_v7 = vmax.f32 %v3264_v41, 0.0  ;;  %v3195_v29 = vmax.f32 %v2681_v6, %v2972_v5  ;;  %v4353_v30 = vpop.f32.mrb[90].mxu0  ;;  %v4481_v55 = vpop.f32.mrb[90].mxu1  ;;  %v6668_v6 = vld [vmem:[#allocation18_spill] sm:$0xff] }
 0x248   : > { %3394 = vst.msk [vmem:[%s6075_s22 + $0xb8] sm:$0xff] %vm3370_vm0, %v3329_v13  ;;  %v3267_v38 = vadd.f32 %v6066_v34, %v3196_v14  ;;  %v2684_v9 = vmax.f32 %v6651_v8, %v4353_v30  ;;  %v2468_v32 = vpop.f32.mrb[91].mxu0  ;;  %v2982_v33 = vpop.f32.mrb[91].mxu1  ;;  %v6669_v13 = vmax.f32 %v6667_v54, %v6668_v6 }
 0x249   : > { %3393 = vst.msk [vmem:[%s6075_s22 + $0xb0] sm:$0xff] %vm3370_vm0, %v3328_v7  ;;  %v3266_v10 = vadd.f32 %v6066_v34, %v3195_v29  ;;  %v2683_v42 = vmax.f32 %v6654_v35, %v2468_v32  ;;  %v6673_v35 = vld [vmem:[#allocation21_spill] sm:$0xff] }
 0x24a   : > { %v3331_v36 = vmax.f32 %v3267_v38, 0.0  ;;  %v3198_v37 = vmax.f32 %v2684_v9, %v4481_v55  ;;  %v6670_v55 = vld [vmem:[#allocation19_spill] sm:$0xff]  ;;  %v6671_v38 = vld [vmem:[#allocation20_spill] sm:$0xff] }
 0x24b   : > { %v3330_v11 = vmax.f32 %v3266_v10, 0.0  ;;  %v3197_v18 = vmax.f32 %v2683_v42, %v2982_v33  ;;  %v4356_v28 = vpop.f32.mrb[92].mxu0  ;;  %v4484_v39 = vpop.f32.mrb[92].mxu1  ;;  %v6672_v43 = vmax.f32 %v6670_v55, %v6671_v38  ;;  %v6674_v42 = vld [vmem:[#allocation22_spill] sm:$0xff] }
 0x24c   : > { %3396 = vst.msk [vmem:[%s6075_s22 + $0xc8] sm:$0xff] %vm3370_vm0, %v3331_v36  ;;  %v3269_v40 = vadd.f32 %v6066_v34, %v3198_v37  ;;  %v2686_v25 = vmax.f32 %v6657_v31, %v4356_v28  ;;  %v2478_v16 = vpop.f32.mrb[93].mxu0  ;;  %v2992_v22 = vpop.f32.mrb[93].mxu1  ;;  %v6675_v36 = vmax.f32 %v6673_v35, %v6674_v42 }
 0x24d   : > { %3395 = vst.msk [vmem:[%s6075_s22 + $0xc0] sm:$0xff] %vm3370_vm0, %v3330_v11  ;;  %v3268_v23 = vadd.f32 %v6066_v34, %v3197_v18  ;;  %v2685_v52 = vmax.f32 %v6660_v50, %v2478_v16  ;;  %v6679_v50 = vld [vmem:[#allocation25_spill] sm:$0xff] }
 0x24e   : > { %v3333_v46 = vmax.f32 %v3269_v40, 0.0  ;;  %v3200_v47 = vmax.f32 %v2686_v25, %v4484_v39  ;;  %v6676_v39 = vld [vmem:[#allocation23_spill] sm:$0xff]  ;;  %v6677_v40 = vld [vmem:[#allocation24_spill] sm:$0xff] }
 0x24f   : > { %v3332_v19 = vmax.f32 %v3268_v23, 0.0  ;;  %v3199_v12 = vmax.f32 %v2685_v52, %v2992_v22  ;;  %v4359_v15 = vpop.f32.mrb[94].mxu0  ;;  %v4487_v20 = vpop.f32.mrb[94].mxu1  ;;  %v6678_v2 = vmax.f32 %v6676_v39, %v6677_v40  ;;  %v6680_v52 = vld [vmem:[#allocation26_spill] sm:$0xff] }
 0x250   : > { %3398 = vst.msk [vmem:[%s6075_s22 + $0xd8] sm:$0xff] %vm3370_vm0, %v3333_v46  ;;  %v3271_v63 = vadd.f32 %v6066_v34, %v3200_v47  ;;  %v2688_v56 = vmax.f32 %v6663_v57, %v4359_v15  ;;  %v2488_v0 = vpop.f32.mrb[95].mxu0  ;;  %v3002_v44 = vpop.f32.mrb[95].mxu1  ;;  %v6681_v46 = vmax.f32 %v6679_v50, %v6680_v52 }
 0x251   : > { %3397 = vst.msk [vmem:[%s6075_s22 + $0xd0] sm:$0xff] %vm3370_vm0, %v3332_v19  ;;  %v3270_v51 = vadd.f32 %v6066_v34, %v3199_v12  ;;  %v2687_v45 = vmax.f32 %v6666_v53, %v2488_v0  ;;  %v6685_v53 = vld [vmem:[#allocation29_spill] sm:$0xff] }
 0x252   : > { %v3335_v58 = vmax.f32 %v3271_v63, 0.0  ;;  %v3202_v26 = vmax.f32 %v2688_v56, %v4487_v20  ;;  %v6682_v20 = vld [vmem:[#allocation27_spill] sm:$0xff]  ;;  %v6683_v63 = vld [vmem:[#allocation28_spill] sm:$0xff] }
 0x253   : > { %v3334_v4 = vmax.f32 %v3270_v51, 0.0  ;;  %v3201_v5 = vmax.f32 %v2687_v45, %v3002_v44  ;;  %v4362_v41 = vpop.f32.mrb[96].mxu0  ;;  %v4490_v24 = vpop.f32.mrb[96].mxu1  ;;  %v6684_v49 = vmax.f32 %v6682_v20, %v6683_v63  ;;  %v6686_v45 = vld [vmem:[#allocation30_spill] sm:$0xff] }
 0x254   : > { %3400 = vst.msk [vmem:[%s6075_s22 + $0xe8] sm:$0xff] %vm3370_vm0, %v3335_v58  ;;  %v3273_v27 = vadd.f32 %v6066_v34, %v3202_v26  ;;  %v2690_v14 = vmax.f32 %v6669_v13, %v4362_v41  ;;  %v2498_v7 = vpop.f32.mrb[97].mxu0  ;;  %v3012_v29 = vpop.f32.mrb[97].mxu1  ;;  %v6687_v58 = vmax.f32 %v6685_v53, %v6686_v45 }
 0x255   : > { %3399 = vst.msk [vmem:[%s6075_s22 + $0xe0] sm:$0xff] %vm3370_vm0, %v3334_v4  ;;  %v3272_v30 = vadd.f32 %v6066_v34, %v3201_v5  ;;  %v2689_v62 = vmax.f32 %v6672_v43, %v2498_v7  ;;  %v6691_v43 = vld [vmem:[#allocation33_spill] sm:$0xff] }
 0x256   : > { %v3337_v8 = vmax.f32 %v3273_v27, 0.0  ;;  %v3204_v9 = vmax.f32 %v2690_v14, %v4490_v24  ;;  %v6688_v24 = vld [vmem:[#allocation31_spill] sm:$0xff]  ;;  %v6689_v27 = vld [vmem:[#allocation32_spill] sm:$0xff] }
 0x257   : > { %v3336_v32 = vmax.f32 %v3272_v30, 0.0  ;;  %v3203_v33 = vmax.f32 %v2689_v62, %v3012_v29  ;;  %v4365_v10 = vpop.f32.mrb[98].mxu0  ;;  %v4493_v60 = vpop.f32.mrb[98].mxu1  ;;  %v6690_v54 = vmax.f32 %v6688_v24, %v6689_v27  ;;  %v6692_v62 = vld [vmem:[#allocation34_spill] sm:$0xff] }
 0x258   : > { %3402 = vst.msk [vmem:[%s6075_s22 + $0xf8] sm:$0xff] %vm3370_vm0, %v3337_v8  ;;  %v3275_v61 = vadd.f32 %v6066_v34, %v3204_v9  ;;  %v2692_v37 = vmax.f32 %v6675_v36, %v4365_v10  ;;  %v2508_v11 = vpop.f32.mrb[99].mxu0  ;;  %v3022_v18 = vpop.f32.mrb[99].mxu1  ;;  %v6693_v8 = vmax.f32 %v6691_v43, %v6692_v62 }
 0x259   : > { %3401 = vst.msk [vmem:[%s6075_s22 + $0xf0] sm:$0xff] %vm3370_vm0, %v3336_v32  ;;  %v3274_v28 = vadd.f32 %v6066_v34, %v3203_v33  ;;  %v2691_v3 = vmax.f32 %v6678_v2, %v2508_v11  ;;  %v6697_v2 = vld [vmem:[#allocation37_spill] sm:$0xff] }
 0x25a   : > { %v3339_v31 = vmax.f32 %v3275_v61, 0.0  ;;  %v3206_v25 = vmax.f32 %v2692_v37, %v4493_v60  ;;  %v6694_v60 = vld [vmem:[#allocation35_spill] sm:$0xff]  ;;  %v6695_v61 = vld [vmem:[#allocation36_spill] sm:$0xff] }
 0x25b   : > { %v3338_v16 = vmax.f32 %v3274_v28, 0.0  ;;  %v3205_v22 = vmax.f32 %v2691_v3, %v3022_v18  ;;  %v4368_v23 = vpop.f32.mrb[100].mxu0  ;;  %v4496_v17 = vpop.f32.mrb[100].mxu1  ;;  %v6696_v35 = vmax.f32 %v6694_v60, %v6695_v61  ;;  %v6698_v3 = vld [vmem:[#allocation38_spill] sm:$0xff] }
 0x25c   : > { %3404 = vst.msk [vmem:[%s6075_s22 + $0x108] sm:$0xff] %vm3370_vm0, %v3339_v31  ;;  %v3277_v21 = vadd.f32 %v6066_v34, %v3206_v25  ;;  %v2694_v47 = vmax.f32 %v6681_v46, %v4368_v23  ;;  %v2518_v19 = vpop.f32.mrb[101].mxu0  ;;  %v3032_v12 = vpop.f32.mrb[101].mxu1  ;;  %v6699_v31 = vmax.f32 %v6697_v2, %v6698_v3 }
 0x25d   : > { %3403 = vst.msk [vmem:[%s6075_s22 + $0x100] sm:$0xff] %vm3370_vm0, %v3338_v16  ;;  %v3276_v15 = vadd.f32 %v6066_v34, %v3205_v22  ;;  %v2693_v48 = vmax.f32 %v6684_v49, %v2518_v19  ;;  %v6703_v49 = vld [vmem:[#allocation41_spill] sm:$0xff] }
 0x25e   : > { %v3341_v57 = vmax.f32 %v3277_v21, 0.0  ;;  %v3208_v56 = vmax.f32 %v2694_v47, %v4496_v17  ;;  %v6700_v17 = vld [vmem:[#allocation39_spill] sm:$0xff]  ;;  %v6701_v21 = vld [vmem:[#allocation40_spill] sm:$0xff] }
 0x25f   : > { %v3340_v0 = vmax.f32 %v3276_v15, 0.0  ;;  %v3207_v44 = vmax.f32 %v2693_v48, %v3032_v12  ;;  %v4371_v51 = vpop.f32.mrb[102].mxu0  ;;  %v4499_v1 = vpop.f32.mrb[102].mxu1  ;;  %v6702_v50 = vmax.f32 %v6700_v17, %v6701_v21  ;;  %v6704_v48 = vld [vmem:[#allocation42_spill] sm:$0xff] }
 0x260   : > { %3406 = vst.msk [vmem:[%s6075_s22 + $0x118] sm:$0xff] %vm3370_vm0, %v3341_v57  ;;  %v3279_v59 = vadd.f32 %v6066_v34, %v3208_v56  ;;  %v2696_v26 = vmax.f32 %v6687_v58, %v4371_v51  ;;  %v2528_v4 = vpop.f32.mrb[103].mxu0  ;;  %v3042_v5 = vpop.f32.mrb[103].mxu1  ;;  %v6705_v57 = vmax.f32 %v6703_v49, %v6704_v48 }
 0x261   : > { %3405 = vst.msk [vmem:[%s6075_s22 + $0x110] sm:$0xff] %vm3370_vm0, %v3340_v0  ;;  %v3278_v41 = vadd.f32 %v6066_v34, %v3207_v44  ;;  %v2695_v6 = vmax.f32 %v6690_v54, %v2528_v4  ;;  %v6709_v54 = vld [vmem:[#allocation45_spill] sm:$0xff] }
 0x262   : > { %v3343_v13 = vmax.f32 %v3279_v59, 0.0  ;;  %v3210_v14 = vmax.f32 %v2696_v26, %v4499_v1  ;;  %v6706_v1 = vld [vmem:[#allocation43_spill] sm:$0xff]  ;;  %v6707_v59 = vld [vmem:[#allocation44_spill] sm:$0xff] }
 0x263   : > { %v3342_v7 = vmax.f32 %v3278_v41, 0.0  ;;  %v3209_v29 = vmax.f32 %v2695_v6, %v3042_v5  ;;  %v4374_v30 = vpop.f32.mrb[104].mxu0  ;;  %v4502_v55 = vpop.f32.mrb[104].mxu1  ;;  %v6708_v53 = vmax.f32 %v6706_v1, %v6707_v59  ;;  %v6710_v6 = vld [vmem:[#allocation46_spill] sm:$0xff] }
 0x264   : > { %3408 = vst.msk [vmem:[%s6075_s22 + $0x128] sm:$0xff] %vm3370_vm0, %v3343_v13  ;;  %v3281_v38 = vadd.f32 %v6066_v34, %v3210_v14  ;;  %v2698_v9 = vmax.f32 %v6693_v8, %v4374_v30  ;;  %v2538_v32 = vpop.f32.mrb[105].mxu0  ;;  %v3052_v33 = vpop.f32.mrb[105].mxu1  ;;  %v6711_v13 = vmax.f32 %v6709_v54, %v6710_v6 }
 0x265   : > { %3407 = vst.msk [vmem:[%s6075_s22 + $0x120] sm:$0xff] %vm3370_vm0, %v3342_v7  ;;  %v3280_v10 = vadd.f32 %v6066_v34, %v3209_v29  ;;  %v2697_v42 = vmax.f32 %v6696_v35, %v2538_v32  ;;  %v6715_v35 = vld [vmem:[#allocation49_spill] sm:$0xff] }
 0x266   : > { %v3345_v36 = vmax.f32 %v3281_v38, 0.0  ;;  %v3212_v37 = vmax.f32 %v2698_v9, %v4502_v55  ;;  %v6712_v55 = vld [vmem:[#allocation47_spill] sm:$0xff]  ;;  %v6713_v38 = vld [vmem:[#allocation48_spill] sm:$0xff] }
 0x267   : > { %v3344_v11 = vmax.f32 %v3280_v10, 0.0  ;;  %v3211_v18 = vmax.f32 %v2697_v42, %v3052_v33  ;;  %v4377_v28 = vpop.f32.mrb[106].mxu0  ;;  %v4505_v39 = vpop.f32.mrb[106].mxu1  ;;  %v6714_v43 = vmax.f32 %v6712_v55, %v6713_v38  ;;  %v6716_v42 = vld [vmem:[#allocation50_spill] sm:$0xff] }
 0x268   : > { %3410 = vst.msk [vmem:[%s6075_s22 + $0x138] sm:$0xff] %vm3370_vm0, %v3345_v36  ;;  %v3283_v40 = vadd.f32 %v6066_v34, %v3212_v37  ;;  %v2700_v25 = vmax.f32 %v6699_v31, %v4377_v28  ;;  %v2548_v16 = vpop.f32.mrb[107].mxu0  ;;  %v3062_v22 = vpop.f32.mrb[107].mxu1  ;;  %v6717_v36 = vmax.f32 %v6715_v35, %v6716_v42 }
 0x269   : > { %3409 = vst.msk [vmem:[%s6075_s22 + $0x130] sm:$0xff] %vm3370_vm0, %v3344_v11  ;;  %v3282_v23 = vadd.f32 %v6066_v34, %v3211_v18  ;;  %v2699_v52 = vmax.f32 %v6702_v50, %v2548_v16  ;;  %v6721_v50 = vld [vmem:[#allocation53_spill] sm:$0xff] }
 0x26a   : > { %v3347_v46 = vmax.f32 %v3283_v40, 0.0  ;;  %v3214_v47 = vmax.f32 %v2700_v25, %v4505_v39  ;;  %v6718_v39 = vld [vmem:[#allocation51_spill] sm:$0xff]  ;;  %v6719_v40 = vld [vmem:[#allocation52_spill] sm:$0xff] }
 0x26b   : > { %v3346_v19 = vmax.f32 %v3282_v23, 0.0  ;;  %v3213_v12 = vmax.f32 %v2699_v52, %v3062_v22  ;;  %v4380_v15 = vpop.f32.mrb[108].mxu0  ;;  %v4508_v20 = vpop.f32.mrb[108].mxu1  ;;  %v6720_v2 = vmax.f32 %v6718_v39, %v6719_v40  ;;  %v6722_v52 = vld [vmem:[#allocation54_spill] sm:$0xff] }
 0x26c   : > { %3412 = vst.msk [vmem:[%s6075_s22 + $0x148] sm:$0xff] %vm3370_vm0, %v3347_v46  ;;  %v3285_v63 = vadd.f32 %v6066_v34, %v3214_v47  ;;  %v2702_v56 = vmax.f32 %v6705_v57, %v4380_v15  ;;  %v2558_v0 = vpop.f32.mrb[109].mxu0  ;;  %v3072_v44 = vpop.f32.mrb[109].mxu1  ;;  %v6723_v46 = vmax.f32 %v6721_v50, %v6722_v52 }
 0x26d   : > { %3411 = vst.msk [vmem:[%s6075_s22 + $0x140] sm:$0xff] %vm3370_vm0, %v3346_v19  ;;  %v3284_v51 = vadd.f32 %v6066_v34, %v3213_v12  ;;  %v2701_v45 = vmax.f32 %v6708_v53, %v2558_v0  ;;  %v6727_v53 = vld [vmem:[#allocation57_spill] sm:$0xff] }
 0x26e   : > { %v3349_v58 = vmax.f32 %v3285_v63, 0.0  ;;  %v3216_v26 = vmax.f32 %v2702_v56, %v4508_v20  ;;  %v6724_v20 = vld [vmem:[#allocation55_spill] sm:$0xff]  ;;  %v6725_v63 = vld [vmem:[#allocation56_spill] sm:$0xff] }
 0x26f   : > { %v3348_v4 = vmax.f32 %v3284_v51, 0.0  ;;  %v3215_v5 = vmax.f32 %v2701_v45, %v3072_v44  ;;  %v4383_v41 = vpop.f32.mrb[110].mxu0  ;;  %v4511_v24 = vpop.f32.mrb[110].mxu1  ;;  %v6726_v49 = vmax.f32 %v6724_v20, %v6725_v63  ;;  %v6728_v45 = vld [vmem:[#allocation58_spill] sm:$0xff] }
 0x270   : > { %3414 = vst.msk [vmem:[%s6075_s22 + $0x158] sm:$0xff] %vm3370_vm0, %v3349_v58  ;;  %v3287_v27 = vadd.f32 %v6066_v34, %v3216_v26  ;;  %v2704_v14 = vmax.f32 %v6711_v13, %v4383_v41  ;;  %v2568_v7 = vpop.f32.mrb[111].mxu0  ;;  %v3082_v29 = vpop.f32.mrb[111].mxu1  ;;  %v6729_v58 = vmax.f32 %v6727_v53, %v6728_v45 }
 0x271   : > { %3413 = vst.msk [vmem:[%s6075_s22 + $0x150] sm:$0xff] %vm3370_vm0, %v3348_v4  ;;  %v3286_v30 = vadd.f32 %v6066_v34, %v3215_v5  ;;  %v2703_v62 = vmax.f32 %v6714_v43, %v2568_v7  ;;  %v6733_v43 = vld [vmem:[#allocation61_spill] sm:$0xff] }
 0x272   : > { %v3351_v8 = vmax.f32 %v3287_v27, 0.0  ;;  %v3218_v9 = vmax.f32 %v2704_v14, %v4511_v24  ;;  %v6730_v24 = vld [vmem:[#allocation59_spill] sm:$0xff]  ;;  %v6731_v27 = vld [vmem:[#allocation60_spill] sm:$0xff] }
 0x273   : > { %v3350_v32 = vmax.f32 %v3286_v30, 0.0  ;;  %v3217_v33 = vmax.f32 %v2703_v62, %v3082_v29  ;;  %v4386_v10 = vpop.f32.mrb[112].mxu0  ;;  %v4514_v60 = vpop.f32.mrb[112].mxu1  ;;  %v6732_v54 = vmax.f32 %v6730_v24, %v6731_v27  ;;  %v6734_v62 = vld [vmem:[#allocation62_spill] sm:$0xff] }
 0x274   : > { %3416 = vst.msk [vmem:[%s6075_s22 + $0x168] sm:$0xff] %vm3370_vm0, %v3351_v8  ;;  %v3289_v61 = vadd.f32 %v6066_v34, %v3218_v9  ;;  %v2706_v37 = vmax.f32 %v6717_v36, %v4386_v10  ;;  %v2578_v11 = vpop.f32.mrb[113].mxu0  ;;  %v3092_v18 = vpop.f32.mrb[113].mxu1  ;;  %v6735_v8 = vmax.f32 %v6733_v43, %v6734_v62 }
 0x275   : > { %3415 = vst.msk [vmem:[%s6075_s22 + $0x160] sm:$0xff] %vm3370_vm0, %v3350_v32  ;;  %v3288_v28 = vadd.f32 %v6066_v34, %v3217_v33  ;;  %v2705_v3 = vmax.f32 %v6720_v2, %v2578_v11  ;;  %v6739_v2 = vld [vmem:[#allocation65_spill] sm:$0xff] }
 0x276   : > { %v3353_v31 = vmax.f32 %v3289_v61, 0.0  ;;  %v3220_v25 = vmax.f32 %v2706_v37, %v4514_v60  ;;  %v6736_v60 = vld [vmem:[#allocation63_spill] sm:$0xff]  ;;  %v6737_v61 = vld [vmem:[#allocation64_spill] sm:$0xff] }
 0x277   : > { %v3352_v16 = vmax.f32 %v3288_v28, 0.0  ;;  %v3219_v22 = vmax.f32 %v2705_v3, %v3092_v18  ;;  %v4389_v23 = vpop.f32.mrb[114].mxu0  ;;  %v4517_v17 = vpop.f32.mrb[114].mxu1  ;;  %v6738_v35 = vmax.f32 %v6736_v60, %v6737_v61  ;;  %v6740_v3 = vld [vmem:[#allocation66_spill] sm:$0xff] }
 0x278   : > { %3418 = vst.msk [vmem:[%s6075_s22 + $0x178] sm:$0xff] %vm3370_vm0, %v3353_v31  ;;  %v3291_v21 = vadd.f32 %v6066_v34, %v3220_v25  ;;  %v2708_v47 = vmax.f32 %v6723_v46, %v4389_v23  ;;  %v2588_v19 = vpop.f32.mrb[115].mxu0  ;;  %v3102_v12 = vpop.f32.mrb[115].mxu1  ;;  %v6741_v31 = vmax.f32 %v6739_v2, %v6740_v3 }
 0x279   : > { %3417 = vst.msk [vmem:[%s6075_s22 + $0x170] sm:$0xff] %vm3370_vm0, %v3352_v16  ;;  %v3290_v15 = vadd.f32 %v6066_v34, %v3219_v22  ;;  %v2707_v48 = vmax.f32 %v6726_v49, %v2588_v19  ;;  %v6745_v49 = vld [vmem:[#allocation69_spill] sm:$0xff] }
 0x27a   : > { %v3355_v57 = vmax.f32 %v3291_v21, 0.0  ;;  %v3222_v56 = vmax.f32 %v2708_v47, %v4517_v17  ;;  %v6742_v17 = vld [vmem:[#allocation67_spill] sm:$0xff]  ;;  %v6743_v21 = vld [vmem:[#allocation68_spill] sm:$0xff] }
 0x27b   : > { %v3354_v0 = vmax.f32 %v3290_v15, 0.0  ;;  %v3221_v44 = vmax.f32 %v2707_v48, %v3102_v12  ;;  %v4392_v51 = vpop.f32.mrb[116].mxu0  ;;  %v4520_v1 = vpop.f32.mrb[116].mxu1  ;;  %v6744_v50 = vmax.f32 %v6742_v17, %v6743_v21  ;;  %v6746_v48 = vld [vmem:[#allocation70_spill] sm:$0xff] }
 0x27c   : > { %3420 = vst.msk [vmem:[%s6075_s22 + $0x188] sm:$0xff] %vm3370_vm0, %v3355_v57  ;;  %v3293_v59 = vadd.f32 %v6066_v34, %v3222_v56  ;;  %v2710_v26 = vmax.f32 %v6729_v58, %v4392_v51  ;;  %v2598_v4 = vpop.f32.mrb[117].mxu0  ;;  %v3112_v5 = vpop.f32.mrb[117].mxu1  ;;  %v6747_v57 = vmax.f32 %v6745_v49, %v6746_v48 }
 0x27d   : > { %3419 = vst.msk [vmem:[%s6075_s22 + $0x180] sm:$0xff] %vm3370_vm0, %v3354_v0  ;;  %v3292_v41 = vadd.f32 %v6066_v34, %v3221_v44  ;;  %v2709_v6 = vmax.f32 %v6732_v54, %v2598_v4  ;;  %v6751_v54 = vld [vmem:[#allocation73_spill] sm:$0xff] }
 0x27e   : > { %v3357_v13 = vmax.f32 %v3293_v59, 0.0  ;;  %v3224_v14 = vmax.f32 %v2710_v26, %v4520_v1  ;;  %v6748_v1 = vld [vmem:[#allocation71_spill] sm:$0xff]  ;;  %v6749_v59 = vld [vmem:[#allocation72_spill] sm:$0xff] }
 0x27f   : > { %v3356_v7 = vmax.f32 %v3292_v41, 0.0  ;;  %v3223_v29 = vmax.f32 %v2709_v6, %v3112_v5  ;;  %v4395_v30 = vpop.f32.mrb[118].mxu0  ;;  %v4523_v55 = vpop.f32.mrb[118].mxu1  ;;  %v6750_v53 = vmax.f32 %v6748_v1, %v6749_v59  ;;  %v6752_v6 = vld [vmem:[#allocation74_spill] sm:$0xff] }
 0x280   : > { %3422 = vst.msk [vmem:[%s6075_s22 + $0x198] sm:$0xff] %vm3370_vm0, %v3357_v13  ;;  %v3295_v38 = vadd.f32 %v6066_v34, %v3224_v14  ;;  %v2712_v9 = vmax.f32 %v6735_v8, %v4395_v30  ;;  %v2608_v32 = vpop.f32.mrb[119].mxu0  ;;  %v3122_v33 = vpop.f32.mrb[119].mxu1  ;;  %v6753_v13 = vmax.f32 %v6751_v54, %v6752_v6 }
 0x281   : > { %3421 = vst.msk [vmem:[%s6075_s22 + $0x190] sm:$0xff] %vm3370_vm0, %v3356_v7  ;;  %v3294_v10 = vadd.f32 %v6066_v34, %v3223_v29  ;;  %v2711_v42 = vmax.f32 %v6738_v35, %v2608_v32  ;;  %v6757_v35 = vld [vmem:[#allocation77_spill] sm:$0xff] }
 0x282   : > { %v3359_v36 = vmax.f32 %v3295_v38, 0.0  ;;  %v3226_v37 = vmax.f32 %v2712_v9, %v4523_v55  ;;  %v6754_v55 = vld [vmem:[#allocation75_spill] sm:$0xff]  ;;  %v6755_v38 = vld [vmem:[#allocation76_spill] sm:$0xff] }
 0x283   : > { %v3358_v11 = vmax.f32 %v3294_v10, 0.0  ;;  %v3225_v18 = vmax.f32 %v2711_v42, %v3122_v33  ;;  %v4398_v28 = vpop.f32.mrb[120].mxu0  ;;  %v4526_v39 = vpop.f32.mrb[120].mxu1  ;;  %v6756_v43 = vmax.f32 %v6754_v55, %v6755_v38  ;;  %v6758_v42 = vld [vmem:[#allocation78_spill] sm:$0xff] }
 0x284   : > { %3424 = vst.msk [vmem:[%s6075_s22 + $0x1a8] sm:$0xff] %vm3370_vm0, %v3359_v36  ;;  %v3297_v40 = vadd.f32 %v6066_v34, %v3226_v37  ;;  %v2714_v25 = vmax.f32 %v6741_v31, %v4398_v28  ;;  %v2618_v16 = vpop.f32.mrb[121].mxu0  ;;  %v3132_v22 = vpop.f32.mrb[121].mxu1  ;;  %v6759_v36 = vmax.f32 %v6757_v35, %v6758_v42 }
 0x285   : > { %3423 = vst.msk [vmem:[%s6075_s22 + $0x1a0] sm:$0xff] %vm3370_vm0, %v3358_v11  ;;  %v3296_v23 = vadd.f32 %v6066_v34, %v3225_v18  ;;  %v2713_v52 = vmax.f32 %v6744_v50, %v2618_v16 }
 0x286   : > { %v3361_v46 = vmax.f32 %v3297_v40, 0.0  ;;  %v3228_v47 = vmax.f32 %v2714_v25, %v4526_v39  ;;  %v6760_v39 = vld [vmem:[#allocation79_spill] sm:$0xff]  ;;  %v6761_v40 = vld [vmem:[#allocation80_spill] sm:$0xff] }
 0x287   : > { %v3360_v19 = vmax.f32 %v3296_v23, 0.0  ;;  %v3227_v12 = vmax.f32 %v2713_v52, %v3132_v22  ;;  %v4401_v15 = vpop.f32.mrb[122].mxu0  ;;  %v4529_v20 = vpop.f32.mrb[122].mxu1  ;;  %v6762_v2 = vmax.f32 %v6760_v39, %v6761_v40 }
 0x288   : > { %3426 = vst.msk [vmem:[%s6075_s22 + $0x1b8] sm:$0xff] %vm3370_vm0, %v3361_v46  ;;  %v3299_v63 = vadd.f32 %v6066_v34, %v3228_v47  ;;  %v2716_v56 = vmax.f32 %v6747_v57, %v4401_v15  ;;  %v2628_v0 = vpop.f32.mrb[123].mxu0  ;;  %v3142_v44 = vpop.f32.mrb[123].mxu1 }
 0x289   : > { %3425 = vst.msk [vmem:[%s6075_s22 + $0x1b0] sm:$0xff] %vm3370_vm0, %v3360_v19  ;;  %v3298_v51 = vadd.f32 %v6066_v34, %v3227_v12  ;;  %v2715_v45 = vmax.f32 %v6750_v53, %v2628_v0 }
 0x28a   : > { %v3363_v58 = vmax.f32 %v3299_v63, 0.0  ;;  %v3230_v26 = vmax.f32 %v2716_v56, %v4529_v20 }
 0x28b   : > { %v3362_v4 = vmax.f32 %v3298_v51, 0.0  ;;  %v3229_v5 = vmax.f32 %v2715_v45, %v3142_v44  ;;  %v4404_v41 = vpop.f32.mrb[124].mxu0  ;;  %v4532_v24 = vpop.f32.mrb[124].mxu1 }
 0x28c   : > { %3428 = vst.msk [vmem:[%s6075_s22 + $0x1c8] sm:$0xff] %vm3370_vm0, %v3363_v58  ;;  %v3301_v27 = vadd.f32 %v6066_v34, %v3230_v26  ;;  %v2718_v14 = vmax.f32 %v6753_v13, %v4404_v41  ;;  %v2638_v7 = vpop.f32.mrb[125].mxu0  ;;  %v3152_v29 = vpop.f32.mrb[125].mxu1 }
 0x28d   : > { %3427 = vst.msk [vmem:[%s6075_s22 + $0x1c0] sm:$0xff] %vm3370_vm0, %v3362_v4  ;;  %v3300_v30 = vadd.f32 %v6066_v34, %v3229_v5  ;;  %v2717_v62 = vmax.f32 %v6756_v43, %v2638_v7 }
 0x28e   : > { %v3365_v8 = vmax.f32 %v3301_v27, 0.0  ;;  %v3232_v9 = vmax.f32 %v2718_v14, %v4532_v24 }
 0x28f   : > { %v3364_v32 = vmax.f32 %v3300_v30, 0.0  ;;  %v3231_v33 = vmax.f32 %v2717_v62, %v3152_v29  ;;  %v4407_v10 = vpop.f32.mrb[126].mxu0  ;;  %v4535_v60 = vpop.f32.mrb[126].mxu1 }
 0x290   : > { %3430 = vst.msk [vmem:[%s6075_s22 + $0x1d8] sm:$0xff] %vm3370_vm0, %v3365_v8  ;;  %v3303_v61 = vadd.f32 %v6066_v34, %v3232_v9  ;;  %v2720_v37 = vmax.f32 %v6759_v36, %v4407_v10  ;;  %v2648_v11 = vpop.f32.mrb[127].mxu0  ;;  %v3162_v18 = vpop.f32.mrb[127].mxu1 }
 0x291   : > { %3429 = vst.msk [vmem:[%s6075_s22 + $0x1d0] sm:$0xff] %vm3370_vm0, %v3364_v32  ;;  %v3302_v28 = vadd.f32 %v6066_v34, %v3231_v33  ;;  %v2719_v3 = vmax.f32 %v6762_v2, %v2648_v11 }
 0x292   : > { %v3367_v31 = vmax.f32 %v3303_v61, 0.0  ;;  %v3234_v25 = vmax.f32 %v2720_v37, %v4535_v60 }
 0x293   : > { %v3366_v16 = vmax.f32 %v3302_v28, 0.0  ;;  %v3233_v22 = vmax.f32 %v2719_v3, %v3162_v18 }
 0x294   : > { %3432 = vst.msk [vmem:[%s6075_s22 + $0x1e8] sm:$0xff] %vm3370_vm0, %v3367_v31  ;;  %v3305_v23 = vadd.f32 %v6066_v34, %v3234_v25 }
 0x295   : > { %3431 = vst.msk [vmem:[%s6075_s22 + $0x1e0] sm:$0xff] %vm3370_vm0, %v3366_v16  ;;  %v3304_v17 = vadd.f32 %v6066_v34, %v3233_v22 }
 0x296   : > { %v3369_v21 = vmax.f32 %v3305_v23, 0.0 }
 0x297   : > { %v3368_v50 = vmax.f32 %v3304_v17, 0.0 }
 0x298   : > { %3434 = vst.msk [vmem:[%s6075_s22 + $0x1f8] sm:$0xff] %vm3370_vm0, %v3369_v21 }
 0x299   : > { %3433 = vst.msk [vmem:[%s6075_s22 + $0x1f0] sm:$0xff] %vm3370_vm0, %v3368_v50 }
 0x29a PF: > { %p10_p9 = scmp.ge.s32.totalorder %s4749_s16, 6   ;;  %s6763_s12 = smov %s4706_s13 }
 0x29b   : > { %s6764_s13 = smov %s4758_s19  ;;  %s6765_s14 = smov %s4749_s16 }
 0x29c   :  { %12 = sbr.rel (!%p10_p9) target bundleno = 2 (0x2), region = 108 }

// kernel: net_forward.4
= control target key start
LH: loop header
LB: loop body
LE: loop exit
PB: predicated region body
PF: predicated region fallthrough
CT: control target
= control target key end

     0   :  { %vm745_vm0 = vcmask 261120   ;;  %s1965_s1 = inlined_call_operand.vmem [shape: f32[256,128], index: 1, kind: input, shape index: {}]   ;;  %s1966_s0 = inlined_call_operand.vmem [shape: f32[4,104,256], index: 0, kind: input, shape index: {}]   ;;  %s1967_s2 = inlined_call_operand.vmem [shape: f32[1,128], index: 2, kind: input, shape index: {}]   ;;  %s1968_s3 = inlined_call_operand.vmem [shape: f32[104,32], index: 3, kind: output, shape index: {}]  }
   0x1   :  { %v30_v0 = vld [vmem:[%s1965_s1 + $0x80] sm:$0xff]  ;;  %v31_v1 = vld [vmem:[%s1965_s1 + $0x88] sm:$0xff]  ;;  %v32_v5 = vld [vmem:[%s1965_s1 + $0x90] sm:$0xff] }
   0x2   :  { %v14_v2 = vld [vmem:[%s1965_s1] sm:$0xff]  ;;  %v1283_v3 = vpack.c.bf16 %v31_v1, %v30_v0  ;;  %v15_v4 = vld [vmem:[%s1965_s1 + $0x8] sm:$0xff]  ;;  %v33_v6 = vld [vmem:[%s1965_s1 + $0x98] sm:$0xff] }
   0x3   :  { %v1294_v7 = vpack.c.bf16 %v15_v4, %v14_v2  ;;  %v1296_v8 = vpack.c.bf16 %v33_v6, %v32_v5  ;;  %v16_v9 = vld [vmem:[%s1965_s1 + $0x10] sm:$0xff]  ;;  %v17_v10 = vld [vmem:[%s1965_s1 + $0x18] sm:$0xff]  ;;  %v34_v11 = vld [vmem:[%s1965_s1 + $0xa0] sm:$0xff] }
   0x4   :  { %1127 = vmatprep.subr.bf16.mxu0 %v1283_v3  ;;  %1159 = vmatprep.subr.bf16.mxu1 %v1283_v3  ;;  %v35_v12 = vld [vmem:[%s1965_s1 + $0xa8] sm:$0xff]  ;;  %v1314_v13 = vpack.c.bf16 %v17_v10, %v16_v9  ;;  %v18_v15 = vld [vmem:[%s1965_s1 + $0x20] sm:$0xff]  ;;  %v36_v17 = vld [vmem:[%s1965_s1 + $0xb0] sm:$0xff] }
   0x5   :  { %1129 = vmatpush3.bf16.msra.mxu0 %v1294_v7  ;;  %1161 = vmatpush3.bf16.msra.mxu1 %v1294_v7  ;;  %v1318_v14 = vpack.c.bf16 %v35_v12, %v34_v11  ;;  %v19_v16 = vld [vmem:[%s1965_s1 + $0x28] sm:$0xff]  ;;  %v37_v18 = vld [vmem:[%s1965_s1 + $0xb8] sm:$0xff]  ;;  %v20_v21 = vld [vmem:[%s1965_s1 + $0x30] sm:$0xff] }
   0x6   :  { %1131 = vmatprep.subr.bf16.mxu0 %v1296_v8  ;;  %1163 = vmatprep.subr.bf16.mxu1 %v1296_v8  ;;  %v1334_v19 = vpack.c.bf16 %v19_v16, %v18_v15  ;;  %v1338_v20 = vpack.c.bf16 %v37_v18, %v36_v17  ;;  %v21_v22 = vld [vmem:[%s1965_s1 + $0x38] sm:$0xff]  ;;  %v38_v23 = vld [vmem:[%s1965_s1 + $0xc0] sm:$0xff]  ;;  %v39_v24 = vld [vmem:[%s1965_s1 + $0xc8] sm:$0xff] }
   0x7   :  { %v47_v25 = vld [vmem:[%s1966_s0 + $0x8] sm:$0xff]  ;;  %v764_v26 = vld [vmem:[%s1966_s0 + $0xd8] sm:$0xff]  ;;  %v1360_v27 = vpack.c.bf16 %v21_v22, %v20_v21  ;;  %v1364_v28 = vpack.c.bf16 %v39_v24, %v38_v23  ;;  %v22_v29 = vld [vmem:[%s1965_s1 + $0x40] sm:$0xff] }
   0x8   :  { %136 = vmatprep.mubr.f32.mxu0 %v47_v25  ;;  %v23_v30 = vld [vmem:[%s1965_s1 + $0x48] sm:$0xff]  ;;  %v40_v31 = vld [vmem:[%s1965_s1 + $0xd0] sm:$0xff]  ;;  %v41_v32 = vld [vmem:[%s1965_s1 + $0xd8] sm:$0xff]  ;;  %293 = vmatprep.mubr.f32.mxu1 %v764_v26 }
   0x9   :  { %1133 = vmatpush3.bf16.msra.mxu0 %v1314_v13  ;;  %1165 = vmatpush3.bf16.msra.mxu1 %v1314_v13  ;;  %v1380_v33 = vpack.c.bf16 %v23_v30, %v22_v29  ;;  %v1384_v34 = vpack.c.bf16 %v41_v32, %v40_v31  ;;  %v24_v35 = vld [vmem:[%s1965_s1 + $0x50] sm:$0xff]  ;;  %v25_v36 = vld [vmem:[%s1965_s1 + $0x58] sm:$0xff]  ;;  %v42_v37 = vld [vmem:[%s1965_s1 + $0xe0] sm:$0xff] }
   0xa   :  { %1135 = vmatprep.subr.bf16.mxu0 %v1318_v14  ;;  %1167 = vmatprep.subr.bf16.mxu1 %v1318_v14  ;;  %v43_v38 = vld [vmem:[%s1965_s1 + $0xe8] sm:$0xff]  ;;  %v1400_v39 = vpack.c.bf16 %v25_v36, %v24_v35  ;;  %v26_v41 = vld [vmem:[%s1965_s1 + $0x60] sm:$0xff]  ;;  %v44_v43 = vld [vmem:[%s1965_s1 + $0xf0] sm:$0xff] }
   0xb   :  { %v1404_v40 = vpack.c.bf16 %v43_v38, %v42_v37  ;;  %v27_v42 = vld [vmem:[%s1965_s1 + $0x68] sm:$0xff]  ;;  %v45_v44 = vld [vmem:[%s1965_s1 + $0xf8] sm:$0xff]  ;;  %v28_v47 = vld [vmem:[%s1965_s1 + $0x70] sm:$0xff] }
   0xc   :  { %v1420_v45 = vpack.c.bf16 %v27_v42, %v26_v41  ;;  %v1424_v46 = vpack.c.bf16 %v45_v44, %v44_v43  ;;  %v29_v48 = vld [vmem:[%s1965_s1 + $0x78] sm:$0xff]  ;;  %v46_v50 = vld [vmem:[%s1966_s0] sm:$0xff]  ;;  %v763_v51 = vld [vmem:[%s1966_s0 + $0xd0] sm:$0xff] }
   0xd   :  { %1137 = vmatpush3.bf16.msra.mxu0 %v1334_v19  ;;  %1169 = vmatpush3.bf16.msra.mxu1 %v1334_v19  ;;  %v1434_v49 = vpack.c.bf16 %v29_v48, %v28_v47  ;;  %v49_v52 = vld [vmem:[%s1966_s0 + $0x18] sm:$0xff]  ;;  %v766_v53 = vld [vmem:[%s1966_s0 + $0xe8] sm:$0xff]  ;;  %v48_v54 = vld [vmem:[%s1966_s0 + $0x10] sm:$0xff] }
   0xe   :  { %1139 = vmatprep.subr.bf16.mxu0 %v1338_v20  ;;  %1171 = vmatprep.subr.bf16.mxu1 %v1338_v20  ;;  %v765_v55 = vld [vmem:[%s1966_s0 + $0xe0] sm:$0xff]  ;;  %v51_v56 = vld [vmem:[%s1966_s0 + $0x28] sm:$0xff]  ;;  %v768_v57 = vld [vmem:[%s1966_s0 + $0xf8] sm:$0xff] }
   0xf   :  { %v50_v58 = vld [vmem:[%s1966_s0 + $0x20] sm:$0xff]  ;;  %v767_v59 = vld [vmem:[%s1966_s0 + $0xf0] sm:$0xff]  ;;  %v53_v60 = vld [vmem:[%s1966_s0 + $0x38] sm:$0xff] }
  0x10   :  { %v770_v61 = vld [vmem:[%s1966_s0 + $0x108] sm:$0xff]  ;;  %v52_v62 = vld [vmem:[%s1966_s0 + $0x30] sm:$0xff]  ;;  %v769_v63 = vld [vmem:[%s1966_s0 + $0x100] sm:$0xff] }
  0x11   :  { %1141 = vmatpush3.bf16.msra.mxu0 %v1360_v27  ;;  %1173 = vmatpush3.bf16.msra.mxu1 %v1360_v27  ;;  %v55_v0 = vld [vmem:[%s1966_s0 + $0x48] sm:$0xff]  ;;  %v772_v1 = vld [vmem:[%s1966_s0 + $0x118] sm:$0xff]  ;;  %v54_v2 = vld [vmem:[%s1966_s0 + $0x40] sm:$0xff] }
  0x12   :  { %1143 = vmatprep.subr.bf16.mxu0 %v1364_v28  ;;  %1175 = vmatprep.subr.bf16.mxu1 %v1364_v28  ;;  %v57_v4 = vld [vmem:[%s1966_s0 + $0x58] sm:$0xff]  ;;  %v774_v5 = vld [vmem:[%s1966_s0 + $0x128] sm:$0xff]  ;;  %v56_v6 = vld [vmem:[%s1966_s0 + $0x50] sm:$0xff] }
  0x13   :  { %v776_v9 = vld [vmem:[%s1966_s0 + $0x138] sm:$0xff]  ;;  %v58_v10 = vld [vmem:[%s1966_s0 + $0x60] sm:$0xff]  ;;  %v775_v11 = vld [vmem:[%s1966_s0 + $0x130] sm:$0xff] }
  0x14   :  { %v61_v12 = vld [vmem:[%s1966_s0 + $0x78] sm:$0xff]  ;;  %v777_v15 = vld [vmem:[%s1966_s0 + $0x140] sm:$0xff]  ;;  %v63_v16 = vld [vmem:[%s1966_s0 + $0x88] sm:$0xff] }
  0x15   :  { %1145 = vmatpush3.bf16.msra.mxu0 %v1380_v33  ;;  %1177 = vmatpush3.bf16.msra.mxu1 %v1380_v33  ;;  %v780_v17 = vld [vmem:[%s1966_s0 + $0x158] sm:$0xff]  ;;  %v62_v18 = vld [vmem:[%s1966_s0 + $0x80] sm:$0xff]  ;;  %v782_v21 = vld [vmem:[%s1966_s0 + $0x168] sm:$0xff] }
  0x16   :  { %1147 = vmatprep.subr.bf16.mxu0 %v1384_v34  ;;  %1179 = vmatprep.subr.bf16.mxu1 %v1384_v34  ;;  %v64_v22 = vld [vmem:[%s1966_s0 + $0x90] sm:$0xff]  ;;  %v781_v23 = vld [vmem:[%s1966_s0 + $0x160] sm:$0xff]  ;;  %v67_v24 = vld [vmem:[%s1966_s0 + $0xa8] sm:$0xff] }
  0x17   :  { %v784_v25 = vld [vmem:[%s1966_s0 + $0x178] sm:$0xff]  ;;  %v66_v26 = vld [vmem:[%s1966_s0 + $0xa0] sm:$0xff]  ;;  %v786_v29 = vld [vmem:[%s1966_s0 + $0x188] sm:$0xff] }
  0x18   :  { %v68_v30 = vld [vmem:[%s1966_s0 + $0xb0] sm:$0xff]  ;;  %v785_v31 = vld [vmem:[%s1966_s0 + $0x180] sm:$0xff]  ;;  %v71_v32 = vld [vmem:[%s1966_s0 + $0xc8] sm:$0xff] }
  0x19   :  { %1149 = vmatpush3.bf16.msra.mxu0 %v1400_v39  ;;  %1181 = vmatpush3.bf16.msra.mxu1 %v1400_v39  ;;  %v787_v35 = vld [vmem:[%s1966_s0 + $0x190] sm:$0xff]  ;;  %v790_v36 = vld [vmem:[%s1966_s0 + $0x1a8] sm:$0xff]  ;;  %v816_v37 = vld [vmem:[%s1966_s0 + $0x278] sm:$0xff] }
  0x1a   :  { %1151 = vmatprep.subr.bf16.mxu0 %v1404_v40  ;;  %1183 = vmatprep.subr.bf16.mxu1 %v1404_v40  ;;  %v789_v38 = vld [vmem:[%s1966_s0 + $0x1a0] sm:$0xff]  ;;  %v818_v41 = vld [vmem:[%s1966_s0 + $0x288] sm:$0xff]  ;;  %v791_v42 = vld [vmem:[%s1966_s0 + $0x1b0] sm:$0xff] }
  0x1b   :  { %v817_v43 = vld [vmem:[%s1966_s0 + $0x280] sm:$0xff]  ;;  %v794_v44 = vld [vmem:[%s1966_s0 + $0x1c8] sm:$0xff]  ;;  %v819_v47 = vld [vmem:[%s1966_s0 + $0x290] sm:$0xff] }
  0x1c   :  { %v796_v48 = vld [vmem:[%s1966_s0 + $0x1d8] sm:$0xff] }
  0x1d   :  { %1153 = vmatpush3.bf16.msra.mxu0 %v1420_v45  ;;  %1185 = vmatpush3.bf16.msra.mxu1 %v1420_v45 }
  0x1e   :  { %1155 = vmatprep.subr.bf16.mxu0 %v1424_v46  ;;  %1187 = vmatprep.subr.bf16.mxu1 %v1424_v46 }
  0x21   :  { %1157 = vmatpush3.bf16.msra.mxu0 %v1434_v49  ;;  %1189 = vmatpush3.bf16.msra.mxu1 %v1434_v49 }
  0x22   :  { %1191 = vmatprep.subr.bf16.mxu0 %v1283_v3  ;;  %1223 = vmatprep.subr.bf16.mxu1 %v1283_v3  ;;  %v771_v3 = vld [vmem:[%s1966_s0 + $0x110] sm:$0xff] }
  0x24   :  { %137 = vmatmul.mubr.f32.vlgmr.msra.gmra.mrb[0].mxu0 %v46_v50  ;;  %294 = vmatmul.mubr.f32.vlgmr.msra.gmra.mrb[0].mxu1 %v763_v51  ;;  %v795_v50 = vld [vmem:[%s1966_s0 + $0x1d0] sm:$0xff]  ;;  %v821_v51 = vld [vmem:[%s1966_s0 + $0x2a0] sm:$0xff] }
  0x25   :  { %1193 = vmatpush3.bf16.msra.mxu0 %v1294_v7  ;;  %141 = vmatprep.mubr.f32.mxu0 %v49_v52  ;;  %v798_v52 = vld [vmem:[%s1966_s0 + $0x1e8] sm:$0xff] }
  0x26   :  { %298 = vmatprep.mubr.f32.mxu1 %v766_v53  ;;  %1225 = vmatpush3.bf16.msra.mxu1 %v1294_v7  ;;  %v773_v7 = vld [vmem:[%s1966_s0 + $0x120] sm:$0xff]  ;;  %v824_v53 = vld [vmem:[%s1966_s0 + $0x2b8] sm:$0xff] }
  0x27   :  { %1195 = vmatprep.subr.bf16.mxu0 %v1296_v8  ;;  %1227 = vmatprep.subr.bf16.mxu1 %v1296_v8  ;;  %v59_v8 = vld [vmem:[%s1966_s0 + $0x68] sm:$0xff] }
  0x28   :  { %142 = vmatmul.mubr.f32.gmra.mrb[2].mxu0 %v48_v54  ;;  %299 = vmatmul.mubr.f32.gmra.mrb[2].mxu1 %v765_v55  ;;  %v797_v54 = vld [vmem:[%s1966_s0 + $0x1e0] sm:$0xff]  ;;  %v823_v55 = vld [vmem:[%s1966_s0 + $0x2b0] sm:$0xff] }
  0x29   :  { %146 = vmatprep.mubr.f32.mxu0 %v51_v56  ;;  %303 = vmatprep.mubr.f32.mxu1 %v768_v57  ;;  %v800_v56 = vld [vmem:[%s1966_s0 + $0x1f8] sm:$0xff]  ;;  %v826_v57 = vld [vmem:[%s1966_s0 + $0x2c8] sm:$0xff] }
  0x2a   :  { %1197 = vmatpush3.bf16.msra.mxu0 %v1314_v13  ;;  %1229 = vmatpush3.bf16.msra.mxu1 %v1314_v13  ;;  %v778_v13 = vld [vmem:[%s1966_s0 + $0x148] sm:$0xff] }
  0x2b   :  { %1199 = vmatprep.subr.bf16.mxu0 %v1318_v14  ;;  %1231 = vmatprep.subr.bf16.mxu1 %v1318_v14  ;;  %v60_v14 = vld [vmem:[%s1966_s0 + $0x70] sm:$0xff] }
  0x2c   :  { %147 = vmatmul.mubr.f32.gmra.mrb[4].mxu0 %v50_v58  ;;  %304 = vmatmul.mubr.f32.gmra.mrb[4].mxu1 %v767_v59  ;;  %v799_v58 = vld [vmem:[%s1966_s0 + $0x1f0] sm:$0xff]  ;;  %v825_v59 = vld [vmem:[%s1966_s0 + $0x2c0] sm:$0xff] }
  0x2d   :  { %151 = vmatprep.mubr.f32.mxu0 %v53_v60  ;;  %308 = vmatprep.mubr.f32.mxu1 %v770_v61  ;;  %v802_v60 = vld [vmem:[%s1966_s0 + $0x208] sm:$0xff]  ;;  %v828_v61 = vld [vmem:[%s1966_s0 + $0x2d8] sm:$0xff] }
  0x2e   :  { %1201 = vmatpush3.bf16.msra.mxu0 %v1334_v19  ;;  %1233 = vmatpush3.bf16.msra.mxu1 %v1334_v19  ;;  %v779_v19 = vld [vmem:[%s1966_s0 + $0x150] sm:$0xff] }
  0x2f   :  { %1203 = vmatprep.subr.bf16.mxu0 %v1338_v20  ;;  %1235 = vmatprep.subr.bf16.mxu1 %v1338_v20  ;;  %v65_v20 = vld [vmem:[%s1966_s0 + $0x98] sm:$0xff] }
  0x30   :  { %152 = vmatmul.mubr.f32.gmra.mrb[6].mxu0 %v52_v62  ;;  %309 = vmatmul.mubr.f32.gmra.mrb[6].mxu1 %v769_v63  ;;  %v801_v62 = vld [vmem:[%s1966_s0 + $0x200] sm:$0xff]  ;;  %v827_v63 = vld [vmem:[%s1966_s0 + $0x2d0] sm:$0xff] }
  0x31   :  { %156 = vmatprep.mubr.f32.mxu0 %v55_v0  ;;  %313 = vmatprep.mubr.f32.mxu1 %v772_v1  ;;  %v804_v0 = vld [vmem:[%s1966_s0 + $0x218] sm:$0xff]  ;;  %v830_v1 = vld [vmem:[%s1966_s0 + $0x2e8] sm:$0xff] }
  0x32   :  { %1205 = vmatpush3.bf16.msra.mxu0 %v1360_v27  ;;  %1237 = vmatpush3.bf16.msra.mxu1 %v1360_v27  ;;  %v783_v27 = vld [vmem:[%s1966_s0 + $0x170] sm:$0xff] }
  0x33   :  { %1207 = vmatprep.subr.bf16.mxu0 %v1364_v28  ;;  %1239 = vmatprep.subr.bf16.mxu1 %v1364_v28  ;;  %v69_v28 = vld [vmem:[%s1966_s0 + $0xb8] sm:$0xff] }
  0x34   :  { %157 = vmatmul.mubr.f32.gmra.mrb[8].mxu0 %v54_v2  ;;  %314 = vmatmul.mubr.f32.gmra.mrb[8].mxu1 %v771_v3  ;;  %v803_v2 = vld [vmem:[%s1966_s0 + $0x210] sm:$0xff]  ;;  %v829_v3 = vld [vmem:[%s1966_s0 + $0x2e0] sm:$0xff] }
  0x35   :  { %161 = vmatprep.mubr.f32.mxu0 %v57_v4  ;;  %318 = vmatprep.mubr.f32.mxu1 %v774_v5  ;;  %v806_v4 = vld [vmem:[%s1966_s0 + $0x228] sm:$0xff]  ;;  %v832_v5 = vld [vmem:[%s1966_s0 + $0x2f8] sm:$0xff] }
  0x36   :  { %1209 = vmatpush3.bf16.msra.mxu0 %v1380_v33  ;;  %1241 = vmatpush3.bf16.msra.mxu1 %v1380_v33  ;;  %v788_v33 = vld [vmem:[%s1966_s0 + $0x198] sm:$0xff] }
  0x37   :  { %1211 = vmatprep.subr.bf16.mxu0 %v1384_v34  ;;  %1243 = vmatprep.subr.bf16.mxu1 %v1384_v34  ;;  %v70_v34 = vld [vmem:[%s1966_s0 + $0xc0] sm:$0xff] }
  0x38   :  { %162 = vmatmul.mubr.f32.gmra.mrb[10].mxu0 %v56_v6  ;;  %319 = vmatmul.mubr.f32.gmra.mrb[10].mxu1 %v773_v7  ;;  %v805_v6 = vld [vmem:[%s1966_s0 + $0x220] sm:$0xff]  ;;  %v831_v7 = vld [vmem:[%s1966_s0 + $0x2f0] sm:$0xff] }
  0x39   :  { %166 = vmatprep.mubr.f32.mxu0 %v59_v8  ;;  %323 = vmatprep.mubr.f32.mxu1 %v776_v9  ;;  %v808_v8 = vld [vmem:[%s1966_s0 + $0x238] sm:$0xff]  ;;  %v834_v9 = vld [vmem:[%s1966_s0 + $0x308] sm:$0xff] }
  0x3a   :  { %1213 = vmatpush3.bf16.msra.mxu0 %v1400_v39  ;;  %1245 = vmatpush3.bf16.msra.mxu1 %v1400_v39  ;;  %v815_v39 = vld [vmem:[%s1966_s0 + $0x270] sm:$0xff] }
  0x3b   :  { %1215 = vmatprep.subr.bf16.mxu0 %v1404_v40  ;;  %1247 = vmatprep.subr.bf16.mxu1 %v1404_v40  ;;  %v792_v40 = vld [vmem:[%s1966_s0 + $0x1b8] sm:$0xff] }
  0x3c   :  { %167 = vmatmul.mubr.f32.gmra.mrb[12].mxu0 %v58_v10  ;;  %324 = vmatmul.mubr.f32.gmra.mrb[12].mxu1 %v775_v11  ;;  %v807_v10 = vld [vmem:[%s1966_s0 + $0x230] sm:$0xff]  ;;  %v833_v11 = vld [vmem:[%s1966_s0 + $0x300] sm:$0xff] }
  0x3d   :  { %171 = vmatprep.mubr.f32.mxu0 %v61_v12  ;;  %328 = vmatprep.mubr.f32.mxu1 %v778_v13  ;;  %v810_v12 = vld [vmem:[%s1966_s0 + $0x248] sm:$0xff]  ;;  %v836_v13 = vld [vmem:[%s1966_s0 + $0x318] sm:$0xff] }
  0x3e   :  { %1217 = vmatpush3.bf16.msra.mxu0 %v1420_v45  ;;  %1249 = vmatpush3.bf16.msra.mxu1 %v1420_v45  ;;  %v820_v45 = vld [vmem:[%s1966_s0 + $0x298] sm:$0xff] }
  0x3f   :  { %1219 = vmatprep.subr.bf16.mxu0 %v1424_v46  ;;  %1251 = vmatprep.subr.bf16.mxu1 %v1424_v46  ;;  %v793_v46 = vld [vmem:[%s1966_s0 + $0x1c0] sm:$0xff] }
  0x40   :  { %172 = vmatmul.mubr.f32.gmra.mrb[14].mxu0 %v60_v14  ;;  %329 = vmatmul.mubr.f32.gmra.mrb[14].mxu1 %v777_v15  ;;  %v809_v14 = vld [vmem:[%s1966_s0 + $0x240] sm:$0xff]  ;;  %v835_v15 = vld [vmem:[%s1966_s0 + $0x310] sm:$0xff] }
  0x41   :  { %176 = vmatprep.mubr.f32.mxu0 %v63_v16  ;;  %333 = vmatprep.mubr.f32.mxu1 %v780_v17  ;;  %v812_v16 = vld [vmem:[%s1966_s0 + $0x258] sm:$0xff]  ;;  %v838_v17 = vld [vmem:[%s1966_s0 + $0x328] sm:$0xff] }
  0x42   :  { %1221 = vmatpush3.bf16.msra.mxu0 %v1434_v49  ;;  %1253 = vmatpush3.bf16.msra.mxu1 %v1434_v49  ;;  %v822_v49 = vld [vmem:[%s1966_s0 + $0x2a8] sm:$0xff] }
  0x44   :  { %177 = vmatmul.mubr.f32.gmra.mrb[16].mxu0 %v62_v18  ;;  %334 = vmatmul.mubr.f32.gmra.mrb[16].mxu1 %v779_v19  ;;  %v811_v18 = vld [vmem:[%s1966_s0 + $0x250] sm:$0xff]  ;;  %v837_v19 = vld [vmem:[%s1966_s0 + $0x320] sm:$0xff] }
  0x45   :  { %181 = vmatprep.mubr.f32.mxu0 %v65_v20  ;;  %338 = vmatprep.mubr.f32.mxu1 %v782_v21  ;;  %v814_v20 = vld [vmem:[%s1966_s0 + $0x268] sm:$0xff]  ;;  %v840_v21 = vld [vmem:[%s1966_s0 + $0x338] sm:$0xff] }
  0x48   :  { %182 = vmatmul.mubr.f32.gmra.mrb[18].mxu0 %v64_v22  ;;  %339 = vmatmul.mubr.f32.gmra.mrb[18].mxu1 %v781_v23  ;;  %v813_v22 = vld [vmem:[%s1966_s0 + $0x260] sm:$0xff]  ;;  %v839_v23 = vld [vmem:[%s1966_s0 + $0x330] sm:$0xff] }
  0x49   :  { %186 = vmatprep.mubr.f32.mxu0 %v67_v24  ;;  %343 = vmatprep.mubr.f32.mxu1 %v784_v25 }
  0x4c   :  { %187 = vmatmul.mubr.f32.gmra.mrb[20].mxu0 %v66_v26  ;;  %344 = vmatmul.mubr.f32.gmra.mrb[20].mxu1 %v783_v27 }
  0x4d   :  { %191 = vmatprep.mubr.f32.mxu0 %v69_v28  ;;  %348 = vmatprep.mubr.f32.mxu1 %v786_v29 }
  0x50   :  { %192 = vmatmul.mubr.f32.gmra.mrb[22].mxu0 %v68_v30  ;;  %349 = vmatmul.mubr.f32.gmra.mrb[22].mxu1 %v785_v31 }
  0x51   :  { %196 = vmatprep.mubr.f32.mxu0 %v71_v32  ;;  %353 = vmatprep.mubr.f32.mxu1 %v788_v33 }
  0x54   :  { %197 = vmatmul.mubr.f32.gmra.mrb[24].mxu0 %v70_v34  ;;  %354 = vmatmul.mubr.f32.gmra.mrb[24].mxu1 %v787_v35 }
  0x55   :  { %463 = vmatprep.mubr.f32.mxu0 %v790_v36  ;;  %633 = vmatprep.mubr.f32.mxu1 %v816_v37 }
  0x58   :  { %464 = vmatmul.mubr.f32.vlgmr.msra.gmra.mrb[26].mxu0 %v789_v38  ;;  %634 = vmatmul.mubr.f32.vlgmr.msra.gmra.mrb[26].mxu1 %v815_v39 }
  0x59   :  { %468 = vmatprep.mubr.f32.mxu0 %v792_v40  ;;  %638 = vmatprep.mubr.f32.mxu1 %v818_v41 }
  0x5c   :  { %469 = vmatmul.mubr.f32.gmra.mrb[28].mxu0 %v791_v42  ;;  %639 = vmatmul.mubr.f32.gmra.mrb[28].mxu1 %v817_v43 }
  0x5d   :  { %473 = vmatprep.mubr.f32.mxu0 %v794_v44  ;;  %643 = vmatprep.mubr.f32.mxu1 %v820_v45 }
  0x60   :  { %474 = vmatmul.mubr.f32.gmra.mrb[30].mxu0 %v793_v46  ;;  %644 = vmatmul.mubr.f32.gmra.mrb[30].mxu1 %v819_v47 }
  0x61   :  { %478 = vmatprep.mubr.f32.mxu0 %v796_v48  ;;  %648 = vmatprep.mubr.f32.mxu1 %v822_v49 }
  0x64   :  { %479 = vmatmul.mubr.f32.gmra.mrb[32].mxu0 %v795_v50  ;;  %649 = vmatmul.mubr.f32.gmra.mrb[32].mxu1 %v821_v51 }
  0x65   :  { %483 = vmatprep.mubr.f32.mxu0 %v798_v52  ;;  %653 = vmatprep.mubr.f32.mxu1 %v824_v53 }
  0x68   :  { %484 = vmatmul.mubr.f32.gmra.mrb[34].mxu0 %v797_v54  ;;  %654 = vmatmul.mubr.f32.gmra.mrb[34].mxu1 %v823_v55 }
  0x69   :  { %488 = vmatprep.mubr.f32.mxu0 %v800_v56  ;;  %658 = vmatprep.mubr.f32.mxu1 %v826_v57 }
  0x6c   :  { %489 = vmatmul.mubr.f32.gmra.mrb[36].mxu0 %v799_v58  ;;  %659 = vmatmul.mubr.f32.gmra.mrb[36].mxu1 %v825_v59 }
  0x6d   :  { %493 = vmatprep.mubr.f32.mxu0 %v802_v60  ;;  %663 = vmatprep.mubr.f32.mxu1 %v828_v61 }
  0x70   :  { %494 = vmatmul.mubr.f32.gmra.mrb[38].mxu0 %v801_v62  ;;  %664 = vmatmul.mubr.f32.gmra.mrb[38].mxu1 %v827_v63 }
  0x71   :  { %498 = vmatprep.mubr.f32.mxu0 %v804_v0  ;;  %668 = vmatprep.mubr.f32.mxu1 %v830_v1 }
  0x74   :  { %499 = vmatmul.mubr.f32.gmra.mrb[40].mxu0 %v803_v2  ;;  %669 = vmatmul.mubr.f32.gmra.mrb[40].mxu1 %v829_v3 }
  0x75   :  { %503 = vmatprep.mubr.f32.mxu0 %v806_v4  ;;  %673 = vmatprep.mubr.f32.mxu1 %v832_v5 }
  0x78   :  { %504 = vmatmul.mubr.f32.gmra.mrb[42].mxu0 %v805_v6  ;;  %674 = vmatmul.mubr.f32.gmra.mrb[42].mxu1 %v831_v7 }
  0x79   :  { %508 = vmatprep.mubr.f32.mxu0 %v808_v8  ;;  %678 = vmatprep.mubr.f32.mxu1 %v834_v9 }
  0x7c   :  { %509 = vmatmul.mubr.f32.gmra.mrb[44].mxu0 %v807_v10  ;;  %679 = vmatmul.mubr.f32.gmra.mrb[44].mxu1 %v833_v11 }
  0x7d   :  { %513 = vmatprep.mubr.f32.mxu0 %v810_v12  ;;  %683 = vmatprep.mubr.f32.mxu1 %v836_v13 }
  0x80   :  { %514 = vmatmul.mubr.f32.gmra.mrb[46].mxu0 %v809_v14  ;;  %684 = vmatmul.mubr.f32.gmra.mrb[46].mxu1 %v835_v15 }
  0x81   :  { %518 = vmatprep.mubr.f32.mxu0 %v812_v16  ;;  %688 = vmatprep.mubr.f32.mxu1 %v838_v17 }
  0x84   :  { %519 = vmatmul.mubr.f32.gmra.mrb[48].mxu0 %v811_v18  ;;  %689 = vmatmul.mubr.f32.gmra.mrb[48].mxu1 %v837_v19 }
  0x85   :  { %523 = vmatprep.mubr.f32.mxu0 %v814_v20  ;;  %693 = vmatprep.mubr.f32.mxu1 %v840_v21 }
  0x88   :  { %524 = vmatmul.mubr.f32.gmra.mrb[50].mxu0 %v813_v22  ;;  %694 = vmatmul.mubr.f32.gmra.mrb[50].mxu1 %v839_v23 }
  0xf7   :  { %v874_v24 = vpop.f32.mrb[0].mxu0  ;;  %v945_v25 = vpop.f32.mrb[0].mxu1 }
  0xf8   :  { %v875_v26 = vpop.f32.mrb[1].mxu0  ;;  %v946_v27 = vpop.f32.mrb[1].mxu1 }
  0xf9   :  { %v1778_v28 = vadd.f32 %v875_v26, %v874_v24  ;;  %v1780_v29 = vadd.f32 %v946_v27, %v945_v25 }
  0xfb   :  { %v359_v30 = vmax.f32 %v1778_v28, %v1780_v29  ;;  %v877_v31 = vpop.f32.mrb[2].mxu0  ;;  %v948_v32 = vpop.f32.mrb[2].mxu1 }
  0xfc   :  { %v878_v33 = vpop.f32.mrb[3].mxu0  ;;  %v949_v34 = vpop.f32.mrb[3].mxu1 }
  0xfd   :  { %v1784_v35 = vadd.f32 %v878_v33, %v877_v31  ;;  %v1786_v36 = vadd.f32 %v949_v34, %v948_v32 }
  0xff   :  { %v360_v37 = vmax.f32 %v1784_v35, %v1786_v36  ;;  %v880_v38 = vpop.f32.mrb[4].mxu0  ;;  %v951_v39 = vpop.f32.mrb[4].mxu1 }
 0x100   :  { %v881_v40 = vpop.f32.mrb[5].mxu0  ;;  %v952_v41 = vpop.f32.mrb[5].mxu1 }
 0x101   :  { %v1790_v42 = vadd.f32 %v881_v40, %v880_v38  ;;  %v1792_v43 = vadd.f32 %v952_v41, %v951_v39 }
 0x103   :  { %v361_v44 = vmax.f32 %v1790_v42, %v1792_v43  ;;  %v883_v45 = vpop.f32.mrb[6].mxu0  ;;  %v954_v46 = vpop.f32.mrb[6].mxu1 }
 0x104   :  { %v884_v47 = vpop.f32.mrb[7].mxu0  ;;  %v955_v48 = vpop.f32.mrb[7].mxu1 }
 0x105   :  { %v1796_v49 = vadd.f32 %v884_v47, %v883_v45  ;;  %v1798_v50 = vadd.f32 %v955_v48, %v954_v46 }
 0x107   :  { %v362_v51 = vmax.f32 %v1796_v49, %v1798_v50  ;;  %v886_v52 = vpop.f32.mrb[8].mxu0  ;;  %v957_v53 = vpop.f32.mrb[8].mxu1 }
 0x108   :  { %v887_v54 = vpop.f32.mrb[9].mxu0  ;;  %v958_v55 = vpop.f32.mrb[9].mxu1 }
 0x109   :  { %v1802_v56 = vadd.f32 %v887_v54, %v886_v52  ;;  %v1804_v57 = vadd.f32 %v958_v55, %v957_v53 }
 0x10b   :  { %v363_v58 = vmax.f32 %v1802_v56, %v1804_v57  ;;  %v889_v59 = vpop.f32.mrb[10].mxu0  ;;  %v960_v60 = vpop.f32.mrb[10].mxu1 }
 0x10c   :  { %v890_v61 = vpop.f32.mrb[11].mxu0  ;;  %v961_v62 = vpop.f32.mrb[11].mxu1 }
 0x10d   :  { %v1808_v63 = vadd.f32 %v890_v61, %v889_v59  ;;  %v1810_v0 = vadd.f32 %v961_v62, %v960_v60 }
 0x10f   :  { %v364_v1 = vmax.f32 %v1808_v63, %v1810_v0  ;;  %v892_v2 = vpop.f32.mrb[12].mxu0  ;;  %v963_v3 = vpop.f32.mrb[12].mxu1 }
 0x110   :  { %v893_v4 = vpop.f32.mrb[13].mxu0  ;;  %v964_v5 = vpop.f32.mrb[13].mxu1 }
 0x111   :  { %v1814_v6 = vadd.f32 %v893_v4, %v892_v2  ;;  %v1816_v7 = vadd.f32 %v964_v5, %v963_v3 }
 0x113   :  { %v365_v8 = vmax.f32 %v1814_v6, %v1816_v7  ;;  %v895_v9 = vpop.f32.mrb[14].mxu0  ;;  %v966_v10 = vpop.f32.mrb[14].mxu1 }
 0x114   :  { %v896_v11 = vpop.f32.mrb[15].mxu0  ;;  %v967_v12 = vpop.f32.mrb[15].mxu1 }
 0x115   :  { %v1820_v13 = vadd.f32 %v896_v11, %v895_v9  ;;  %v1822_v14 = vadd.f32 %v967_v12, %v966_v10 }
 0x117   :  { %v366_v15 = vmax.f32 %v1820_v13, %v1822_v14  ;;  %v898_v16 = vpop.f32.mrb[16].mxu0  ;;  %v969_v17 = vpop.f32.mrb[16].mxu1 }
 0x118   :  { %v899_v18 = vpop.f32.mrb[17].mxu0  ;;  %v970_v19 = vpop.f32.mrb[17].mxu1 }
 0x119   :  { %v1826_v20 = vadd.f32 %v899_v18, %v898_v16  ;;  %v1828_v21 = vadd.f32 %v970_v19, %v969_v17 }
 0x11b   :  { %v367_v22 = vmax.f32 %v1826_v20, %v1828_v21  ;;  %v901_v23 = vpop.f32.mrb[18].mxu0  ;;  %v972_v24 = vpop.f32.mrb[18].mxu1 }
 0x11c   :  { %v902_v25 = vpop.f32.mrb[19].mxu0  ;;  %v973_v26 = vpop.f32.mrb[19].mxu1 }
 0x11d   :  { %v1832_v27 = vadd.f32 %v902_v25, %v901_v23  ;;  %v1834_v31 = vadd.f32 %v973_v26, %v972_v24  ;;  %v1862_v23 = vld [vmem:[%s1967_s2] ss:$0 sm:$0xff] }
 0x11f   :  { %v368_v32 = vmax.f32 %v1832_v27, %v1834_v31  ;;  %v904_v33 = vpop.f32.mrb[20].mxu0  ;;  %v975_v34 = vpop.f32.mrb[20].mxu1 }
 0x120   :  { %v905_v38 = vpop.f32.mrb[21].mxu0  ;;  %v976_v39 = vpop.f32.mrb[21].mxu1 }
 0x121   :  { %v1838_v40 = vadd.f32 %v905_v38, %v904_v33  ;;  %v1840_v41 = vadd.f32 %v976_v39, %v975_v34 }
 0x123   :  { %v369_v45 = vmax.f32 %v1838_v40, %v1840_v41  ;;  %v907_v46 = vpop.f32.mrb[22].mxu0  ;;  %v978_v47 = vpop.f32.mrb[22].mxu1 }
 0x124   :  { %v908_v48 = vpop.f32.mrb[23].mxu0  ;;  %v979_v52 = vpop.f32.mrb[23].mxu1 }
 0x125   :  { %v1844_v53 = vadd.f32 %v908_v48, %v907_v46  ;;  %v1846_v54 = vadd.f32 %v979_v52, %v978_v47 }
 0x127   :  { %v370_v55 = vmax.f32 %v1844_v53, %v1846_v54  ;;  %v910_v59 = vpop.f32.mrb[24].mxu0  ;;  %v981_v60 = vpop.f32.mrb[24].mxu1 }
 0x128   :  { %v911_v61 = vpop.f32.mrb[25].mxu0  ;;  %v982_v62 = vpop.f32.mrb[25].mxu1 }
 0x129   :  { %v1850_v2 = vadd.f32 %v911_v61, %v910_v59  ;;  %v1852_v3 = vadd.f32 %v982_v62, %v981_v60 }
 0x12b   :  { %v371_v4 = vmax.f32 %v1850_v2, %v1852_v3  ;;  %v1016_v5 = vpop.f32.mrb[26].mxu0  ;;  %v1087_v9 = vpop.f32.mrb[26].mxu1 }
 0x12c   :  { %v1017_v10 = vpop.f32.mrb[27].mxu0  ;;  %v1088_v11 = vpop.f32.mrb[27].mxu1 }
 0x12d   :  { %v1018_v12 = vadd.f32 %v1017_v10, %v1016_v5  ;;  %v1089_v16 = vadd.f32 %v1088_v11, %v1087_v9 }
 0x12f   :  { %v529_v17 = vmax.f32 %v359_v30, %v1018_v12  ;;  %v1019_v18 = vpop.f32.mrb[28].mxu0  ;;  %v1090_v19 = vpop.f32.mrb[28].mxu1 }
 0x130   :  { %v1020_v24 = vpop.f32.mrb[29].mxu0  ;;  %v1091_v25 = vpop.f32.mrb[29].mxu1 }
 0x131   :  { %v699_v26 = vmax.f32 %v529_v17, %v1089_v16  ;;  %v1021_v33 = vadd.f32 %v1020_v24, %v1019_v18  ;;  %v1092_v34 = vadd.f32 %v1091_v25, %v1090_v19 }
 0x133   :  { %v719_v38 = vadd.f32 %v1862_v23, %v699_v26  ;;  %v530_v39 = vmax.f32 %v360_v37, %v1021_v33  ;;  %v1022_v28 = vpop.f32.mrb[30].mxu0  ;;  %v1093_v29 = vpop.f32.mrb[30].mxu1 }
 0x134   :  { %v1023_v30 = vpop.f32.mrb[31].mxu0  ;;  %v1094_v46 = vpop.f32.mrb[31].mxu1 }
 0x135   :  { %v732_v47 = vmax.f32 %v719_v38, 0.0  ;;  %v700_v48 = vmax.f32 %v530_v39, %v1092_v34  ;;  %v1024_v52 = vadd.f32 %v1023_v30, %v1022_v28  ;;  %v1095_v59 = vadd.f32 %v1094_v46, %v1093_v29 }
 0x137   :  { %746 = vst.msk [vmem:[%s1968_s3] sm:$0xff] %vm745_vm0, %v732_v47  ;;  %v720_v60 = vadd.f32 %v1862_v23, %v700_v48  ;;  %v531_v35 = vmax.f32 %v361_v44, %v1024_v52  ;;  %v1025_v36 = vpop.f32.mrb[32].mxu0  ;;  %v1096_v37 = vpop.f32.mrb[32].mxu1 }
 0x138   :  { %v1026_v61 = vpop.f32.mrb[33].mxu0  ;;  %v1097_v62 = vpop.f32.mrb[33].mxu1 }
 0x139   :  { %v733_v5 = vmax.f32 %v720_v60, 0.0  ;;  %v701_v9 = vmax.f32 %v531_v35, %v1095_v59  ;;  %v1027_v10 = vadd.f32 %v1026_v61, %v1025_v36  ;;  %v1098_v11 = vadd.f32 %v1097_v62, %v1096_v37 }
 0x13b   :  { %747 = vst.msk [vmem:[%s1968_s3 + $0x8] sm:$0xff] %vm745_vm0, %v733_v5  ;;  %v721_v12 = vadd.f32 %v1862_v23, %v701_v9  ;;  %v532_v42 = vmax.f32 %v362_v51, %v1027_v10  ;;  %v1028_v43 = vpop.f32.mrb[34].mxu0  ;;  %v1099_v44 = vpop.f32.mrb[34].mxu1 }
 0x13c   :  { %v1029_v16 = vpop.f32.mrb[35].mxu0  ;;  %v1100_v17 = vpop.f32.mrb[35].mxu1 }
 0x13d   :  { %v734_v18 = vmax.f32 %v721_v12, 0.0  ;;  %v702_v19 = vmax.f32 %v532_v42, %v1098_v11  ;;  %v1030_v24 = vadd.f32 %v1029_v16, %v1028_v43  ;;  %v1101_v25 = vadd.f32 %v1100_v17, %v1099_v44 }
 0x13f   :  { %748 = vst.msk [vmem:[%s1968_s3 + $0x10] sm:$0xff] %vm745_vm0, %v734_v18  ;;  %v722_v26 = vadd.f32 %v1862_v23, %v702_v19  ;;  %v533_v49 = vmax.f32 %v363_v58, %v1030_v24  ;;  %v1031_v50 = vpop.f32.mrb[36].mxu0  ;;  %v1102_v51 = vpop.f32.mrb[36].mxu1 }
 0x140   :  { %v1032_v33 = vpop.f32.mrb[37].mxu0  ;;  %v1103_v34 = vpop.f32.mrb[37].mxu1 }
 0x141   :  { %v735_v38 = vmax.f32 %v722_v26, 0.0  ;;  %v703_v39 = vmax.f32 %v533_v49, %v1101_v25  ;;  %v1033_v28 = vadd.f32 %v1032_v33, %v1031_v50  ;;  %v1104_v29 = vadd.f32 %v1103_v34, %v1102_v51 }
 0x143   :  { %749 = vst.msk [vmem:[%s1968_s3 + $0x18] sm:$0xff] %vm745_vm0, %v735_v38  ;;  %v723_v30 = vadd.f32 %v1862_v23, %v703_v39  ;;  %v534_v56 = vmax.f32 %v364_v1, %v1033_v28  ;;  %v1034_v57 = vpop.f32.mrb[38].mxu0  ;;  %v1105_v58 = vpop.f32.mrb[38].mxu1 }
 0x144   :  { %v1035_v46 = vpop.f32.mrb[39].mxu0  ;;  %v1106_v47 = vpop.f32.mrb[39].mxu1 }
 0x145   :  { %v736_v48 = vmax.f32 %v723_v30, 0.0  ;;  %v704_v52 = vmax.f32 %v534_v56, %v1104_v29  ;;  %v1036_v59 = vadd.f32 %v1035_v46, %v1034_v57  ;;  %v1107_v60 = vadd.f32 %v1106_v47, %v1105_v58 }
 0x147   :  { %750 = vst.msk [vmem:[%s1968_s3 + $0x20] sm:$0xff] %vm745_vm0, %v736_v48  ;;  %v724_v35 = vadd.f32 %v1862_v23, %v704_v52  ;;  %v535_v63 = vmax.f32 %v365_v8, %v1036_v59  ;;  %v1037_v0 = vpop.f32.mrb[40].mxu0  ;;  %v1108_v1 = vpop.f32.mrb[40].mxu1 }
 0x148   :  { %v1038_v36 = vpop.f32.mrb[41].mxu0  ;;  %v1109_v37 = vpop.f32.mrb[41].mxu1 }
 0x149   :  { %v737_v61 = vmax.f32 %v724_v35, 0.0  ;;  %v705_v62 = vmax.f32 %v535_v63, %v1107_v60  ;;  %v1039_v5 = vadd.f32 %v1038_v36, %v1037_v0  ;;  %v1110_v9 = vadd.f32 %v1109_v37, %v1108_v1 }
 0x14b   :  { %751 = vst.msk [vmem:[%s1968_s3 + $0x28] sm:$0xff] %vm745_vm0, %v737_v61  ;;  %v725_v10 = vadd.f32 %v1862_v23, %v705_v62  ;;  %v536_v6 = vmax.f32 %v366_v15, %v1039_v5  ;;  %v1040_v7 = vpop.f32.mrb[42].mxu0  ;;  %v1111_v8 = vpop.f32.mrb[42].mxu1 }
 0x14c   :  { %v1041_v11 = vpop.f32.mrb[43].mxu0  ;;  %v1112_v12 = vpop.f32.mrb[43].mxu1 }
 0x14d   :  { %v738_v42 = vmax.f32 %v725_v10, 0.0  ;;  %v706_v43 = vmax.f32 %v536_v6, %v1110_v9  ;;  %v1042_v44 = vadd.f32 %v1041_v11, %v1040_v7  ;;  %v1113_v16 = vadd.f32 %v1112_v12, %v1111_v8 }
 0x14f   :  { %752 = vst.msk [vmem:[%s1968_s3 + $0x30] sm:$0xff] %vm745_vm0, %v738_v42  ;;  %v726_v17 = vadd.f32 %v1862_v23, %v706_v43  ;;  %v537_v13 = vmax.f32 %v367_v22, %v1042_v44  ;;  %v1043_v14 = vpop.f32.mrb[44].mxu0  ;;  %v1114_v15 = vpop.f32.mrb[44].mxu1 }
 0x150   :  { %v1044_v18 = vpop.f32.mrb[45].mxu0  ;;  %v1115_v19 = vpop.f32.mrb[45].mxu1 }
 0x151   :  { %v739_v24 = vmax.f32 %v726_v17, 0.0  ;;  %v707_v25 = vmax.f32 %v537_v13, %v1113_v16  ;;  %v1045_v26 = vadd.f32 %v1044_v18, %v1043_v14  ;;  %v1116_v49 = vadd.f32 %v1115_v19, %v1114_v15 }
 0x153   :  { %753 = vst.msk [vmem:[%s1968_s3 + $0x38] sm:$0xff] %vm745_vm0, %v739_v24  ;;  %v727_v50 = vadd.f32 %v1862_v23, %v707_v25  ;;  %v538_v20 = vmax.f32 %v368_v32, %v1045_v26  ;;  %v1046_v21 = vpop.f32.mrb[46].mxu0  ;;  %v1117_v22 = vpop.f32.mrb[46].mxu1 }
 0x154   :  { %v1047_v51 = vpop.f32.mrb[47].mxu0  ;;  %v1118_v33 = vpop.f32.mrb[47].mxu1 }
 0x155   :  { %v740_v34 = vmax.f32 %v727_v50, 0.0  ;;  %v708_v38 = vmax.f32 %v538_v20, %v1116_v49  ;;  %v1048_v39 = vadd.f32 %v1047_v51, %v1046_v21  ;;  %v1119_v28 = vadd.f32 %v1118_v33, %v1117_v22 }
 0x157   :  { %754 = vst.msk [vmem:[%s1968_s3 + $0x40] sm:$0xff] %vm745_vm0, %v740_v34  ;;  %v728_v29 = vadd.f32 %v1862_v23, %v708_v38  ;;  %v539_v27 = vmax.f32 %v369_v45, %v1048_v39  ;;  %v1049_v31 = vpop.f32.mrb[48].mxu0  ;;  %v1120_v32 = vpop.f32.mrb[48].mxu1 }
 0x158   :  { %v1050_v30 = vpop.f32.mrb[49].mxu0  ;;  %v1121_v56 = vpop.f32.mrb[49].mxu1 }
 0x159   :  { %v741_v57 = vmax.f32 %v728_v29, 0.0  ;;  %v709_v58 = vmax.f32 %v539_v27, %v1119_v28  ;;  %v1051_v46 = vadd.f32 %v1050_v30, %v1049_v31  ;;  %v1122_v47 = vadd.f32 %v1121_v56, %v1120_v32 }
 0x15b   :  { %755 = vst.msk [vmem:[%s1968_s3 + $0x48] sm:$0xff] %vm745_vm0, %v741_v57  ;;  %v729_v48 = vadd.f32 %v1862_v23, %v709_v58  ;;  %v540_v40 = vmax.f32 %v370_v55, %v1051_v46  ;;  %v1052_v41 = vpop.f32.mrb[50].mxu0  ;;  %v1123_v45 = vpop.f32.mrb[50].mxu1 }
 0x15c   :  { %v1053_v52 = vpop.f32.mrb[51].mxu0  ;;  %v1124_v59 = vpop.f32.mrb[51].mxu1 }
 0x15d   :  { %v742_v60 = vmax.f32 %v729_v48, 0.0  ;;  %v710_v35 = vmax.f32 %v540_v40, %v1122_v47  ;;  %v1054_v63 = vadd.f32 %v1053_v52, %v1052_v41  ;;  %v1125_v0 = vadd.f32 %v1124_v59, %v1123_v45 }
 0x15f   :  { %756 = vst.msk [vmem:[%s1968_s3 + $0x50] sm:$0xff] %vm745_vm0, %v742_v60  ;;  %v730_v1 = vadd.f32 %v1862_v23, %v710_v35  ;;  %v541_v53 = vmax.f32 %v371_v4, %v1054_v63 }
 0x161   :  { %v743_v54 = vmax.f32 %v730_v1, 0.0  ;;  %v711_v55 = vmax.f32 %v541_v53, %v1125_v0 }
 0x163   :  { %757 = vst.msk [vmem:[%s1968_s3 + $0x58] sm:$0xff] %vm745_vm0, %v743_v54  ;;  %v731_v36 = vadd.f32 %v1862_v23, %v711_v55 }
 0x165   :  { %v744_v37 = vmax.f32 %v731_v36, 0.0 }
 0x167   :  { %758 = vst.msk [vmem:[%s1968_s3 + $0x60] sm:$0xff] %vm745_vm0, %v744_v37 }

// kernel: net_forward.5
= control target key start
LH: loop header
LB: loop body
LE: loop exit
PB: predicated region body
PF: predicated region fallthrough
CT: control target
= control target key end

     0   :  { %vm2615_vm0 = vmmov 0   ;;  %vm1394_vm1 = vcmask 7168   ;;  %s3513_s1 = inlined_call_operand.vmem [shape: f32[896,128], index: 1, kind: input, shape index: {}]   ;;  %s3514_s0 = inlined_call_operand.vmem [shape: f32[4,8,896], index: 0, kind: input, shape index: {}]   ;;  %s3515_s3 = inlined_call_operand.vmem [shape: f32[128,128], index: 3, kind: input, shape index: {}]   ;;  %s3516_s2 = inlined_call_operand.vmem [shape: f32[1,128], index: 2, kind: input, shape index: {}]   ;;  %s3517_s4 = inlined_call_operand.vmem [shape: f32[1,128], index: 4, kind: input, shape index: {}]   ;;  %s3518_s5 = inlined_call_operand.vmem [shape: f32[8,1], index: 5, kind: output, shape index: {}]  }
   0x1   :  { %v36_v0 = vld [vmem:[%s3513_s1 + $0x80] sm:$0xff]  ;;  %v37_v1 = vld [vmem:[%s3513_s1 + $0x88] sm:$0xff]  ;;  %v38_v11 = vld [vmem:[%s3513_s1 + $0x90] sm:$0xff] }
   0x2   :  { %v68_v2 = vld [vmem:[%s3513_s1 + $0x180] sm:$0xff]  ;;  %v2656_v3 = vpack.c.bf16 %v37_v1, %v36_v0  ;;  %v69_v4 = vld [vmem:[%s3513_s1 + $0x188] sm:$0xff]  ;;  %v39_v13 = vld [vmem:[%s3513_s1 + $0x98] sm:$0xff] }
   0x3   :  { %v20_v5 = vld [vmem:[%s3513_s1] sm:$0xff]  ;;  %v21_v6 = vld [vmem:[%s3513_s1 + $0x8] sm:$0xff]  ;;  %v2667_v7 = vpack.c.bf16 %v69_v4, %v68_v2  ;;  %v70_v14 = vld [vmem:[%s3513_s1 + $0x190] sm:$0xff]  ;;  %v2694_v16 = vpack.c.bf16 %v39_v13, %v38_v11 }
   0x4   :  { %v2669_v8 = vpack.c.bf16 %v21_v6, %v20_v5  ;;  %v52_v9 = vld [vmem:[%s3513_s1 + $0x100] sm:$0xff]  ;;  %v53_v10 = vld [vmem:[%s3513_s1 + $0x108] sm:$0xff]  ;;  %2104 = vmatprep.subr.bf16.mxu0 %v2656_v3  ;;  %v71_v15 = vld [vmem:[%s3513_s1 + $0x198] sm:$0xff] }
   0x5   :  { %v2681_v12 = vpack.c.bf16 %v53_v10, %v52_v9  ;;  %2136 = vmatprep.subr.bf16.mxu1 %v2667_v7  ;;  %v2696_v17 = vpack.c.bf16 %v71_v15, %v70_v14  ;;  %v22_v18 = vld [vmem:[%s3513_s1 + $0x10] sm:$0xff]  ;;  %v23_v19 = vld [vmem:[%s3513_s1 + $0x18] sm:$0xff]  ;;  %v40_v23 = vld [vmem:[%s3513_s1 + $0xa0] sm:$0xff] }
   0x6   :  { %2106 = vmatpush3.bf16.msra.mxu0 %v2669_v8  ;;  %v54_v20 = vld [vmem:[%s3513_s1 + $0x110] sm:$0xff]  ;;  %v2708_v21 = vpack.c.bf16 %v23_v19, %v22_v18  ;;  %v55_v22 = vld [vmem:[%s3513_s1 + $0x118] sm:$0xff]  ;;  %v41_v24 = vld [vmem:[%s3513_s1 + $0xa8] sm:$0xff] }
   0x7   :  { %2138 = vmatpush3.bf16.msra.mxu1 %v2681_v12  ;;  %2108 = vmatprep.subr.bf16.mxu0 %v2694_v16  ;;  %v2721_v25 = vpack.c.bf16 %v55_v22, %v54_v20  ;;  %v2723_v26 = vpack.c.bf16 %v41_v24, %v40_v23  ;;  %v72_v27 = vld [vmem:[%s3513_s1 + $0x1a0] sm:$0xff]  ;;  %v73_v28 = vld [vmem:[%s3513_s1 + $0x1a8] sm:$0xff]  ;;  %v42_v35 = vld [vmem:[%s3513_s1 + $0xb0] sm:$0xff] }
   0x8   :  { %2140 = vmatprep.subr.bf16.mxu1 %v2696_v17  ;;  %v24_v29 = vld [vmem:[%s3513_s1 + $0x20] sm:$0xff]  ;;  %v2734_v30 = vpack.c.bf16 %v73_v28, %v72_v27  ;;  %v25_v31 = vld [vmem:[%s3513_s1 + $0x28] sm:$0xff]  ;;  %v43_v36 = vld [vmem:[%s3513_s1 + $0xb8] sm:$0xff] }
   0x9   :  { %v56_v32 = vld [vmem:[%s3513_s1 + $0x120] sm:$0xff]  ;;  %v57_v33 = vld [vmem:[%s3513_s1 + $0x128] sm:$0xff]  ;;  %v2746_v34 = vpack.c.bf16 %v25_v31, %v24_v29  ;;  %v74_v37 = vld [vmem:[%s3513_s1 + $0x1b0] sm:$0xff]  ;;  %v2761_v39 = vpack.c.bf16 %v43_v36, %v42_v35 }
   0xa   :  { %2110 = vmatpush3.bf16.msra.mxu0 %v2708_v21  ;;  %v2759_v38 = vpack.c.bf16 %v57_v33, %v56_v32  ;;  %v75_v40 = vld [vmem:[%s3513_s1 + $0x1b8] sm:$0xff]  ;;  %v26_v41 = vld [vmem:[%s3513_s1 + $0x30] sm:$0xff]  ;;  %v44_v46 = vld [vmem:[%s3513_s1 + $0xc0] sm:$0xff] }
   0xb   :  { %2142 = vmatpush3.bf16.msra.mxu1 %v2721_v25  ;;  %2112 = vmatprep.subr.bf16.mxu0 %v2723_v26  ;;  %v27_v42 = vld [vmem:[%s3513_s1 + $0x38] sm:$0xff]  ;;  %v2773_v43 = vpack.c.bf16 %v75_v40, %v74_v37  ;;  %v58_v44 = vld [vmem:[%s3513_s1 + $0x130] sm:$0xff]  ;;  %v45_v47 = vld [vmem:[%s3513_s1 + $0xc8] sm:$0xff] }
   0xc   :  { %2144 = vmatprep.subr.bf16.mxu1 %v2734_v30  ;;  %v59_v45 = vld [vmem:[%s3513_s1 + $0x138] sm:$0xff]  ;;  %v76_v48 = vld [vmem:[%s3513_s1 + $0x1c0] sm:$0xff]  ;;  %v77_v49 = vld [vmem:[%s3513_s1 + $0x1c8] sm:$0xff]  ;;  %v2794_v50 = vpack.c.bf16 %v27_v42, %v26_v41  ;;  %v2800_v52 = vpack.c.bf16 %v45_v47, %v44_v46 }
   0xd   :  { %v2798_v51 = vpack.c.bf16 %v59_v45, %v58_v44  ;;  %v28_v53 = vld [vmem:[%s3513_s1 + $0x40] sm:$0xff]  ;;  %v29_v54 = vld [vmem:[%s3513_s1 + $0x48] sm:$0xff]  ;;  %v2812_v56 = vpack.c.bf16 %v77_v49, %v76_v48  ;;  %v46_v58 = vld [vmem:[%s3513_s1 + $0xd0] sm:$0xff] }
   0xe   :  { %2114 = vmatpush3.bf16.msra.mxu0 %v2746_v34  ;;  %v60_v55 = vld [vmem:[%s3513_s1 + $0x140] sm:$0xff]  ;;  %v61_v57 = vld [vmem:[%s3513_s1 + $0x148] sm:$0xff]  ;;  %v47_v59 = vld [vmem:[%s3513_s1 + $0xd8] sm:$0xff]  ;;  %v2830_v62 = vpack.c.bf16 %v29_v54, %v28_v53 }
   0xf   :  { %2146 = vmatpush3.bf16.msra.mxu1 %v2759_v38  ;;  %2116 = vmatprep.subr.bf16.mxu0 %v2761_v39  ;;  %v78_v60 = vld [vmem:[%s3513_s1 + $0x1d0] sm:$0xff]  ;;  %v79_v61 = vld [vmem:[%s3513_s1 + $0x1d8] sm:$0xff]  ;;  %v2834_v63 = vpack.c.bf16 %v61_v57, %v60_v55  ;;  %v2836_v0 = vpack.c.bf16 %v47_v59, %v46_v58  ;;  %v48_v9 = vld [vmem:[%s3513_s1 + $0xe0] sm:$0xff] }
  0x10   :  { %2148 = vmatprep.subr.bf16.mxu1 %v2773_v43  ;;  %v30_v1 = vld [vmem:[%s3513_s1 + $0x50] sm:$0xff]  ;;  %v31_v2 = vld [vmem:[%s3513_s1 + $0x58] sm:$0xff]  ;;  %v2848_v5 = vpack.c.bf16 %v79_v61, %v78_v60  ;;  %v49_v10 = vld [vmem:[%s3513_s1 + $0xe8] sm:$0xff] }
  0x11   :  { %v62_v4 = vld [vmem:[%s3513_s1 + $0x150] sm:$0xff]  ;;  %v63_v6 = vld [vmem:[%s3513_s1 + $0x158] sm:$0xff]  ;;  %v80_v11 = vld [vmem:[%s3513_s1 + $0x1e0] sm:$0xff]  ;;  %v2866_v14 = vpack.c.bf16 %v31_v2, %v30_v1  ;;  %v2878_v20 = vpack.c.bf16 %v49_v10, %v48_v9 }
  0x12   :  { %2118 = vmatpush3.bf16.msra.mxu0 %v2794_v50  ;;  %v81_v13 = vld [vmem:[%s3513_s1 + $0x1e8] sm:$0xff]  ;;  %v32_v15 = vld [vmem:[%s3513_s1 + $0x60] sm:$0xff]  ;;  %v2876_v19 = vpack.c.bf16 %v63_v6, %v62_v4  ;;  %v135_v24 = vld [vmem:[%s3514_s0 + $0x18] sm:$0xff] }
  0x13   :  { %2150 = vmatpush3.bf16.msra.mxu1 %v2798_v51  ;;  %2120 = vmatprep.subr.bf16.mxu0 %v2800_v52  ;;  %v33_v18 = vld [vmem:[%s3513_s1 + $0x68] sm:$0xff]  ;;  %v64_v22 = vld [vmem:[%s3513_s1 + $0x160] sm:$0xff]  ;;  %v2890_v27 = vpack.c.bf16 %v81_v13, %v80_v11  ;;  %v50_v29 = vld [vmem:[%s3513_s1 + $0xf0] sm:$0xff]  ;;  %v2614_v13 = vmov 0.0|0.0  }
  0x14   :  { %2152 = vmatprep.subr.bf16.mxu1 %v2812_v56  ;;  %v133_v23 = vld [vmem:[%s3514_s0 + $0x8] sm:$0xff]  ;;  %v51_v31 = vld [vmem:[%s3513_s1 + $0xf8] sm:$0xff]  ;;  %v82_v32 = vld [vmem:[%s3513_s1 + $0x1f0] sm:$0xff]  ;;  %273 = vmatprep.mubr.f32.mxu1 %v135_v24  ;;  %v2908_v35 = vpack.c.bf16 %v33_v18, %v32_v15 }
  0x15   :  { %v65_v28 = vld [vmem:[%s3513_s1 + $0x168] sm:$0xff]  ;;  %203 = vmatprep.mubr.f32.mxu0 %v133_v23  ;;  %v83_v33 = vld [vmem:[%s3513_s1 + $0x1f8] sm:$0xff]  ;;  %v2914_v37 = vpack.c.bf16 %v51_v31, %v50_v29  ;;  %v34_v40 = vld [vmem:[%s3513_s1 + $0x70] sm:$0xff] }
  0x16   :  { %2122 = vmatpush3.bf16.msra.mxu0 %v2830_v62  ;;  %v2912_v36 = vpack.c.bf16 %v65_v28, %v64_v22  ;;  %v35_v41 = vld [vmem:[%s3513_s1 + $0x78] sm:$0xff]  ;;  %v66_v42 = vld [vmem:[%s3513_s1 + $0x170] sm:$0xff]  ;;  %v2926_v44 = vpack.c.bf16 %v83_v33, %v82_v32  ;;  %v100_v46 = vld [vmem:[%s3513_s1 + $0x280] sm:$0xff] }
  0x17   :  { %2154 = vmatpush3.bf16.msra.mxu1 %v2834_v63  ;;  %2124 = vmatprep.subr.bf16.mxu0 %v2836_v0  ;;  %v67_v45 = vld [vmem:[%s3513_s1 + $0x178] sm:$0xff]  ;;  %v101_v47 = vld [vmem:[%s3513_s1 + $0x288] sm:$0xff]  ;;  %v2938_v48 = vpack.c.bf16 %v35_v41, %v34_v40  ;;  %v84_v54 = vld [vmem:[%s3513_s1 + $0x200] sm:$0xff] }
  0x18   :  { %2156 = vmatprep.subr.bf16.mxu1 %v2848_v5  ;;  %v2942_v49 = vpack.c.bf16 %v67_v45, %v66_v42  ;;  %v2944_v53 = vpack.c.bf16 %v101_v47, %v100_v46  ;;  %v85_v55 = vld [vmem:[%s3513_s1 + $0x208] sm:$0xff]  ;;  %v116_v57 = vld [vmem:[%s3513_s1 + $0x300] sm:$0xff]  ;;  %v102_v59 = vld [vmem:[%s3513_s1 + $0x290] sm:$0xff]  ;;  %v2616_v45 = vmov 0.0  }
  0x19   :  { %v117_v58 = vld [vmem:[%s3513_s1 + $0x308] sm:$0xff]  ;;  %v103_v60 = vld [vmem:[%s3513_s1 + $0x298] sm:$0xff]  ;;  %v132_v61 = vld [vmem:[%s3514_s0] sm:$0xff]  ;;  %v2972_v2 = vpack.c.bf16 %v85_v55, %v84_v54 }
  0x1a   :  { %2126 = vmatpush3.bf16.msra.mxu0 %v2866_v14  ;;  %v134_v1 = vld [vmem:[%s3514_s0 + $0x10] sm:$0xff]  ;;  %v2976_v4 = vpack.c.bf16 %v117_v58, %v116_v57  ;;  %v2978_v6 = vpack.c.bf16 %v103_v60, %v102_v59  ;;  %v87_v10 = vld [vmem:[%s3513_s1 + $0x218] sm:$0xff]  ;;  %v104_v18 = vld [vmem:[%s3513_s1 + $0x2a0] sm:$0xff] }
  0x1b   :  { %2158 = vmatpush3.bf16.msra.mxu1 %v2876_v19  ;;  %2128 = vmatprep.subr.bf16.mxu0 %v2878_v20  ;;  %v86_v9 = vld [vmem:[%s3513_s1 + $0x210] sm:$0xff]  ;;  %v119_v15 = vld [vmem:[%s3513_s1 + $0x318] sm:$0xff]  ;;  %v105_v22 = vld [vmem:[%s3513_s1 + $0x2a8] sm:$0xff] }
  0x1c   :  { %2160 = vmatprep.subr.bf16.mxu1 %v2890_v27  ;;  %v118_v11 = vld [vmem:[%s3513_s1 + $0x310] sm:$0xff]  ;;  %v3000_v23 = vpack.c.bf16 %v87_v10, %v86_v9  ;;  %v88_v24 = vld [vmem:[%s3513_s1 + $0x220] sm:$0xff]  ;;  %v3009_v29 = vpack.c.bf16 %v105_v22, %v104_v18  ;;  %v89_v31 = vld [vmem:[%s3513_s1 + $0x228] sm:$0xff] }
  0x1d   :  { %v3007_v28 = vpack.c.bf16 %v119_v15, %v118_v11  ;;  %v120_v32 = vld [vmem:[%s3513_s1 + $0x320] sm:$0xff]  ;;  %v121_v33 = vld [vmem:[%s3513_s1 + $0x328] sm:$0xff]  ;;  %v106_v40 = vld [vmem:[%s3513_s1 + $0x2b0] sm:$0xff]  ;;  %v3033_v46 = vpack.c.bf16 %v89_v31, %v88_v24 }
  0x1e   :  { %2130 = vmatpush3.bf16.msra.mxu0 %v2908_v35  ;;  %v107_v41 = vld [vmem:[%s3513_s1 + $0x2b8] sm:$0xff]  ;;  %v137_v42 = vld [vmem:[%s3514_s0 + $0x28] sm:$0xff]  ;;  %v3037_v47 = vpack.c.bf16 %v121_v33, %v120_v32  ;;  %v90_v55 = vld [vmem:[%s3513_s1 + $0x230] sm:$0xff] }
  0x1f   :  { %2162 = vmatpush3.bf16.msra.mxu1 %v2912_v36  ;;  %2132 = vmatprep.subr.bf16.mxu0 %v2914_v37  ;;  %v3039_v54 = vpack.c.bf16 %v107_v41, %v106_v40  ;;  %v91_v57 = vld [vmem:[%s3513_s1 + $0x238] sm:$0xff]  ;;  %v122_v58 = vld [vmem:[%s3513_s1 + $0x330] sm:$0xff]  ;;  %v108_v60 = vld [vmem:[%s3513_s1 + $0x2c0] sm:$0xff] }
  0x20   :  { %2164 = vmatprep.subr.bf16.mxu1 %v2926_v44  ;;  %v123_v59 = vld [vmem:[%s3513_s1 + $0x338] sm:$0xff]  ;;  %v92_v11 = vld [vmem:[%s3513_s1 + $0x240] sm:$0xff]  ;;  %v93_v15 = vld [vmem:[%s3513_s1 + $0x248] sm:$0xff] }
  0x21   :  { %v3065_v9 = vpack.c.bf16 %v123_v59, %v122_v58  ;;  %v124_v18 = vld [vmem:[%s3513_s1 + $0x340] sm:$0xff]  ;;  %v125_v22 = vld [vmem:[%s3513_s1 + $0x348] sm:$0xff]  ;;  %v110_v24 = vld [vmem:[%s3513_s1 + $0x2d0] sm:$0xff]  ;;  %v3089_v32 = vpack.c.bf16 %v93_v15, %v92_v11 }
  0x22   :  { %2134 = vmatpush3.bf16.msra.mxu0 %v2938_v48  ;;  %v111_v31 = vld [vmem:[%s3513_s1 + $0x2d8] sm:$0xff]  ;;  %v3093_v33 = vpack.c.bf16 %v125_v22, %v124_v18  ;;  %v94_v41 = vld [vmem:[%s3513_s1 + $0x250] sm:$0xff]  ;;  %v112_v58 = vld [vmem:[%s3513_s1 + $0x2e0] sm:$0xff] }
  0x23   :  { %2166 = vmatpush3.bf16.msra.mxu1 %v2942_v49  ;;  %2168 = vmatprep.subr.bf16.mxu0 %v2944_v53  ;;  %v3095_v40 = vpack.c.bf16 %v111_v31, %v110_v24  ;;  %v113_v59 = vld [vmem:[%s3513_s1 + $0x2e8] sm:$0xff]  ;;  %v96_v15 = vld [vmem:[%s3513_s1 + $0x260] sm:$0xff]  ;;  %v114_v31 = vld [vmem:[%s3513_s1 + $0x2f0] sm:$0xff] }
  0x24   :  { %2199 = vmatprep.subr.bf16.mxu1 %v2614_v13  ;;  %v3123_v11 = vpack.c.bf16 %v113_v59, %v112_v58  ;;  %v97_v18 = vld [vmem:[%s3513_s1 + $0x268] sm:$0xff]  ;;  %v128_v22 = vld [vmem:[%s3513_s1 + $0x360] sm:$0xff]  ;;  %v98_v58 = vld [vmem:[%s3513_s1 + $0x270] sm:$0xff] }
  0x25   :  { %204 = vmatmul.mubr.f32.vlgmr.msra.gmra.mrb[0].mxu0 %v132_v61  ;;  %v109_v61 = vld [vmem:[%s3513_s1 + $0x2c8] sm:$0xff]  ;;  %v99_v59 = vld [vmem:[%s3513_s1 + $0x278] sm:$0xff] }
  0x26   :  { %274 = vmatmul.mubr.f32.vlgmr.msra.gmra.mrb[0].mxu1 %v134_v1  ;;  %2170 = vmatpush3.bf16.msra.mxu0 %v2972_v2  ;;  %v3061_v1 = vpack.c.bf16 %v91_v57, %v90_v55  ;;  %v3067_v10 = vpack.c.bf16 %v109_v61, %v108_v60  ;;  %v126_v55 = vld [vmem:[%s3513_s1 + $0x350] sm:$0xff]  ;;  %v127_v57 = vld [vmem:[%s3513_s1 + $0x358] sm:$0xff]  ;;  %v129_v24 = vld [vmem:[%s3513_s1 + $0x368] sm:$0xff] }
  0x27   :  { %2201 = vmatpush3.bf16.msra.mxu1 %v2976_v4  ;;  %2172 = vmatprep.subr.bf16.mxu0 %v2978_v6  ;;  %v3121_v61 = vpack.c.bf16 %v127_v57, %v126_v55  ;;  %v3149_v55 = vpack.c.bf16 %v129_v24, %v128_v22  ;;  %v3167_v22 = vpack.c.bf16 %v99_v59, %v98_v58  ;;  %v1401_v58 = vld [vmem:[%s3514_s0 + $0x40] sm:$0xff]  ;;  %v1403_v59 = vld [vmem:[%s3514_s0 + $0x50] sm:$0xff] }
  0x28   :  { %2202 = vmatprep.subr.bf16.mxu1 %v2614_v13  ;;  %1960 = vmatprep.mubr.msk.f32.mxu1 %vm2615_vm0, %v2616_v45 }
  0x29   :  { %343 = vmatprep.mubr.f32.mxu0 %v137_v42  ;;  %v95_v42 = vld [vmem:[%s3513_s1 + $0x258] sm:$0xff] }
  0x2a   :  { %2174 = vmatpush3.bf16.msra.mxu0 %v3000_v23  ;;  %v3117_v60 = vpack.c.bf16 %v95_v42, %v94_v41  ;;  %v115_v41 = vld [vmem:[%s3513_s1 + $0x2f8] sm:$0xff]  ;;  %v3145_v42 = vpack.c.bf16 %v97_v18, %v96_v15  ;;  %v130_v15 = vld [vmem:[%s3513_s1 + $0x370] sm:$0xff] }
  0x2b   :  { %2204 = vmatpush3.bf16.msra.mxu1 %v3007_v28  ;;  %2176 = vmatprep.subr.bf16.mxu0 %v3009_v29  ;;  %v3151_v57 = vpack.c.bf16 %v115_v41, %v114_v31  ;;  %v131_v18 = vld [vmem:[%s3513_s1 + $0x378] sm:$0xff]  ;;  %v136_v31 = vld [vmem:[%s3514_s0 + $0x20] sm:$0xff]  ;;  %v138_v41 = vld [vmem:[%s3514_s0 + $0x30] sm:$0xff] }
  0x2c   :  { %2205 = vmatprep.subr.bf16.mxu1 %v2614_v13  ;;  %v3171_v24 = vpack.c.bf16 %v131_v18, %v130_v15  ;;  %v1400_v15 = vld [vmem:[%s3514_s0 + $0x38] sm:$0xff]  ;;  %v1402_v18 = vld [vmem:[%s3514_s0 + $0x48] sm:$0xff] }
  0x2e   :  { %2178 = vmatpush3.bf16.msra.mxu0 %v3033_v46 }
  0x2f   :  { %2207 = vmatpush3.bf16.msra.mxu1 %v3037_v47  ;;  %2180 = vmatprep.subr.bf16.mxu0 %v3039_v54 }
  0x30   :  { %2208 = vmatprep.subr.bf16.mxu1 %v2614_v13 }
  0x32   :  { %2182 = vmatpush3.bf16.msra.mxu0 %v3061_v1 }
  0x33   :  { %2210 = vmatpush3.bf16.msra.mxu1 %v3065_v9  ;;  %2184 = vmatprep.subr.bf16.mxu0 %v3067_v10 }
  0x34   :  { %2211 = vmatprep.subr.bf16.mxu1 %v2614_v13 }
  0x36   :  { %2186 = vmatpush3.bf16.msra.mxu0 %v3089_v32 }
  0x37   :  { %2213 = vmatpush3.bf16.msra.mxu1 %v3093_v33  ;;  %2188 = vmatprep.subr.bf16.mxu0 %v3095_v40 }
  0x38   :  { %2214 = vmatprep.subr.bf16.mxu1 %v2614_v13 }
  0x3a   :  { %2190 = vmatpush3.bf16.msra.mxu0 %v3117_v60 }
  0x3b   :  { %2216 = vmatpush3.bf16.msra.mxu1 %v3121_v61  ;;  %2192 = vmatprep.subr.bf16.mxu0 %v3123_v11 }
  0x3c   :  { %2217 = vmatprep.subr.bf16.mxu1 %v2614_v13 }
  0x3e   :  { %2194 = vmatpush3.bf16.msra.mxu0 %v3145_v42 }
  0x3f   :  { %2219 = vmatpush3.bf16.msra.mxu1 %v3149_v55  ;;  %2196 = vmatprep.subr.bf16.mxu0 %v3151_v57 }
  0x40   :  { %2220 = vmatprep.subr.bf16.mxu1 %v2614_v13 }
  0x42   :  { %2198 = vmatpush3.bf16.msra.mxu0 %v3167_v22 }
  0x43   :  { %2222 = vmatpush3.bf16.msra.mxu1 %v3171_v24  ;;  %2224 = vmatprep.subr.bf16.mxu0 %v2656_v3 }
  0x44   :  { %2256 = vmatprep.subr.bf16.mxu1 %v2667_v7 }
  0x45   :  { %344 = vmatmul.mubr.f32.vlgmr.msra.gmra.mrb[2].mxu0 %v136_v31  ;;  %v1405_v31 = vld [vmem:[%s3514_s0 + $0x60] sm:$0xff] }
  0x46   :  { %1961 = vmatmul.mubr.f32.vlgmr.msra.gmra.mrb[2].mxu1 %v138_v41  ;;  %2226 = vmatpush3.bf16.msra.mxu0 %v2669_v8  ;;  %v1404_v41 = vld [vmem:[%s3514_s0 + $0x58] sm:$0xff] }
  0x47   :  { %2258 = vmatpush3.bf16.msra.mxu1 %v2681_v12  ;;  %2228 = vmatprep.subr.bf16.mxu0 %v2694_v16 }
  0x48   :  { %2260 = vmatprep.subr.bf16.mxu1 %v2696_v17  ;;  %491 = vmatprep.mubr.f32.mxu0 %v1401_v58  ;;  %v1406_v58 = vld [vmem:[%s3514_s0 + $0x68] sm:$0xff] }
  0x49   :  { %561 = vmatprep.mubr.f32.mxu1 %v1403_v59  ;;  %v1408_v59 = vld [vmem:[%s3514_s0 + $0x78] sm:$0xff] }
  0x4a   :  { %2230 = vmatpush3.bf16.msra.mxu0 %v2708_v21 }
  0x4b   :  { %2262 = vmatpush3.bf16.msra.mxu1 %v2721_v25  ;;  %2232 = vmatprep.subr.bf16.mxu0 %v2723_v26 }
  0x4c   :  { %2264 = vmatprep.subr.bf16.mxu1 %v2734_v30 }
  0x4e   :  { %2234 = vmatpush3.bf16.msra.mxu0 %v2746_v34 }
  0x4f   :  { %2266 = vmatpush3.bf16.msra.mxu1 %v2759_v38  ;;  %2236 = vmatprep.subr.bf16.mxu0 %v2761_v39 }
  0x50   :  { %2268 = vmatprep.subr.bf16.mxu1 %v2773_v43 }
  0x52   :  { %2238 = vmatpush3.bf16.msra.mxu0 %v2794_v50 }
  0x53   :  { %2270 = vmatpush3.bf16.msra.mxu1 %v2798_v51  ;;  %2240 = vmatprep.subr.bf16.mxu0 %v2800_v52 }
  0x54   :  { %2272 = vmatprep.subr.bf16.mxu1 %v2812_v56 }
  0x56   :  { %2242 = vmatpush3.bf16.msra.mxu0 %v2830_v62 }
  0x57   :  { %2274 = vmatpush3.bf16.msra.mxu1 %v2834_v63  ;;  %2244 = vmatprep.subr.bf16.mxu0 %v2836_v0 }
  0x58   :  { %2276 = vmatprep.subr.bf16.mxu1 %v2848_v5 }
  0x5a   :  { %2246 = vmatpush3.bf16.msra.mxu0 %v2866_v14 }
  0x5b   :  { %2278 = vmatpush3.bf16.msra.mxu1 %v2876_v19  ;;  %2248 = vmatprep.subr.bf16.mxu0 %v2878_v20 }
  0x5c   :  { %2280 = vmatprep.subr.bf16.mxu1 %v2890_v27 }
  0x5e   :  { %2250 = vmatpush3.bf16.msra.mxu0 %v2908_v35 }
  0x5f   :  { %2282 = vmatpush3.bf16.msra.mxu1 %v2912_v36  ;;  %2252 = vmatprep.subr.bf16.mxu0 %v2914_v37 }
  0x60   :  { %2284 = vmatprep.subr.bf16.mxu1 %v2926_v44 }
  0x62   :  { %2254 = vmatpush3.bf16.msra.mxu0 %v2938_v48 }
  0x63   :  { %2286 = vmatpush3.bf16.msra.mxu1 %v2942_v49  ;;  %2288 = vmatprep.subr.bf16.mxu0 %v2944_v53 }
  0x64   :  { %2319 = vmatprep.subr.bf16.mxu1 %v2614_v13 }
  0x65   :  { %492 = vmatmul.mubr.f32.vlgmr.msra.gmra.mrb[4].mxu0 %v1400_v15  ;;  %v1410_v15 = vld [vmem:[%s3514_s0 + $0x88] sm:$0xff] }
  0x66   :  { %562 = vmatmul.mubr.f32.vlgmr.msra.gmra.mrb[4].mxu1 %v1402_v18  ;;  %2290 = vmatpush3.bf16.msra.mxu0 %v2972_v2  ;;  %v1407_v18 = vld [vmem:[%s3514_s0 + $0x70] sm:$0xff] }
  0x67   :  { %2321 = vmatpush3.bf16.msra.mxu1 %v2976_v4  ;;  %2292 = vmatprep.subr.bf16.mxu0 %v2978_v6 }
  0x68   :  { %2322 = vmatprep.subr.bf16.mxu1 %v2614_v13  ;;  %631 = vmatprep.mubr.f32.mxu0 %v1405_v31  ;;  %v1409_v31 = vld [vmem:[%s3514_s0 + $0x80] sm:$0xff] }
  0x69   :  { %1995 = vmatprep.mubr.msk.f32.mxu1 %vm2615_vm0, %v2616_v45 }
  0x6a   :  { %2294 = vmatpush3.bf16.msra.mxu0 %v3000_v23 }
  0x6b   :  { %2324 = vmatpush3.bf16.msra.mxu1 %v3007_v28  ;;  %2296 = vmatprep.subr.bf16.mxu0 %v3009_v29 }
  0x6c   :  { %2325 = vmatprep.subr.bf16.mxu1 %v2614_v13 }
  0x6e   :  { %2298 = vmatpush3.bf16.msra.mxu0 %v3033_v46 }
  0x6f   :  { %2327 = vmatpush3.bf16.msra.mxu1 %v3037_v47  ;;  %2300 = vmatprep.subr.bf16.mxu0 %v3039_v54 }
  0x70   :  { %2328 = vmatprep.subr.bf16.mxu1 %v2614_v13 }
  0x72   :  { %2302 = vmatpush3.bf16.msra.mxu0 %v3061_v1 }
  0x73   :  { %2330 = vmatpush3.bf16.msra.mxu1 %v3065_v9  ;;  %2304 = vmatprep.subr.bf16.mxu0 %v3067_v10 }
  0x74   :  { %2331 = vmatprep.subr.bf16.mxu1 %v2614_v13 }
  0x76   :  { %2306 = vmatpush3.bf16.msra.mxu0 %v3089_v32 }
  0x77   :  { %2333 = vmatpush3.bf16.msra.mxu1 %v3093_v33  ;;  %2308 = vmatprep.subr.bf16.mxu0 %v3095_v40 }
  0x78   :  { %2334 = vmatprep.subr.bf16.mxu1 %v2614_v13 }
  0x7a   :  { %2310 = vmatpush3.bf16.msra.mxu0 %v3117_v60 }
  0x7b   :  { %2336 = vmatpush3.bf16.msra.mxu1 %v3121_v61  ;;  %2312 = vmatprep.subr.bf16.mxu0 %v3123_v11 }
  0x7c   :  { %2337 = vmatprep.subr.bf16.mxu1 %v2614_v13 }
  0x7e   :  { %2314 = vmatpush3.bf16.msra.mxu0 %v3145_v42 }
  0x7f   :  { %2339 = vmatpush3.bf16.msra.mxu1 %v3149_v55  ;;  %2316 = vmatprep.subr.bf16.mxu0 %v3151_v57 }
  0x80   :  { %2340 = vmatprep.subr.bf16.mxu1 %v2614_v13 }
  0x82   :  { %2318 = vmatpush3.bf16.msra.mxu0 %v3167_v22 }
  0x83   :  { %2342 = vmatpush3.bf16.msra.mxu1 %v3171_v24  ;;  %2344 = vmatprep.subr.bf16.mxu0 %v2656_v3 }
  0x84   :  { %2376 = vmatprep.subr.bf16.mxu1 %v2667_v7 }
  0x85   :  { %632 = vmatmul.mubr.f32.vlgmr.msra.gmra.mrb[6].mxu0 %v1404_v41  ;;  %v1412_v41 = vld [vmem:[%s3514_s0 + $0x98] sm:$0xff] }
  0x86   :  { %1996 = vmatmul.mubr.f32.vlgmr.msra.gmra.mrb[6].mxu1 %v1406_v58  ;;  %2346 = vmatpush3.bf16.msra.mxu0 %v2669_v8  ;;  %v1411_v58 = vld [vmem:[%s3514_s0 + $0x90] sm:$0xff] }
  0x87   :  { %2378 = vmatpush3.bf16.msra.mxu1 %v2681_v12  ;;  %2348 = vmatprep.subr.bf16.mxu0 %v2694_v16 }
  0x88   :  { %2380 = vmatprep.subr.bf16.mxu1 %v2696_v17  ;;  %780 = vmatprep.mubr.f32.mxu0 %v1408_v59  ;;  %v1413_v59 = vld [vmem:[%s3514_s0 + $0xa0] sm:$0xff] }
  0x89   :  { %850 = vmatprep.mubr.f32.mxu1 %v1410_v15  ;;  %v1415_v15 = vld [vmem:[%s3514_s0 + $0xb0] sm:$0xff] }
  0x8a   :  { %2350 = vmatpush3.bf16.msra.mxu0 %v2708_v21 }
  0x8b   :  { %2382 = vmatpush3.bf16.msra.mxu1 %v2721_v25  ;;  %2352 = vmatprep.subr.bf16.mxu0 %v2723_v26 }
  0x8c   :  { %2384 = vmatprep.subr.bf16.mxu1 %v2734_v30 }
  0x8e   :  { %2354 = vmatpush3.bf16.msra.mxu0 %v2746_v34 }
  0x8f   :  { %2386 = vmatpush3.bf16.msra.mxu1 %v2759_v38  ;;  %2356 = vmatprep.subr.bf16.mxu0 %v2761_v39 }
  0x90   :  { %2388 = vmatprep.subr.bf16.mxu1 %v2773_v43 }
  0x92   :  { %2358 = vmatpush3.bf16.msra.mxu0 %v2794_v50 }
  0x93   :  { %2390 = vmatpush3.bf16.msra.mxu1 %v2798_v51  ;;  %2360 = vmatprep.subr.bf16.mxu0 %v2800_v52 }
  0x94   :  { %2392 = vmatprep.subr.bf16.mxu1 %v2812_v56 }
  0x96   :  { %2362 = vmatpush3.bf16.msra.mxu0 %v2830_v62 }
  0x97   :  { %2394 = vmatpush3.bf16.msra.mxu1 %v2834_v63  ;;  %2364 = vmatprep.subr.bf16.mxu0 %v2836_v0 }
  0x98   :  { %2396 = vmatprep.subr.bf16.mxu1 %v2848_v5 }
  0x9a   :  { %2366 = vmatpush3.bf16.msra.mxu0 %v2866_v14 }
  0x9b   :  { %2398 = vmatpush3.bf16.msra.mxu1 %v2876_v19  ;;  %2368 = vmatprep.subr.bf16.mxu0 %v2878_v20 }
  0x9c   :  { %2400 = vmatprep.subr.bf16.mxu1 %v2890_v27 }
  0x9e   :  { %2370 = vmatpush3.bf16.msra.mxu0 %v2908_v35 }
  0x9f   :  { %2402 = vmatpush3.bf16.msra.mxu1 %v2912_v36  ;;  %2372 = vmatprep.subr.bf16.mxu0 %v2914_v37 }
  0xa0   :  { %2404 = vmatprep.subr.bf16.mxu1 %v2926_v44 }
  0xa2   :  { %2374 = vmatpush3.bf16.msra.mxu0 %v2938_v48 }
  0xa3   :  { %2406 = vmatpush3.bf16.msra.mxu1 %v2942_v49  ;;  %2408 = vmatprep.subr.bf16.mxu0 %v2944_v53 }
  0xa4   :  { %2439 = vmatprep.subr.bf16.mxu1 %v2614_v13 }
  0xa5   :  { %781 = vmatmul.mubr.f32.vlgmr.msra.gmra.mrb[8].mxu0 %v1407_v18  ;;  %v1417_v18 = vld [vmem:[%s3514_s0 + $0xc0] sm:$0xff] }
  0xa6   :  { %851 = vmatmul.mubr.f32.vlgmr.msra.gmra.mrb[8].mxu1 %v1409_v31  ;;  %2410 = vmatpush3.bf16.msra.mxu0 %v2972_v2 }
  0xa7   :  { %2441 = vmatpush3.bf16.msra.mxu1 %v2976_v4  ;;  %2412 = vmatprep.subr.bf16.mxu0 %v2978_v6 }
  0xa8   :  { %2442 = vmatprep.subr.bf16.mxu1 %v2614_v13  ;;  %920 = vmatprep.mubr.f32.mxu0 %v1412_v41 }
  0xa9   :  { %2030 = vmatprep.mubr.msk.f32.mxu1 %vm2615_vm0, %v2616_v45 }
  0xaa   :  { %2414 = vmatpush3.bf16.msra.mxu0 %v3000_v23 }
  0xab   :  { %2444 = vmatpush3.bf16.msra.mxu1 %v3007_v28  ;;  %2416 = vmatprep.subr.bf16.mxu0 %v3009_v29 }
  0xac   :  { %2445 = vmatprep.subr.bf16.mxu1 %v2614_v13 }
  0xae   :  { %2418 = vmatpush3.bf16.msra.mxu0 %v3033_v46 }
  0xaf   :  { %2447 = vmatpush3.bf16.msra.mxu1 %v3037_v47  ;;  %2420 = vmatprep.subr.bf16.mxu0 %v3039_v54 }
  0xb0   :  { %2448 = vmatprep.subr.bf16.mxu1 %v2614_v13 }
  0xb2   :  { %2422 = vmatpush3.bf16.msra.mxu0 %v3061_v1 }
  0xb3   :  { %2450 = vmatpush3.bf16.msra.mxu1 %v3065_v9  ;;  %2424 = vmatprep.subr.bf16.mxu0 %v3067_v10 }
  0xb4   :  { %2451 = vmatprep.subr.bf16.mxu1 %v2614_v13 }
  0xb6   :  { %2426 = vmatpush3.bf16.msra.mxu0 %v3089_v32 }
  0xb7   :  { %2453 = vmatpush3.bf16.msra.mxu1 %v3093_v33  ;;  %2428 = vmatprep.subr.bf16.mxu0 %v3095_v40 }
  0xb8   :  { %2454 = vmatprep.subr.bf16.mxu1 %v2614_v13 }
  0xba   :  { %2430 = vmatpush3.bf16.msra.mxu0 %v3117_v60 }
  0xbb   :  { %2456 = vmatpush3.bf16.msra.mxu1 %v3121_v61  ;;  %2432 = vmatprep.subr.bf16.mxu0 %v3123_v11 }
  0xbc   :  { %2457 = vmatprep.subr.bf16.mxu1 %v2614_v13 }
  0xbe   :  { %2434 = vmatpush3.bf16.msra.mxu0 %v3145_v42 }
  0xbf   :  { %2459 = vmatpush3.bf16.msra.mxu1 %v3149_v55  ;;  %2436 = vmatprep.subr.bf16.mxu0 %v3151_v57 }
  0xc0   :  { %2460 = vmatprep.subr.bf16.mxu1 %v2614_v13 }
  0xc2   :  { %2438 = vmatpush3.bf16.msra.mxu0 %v3167_v22 }
  0xc3   :  { %2462 = vmatpush3.bf16.msra.mxu1 %v3171_v24  ;;  %2464 = vmatprep.subr.bf16.mxu0 %v2656_v3  ;;  %v1414_v3 = vld [vmem:[%s3514_s0 + $0xa8] sm:$0xff] }
  0xc4   :  { %2496 = vmatprep.subr.bf16.mxu1 %v2667_v7  ;;  %v1416_v7 = vld [vmem:[%s3514_s0 + $0xb8] sm:$0xff] }
  0xc5   :  { %921 = vmatmul.mubr.f32.vlgmr.msra.gmra.mrb[10].mxu0 %v1411_v58 }
  0xc6   :  { %2031 = vmatmul.mubr.f32.vlgmr.msra.gmra.mrb[10].mxu1 %v1413_v59  ;;  %2466 = vmatpush3.bf16.msra.mxu0 %v2669_v8  ;;  %v1419_v8 = vld [vmem:[%s3514_s0 + $0xd0] sm:$0xff] }
  0xc7   :  { %2498 = vmatpush3.bf16.msra.mxu1 %v2681_v12  ;;  %2468 = vmatprep.subr.bf16.mxu0 %v2694_v16 }
  0xc8   :  { %2500 = vmatprep.subr.bf16.mxu1 %v2696_v17  ;;  %1069 = vmatprep.mubr.f32.mxu0 %v1415_v15 }
  0xc9   :  { %1139 = vmatprep.mubr.f32.mxu1 %v1417_v18 }
  0xca   :  { %2470 = vmatpush3.bf16.msra.mxu0 %v2708_v21 }
  0xcb   :  { %2502 = vmatpush3.bf16.msra.mxu1 %v2721_v25  ;;  %2472 = vmatprep.subr.bf16.mxu0 %v2723_v26 }
  0xcc   :  { %2504 = vmatprep.subr.bf16.mxu1 %v2734_v30 }
  0xce   :  { %2474 = vmatpush3.bf16.msra.mxu0 %v2746_v34  ;;  %v1418_v34 = vld [vmem:[%s3514_s0 + $0xc8] sm:$0xff] }
  0xcf   :  { %2506 = vmatpush3.bf16.msra.mxu1 %v2759_v38  ;;  %2476 = vmatprep.subr.bf16.mxu0 %v2761_v39  ;;  %v1420_v38 = vld [vmem:[%s3514_s0 + $0xd8] sm:$0xff] }
  0xd0   :  { %2508 = vmatprep.subr.bf16.mxu1 %v2773_v43 }
  0xd2   :  { %2478 = vmatpush3.bf16.msra.mxu0 %v2794_v50 }
  0xd3   :  { %2510 = vmatpush3.bf16.msra.mxu1 %v2798_v51  ;;  %2480 = vmatprep.subr.bf16.mxu0 %v2800_v52 }
  0xd4   :  { %2512 = vmatprep.subr.bf16.mxu1 %v2812_v56 }
  0xd6   :  { %2482 = vmatpush3.bf16.msra.mxu0 %v2830_v62 }
  0xd7   :  { %2514 = vmatpush3.bf16.msra.mxu1 %v2834_v63  ;;  %2484 = vmatprep.subr.bf16.mxu0 %v2836_v0 }
  0xd8   :  { %2516 = vmatprep.subr.bf16.mxu1 %v2848_v5 }
  0xda   :  { %2486 = vmatpush3.bf16.msra.mxu0 %v2866_v14 }
  0xdb   :  { %2518 = vmatpush3.bf16.msra.mxu1 %v2876_v19  ;;  %2488 = vmatprep.subr.bf16.mxu0 %v2878_v20 }
  0xdc   :  { %2520 = vmatprep.subr.bf16.mxu1 %v2890_v27 }
  0xde   :  { %2490 = vmatpush3.bf16.msra.mxu0 %v2908_v35  ;;  %v1295_v35 = vld [vmem:[%s3515_s3] sm:$0xff] }
  0xdf   :  { %2522 = vmatpush3.bf16.msra.mxu1 %v2912_v36  ;;  %2492 = vmatprep.subr.bf16.mxu0 %v2914_v37  ;;  %v1296_v36 = vld [vmem:[%s3515_s3 + $0x8] sm:$0xff]  ;;  %v1297_v37 = vld [vmem:[%s3515_s3 + $0x10] sm:$0xff] }
  0xe0   :  { %2524 = vmatprep.subr.bf16.mxu1 %v2926_v44  ;;  %v2584_v44 = vpack.c.bf16 %v1296_v36, %v1295_v35  ;;  %v1422_v36 = vld [vmem:[%s3517_s4] ss:$0 sm:$0xff] }
  0xe2   :  { %2494 = vmatpush3.bf16.msra.mxu0 %v2938_v48  ;;  %v1298_v48 = vld [vmem:[%s3515_s3 + $0x18] sm:$0xff] }
  0xe3   :  { %2526 = vmatpush3.bf16.msra.mxu1 %v2942_v49  ;;  %2528 = vmatprep.subr.bf16.mxu0 %v2944_v53  ;;  %v2587_v49 = vpack.c.bf16 %v1298_v48, %v1297_v37  ;;  %v1299_v53 = vld [vmem:[%s3515_s3 + $0x20] sm:$0xff] }
  0xe4   :  { %2559 = vmatprep.subr.bf16.mxu1 %v2614_v13 }
  0xe5   :  { %1070 = vmatmul.mubr.f32.vlgmr.msra.gmra.mrb[12].mxu0 %v1414_v3 }
  0xe6   :  { %1140 = vmatmul.mubr.f32.vlgmr.msra.gmra.mrb[12].mxu1 %v1416_v7  ;;  %2530 = vmatpush3.bf16.msra.mxu0 %v2972_v2  ;;  %v1300_v2 = vld [vmem:[%s3515_s3 + $0x28] sm:$0xff] }
  0xe7   :  { %2532 = vmatprep.subr.bf16.mxu0 %v2978_v6  ;;  %2561 = vmatpush3.bf16.msra.mxu1 %v2976_v4  ;;  %v2590_v4 = vpack.c.bf16 %v1300_v2, %v1299_v53  ;;  %v1301_v6 = vld [vmem:[%s3515_s3 + $0x30] sm:$0xff] }
  0xe8   :  { %2562 = vmatprep.subr.bf16.mxu1 %v2614_v13  ;;  %1209 = vmatprep.mubr.f32.mxu0 %v1419_v8 }
  0xe9   :  { %2065 = vmatprep.mubr.msk.f32.mxu1 %vm2615_vm0, %v2616_v45 }
  0xea   :  { %2534 = vmatpush3.bf16.msra.mxu0 %v3000_v23  ;;  %v1302_v23 = vld [vmem:[%s3515_s3 + $0x38] sm:$0xff] }
  0xeb   :  { %2536 = vmatprep.subr.bf16.mxu0 %v3009_v29  ;;  %2564 = vmatpush3.bf16.msra.mxu1 %v3007_v28  ;;  %v2593_v28 = vpack.c.bf16 %v1302_v23, %v1301_v6  ;;  %v1303_v29 = vld [vmem:[%s3515_s3 + $0x40] sm:$0xff] }
  0xec   :  { %2565 = vmatprep.subr.bf16.mxu1 %v2614_v13 }
  0xee   :  { %2538 = vmatpush3.bf16.msra.mxu0 %v3033_v46 }
  0xef   :  { %2540 = vmatprep.subr.bf16.mxu0 %v3039_v54  ;;  %2567 = vmatpush3.bf16.msra.mxu1 %v3037_v47 }
  0xf0   :  { %2568 = vmatprep.subr.bf16.mxu1 %v2614_v13 }
  0xf2   :  { %2542 = vmatpush3.bf16.msra.mxu0 %v3061_v1 }
  0xf3   :  { %2544 = vmatprep.subr.bf16.mxu0 %v3067_v10  ;;  %2570 = vmatpush3.bf16.msra.mxu1 %v3065_v9  ;;  %v1305_v9 = vld [vmem:[%s3515_s3 + $0x50] sm:$0xff]  ;;  %v1306_v10 = vld [vmem:[%s3515_s3 + $0x58] sm:$0xff] }
  0xf4   :  { %2571 = vmatprep.subr.bf16.mxu1 %v2614_v13 }
  0xf6   :  { %2546 = vmatpush3.bf16.msra.mxu0 %v3089_v32 }
  0xf7   :  { %2548 = vmatprep.subr.bf16.mxu0 %v3095_v40  ;;  %2573 = vmatpush3.bf16.msra.mxu1 %v3093_v33  ;;  %v2599_v40 = vpack.c.bf16 %v1306_v10, %v1305_v9 }
  0xf8   :  { %v1455_v12 = vpop.f32.mrb[0].mxu0  ;;  %2574 = vmatprep.subr.bf16.mxu1 %v2614_v13 }
  0xf9   :  { %v1490_v16 = vpop.f32.mrb[0].mxu1  ;;  %v1456_v17 = vpop.f32.mrb[1].mxu0 }
  0xfa   :  { %v1457_v21 = vadd.f32 %v1456_v17, %v1455_v12  ;;  %v1491_v25 = vpop.f32.mrb[1].mxu1  ;;  %2550 = vmatpush3.bf16.msra.mxu0 %v3117_v60 }
  0xfb   :  { %v1492_v26 = vadd.f32 %v1491_v25, %v1490_v16  ;;  %2552 = vmatprep.subr.bf16.mxu0 %v3123_v11  ;;  %2576 = vmatpush3.bf16.msra.mxu1 %v3121_v61  ;;  %v1307_v61 = vld [vmem:[%s3515_s3 + $0x60] sm:$0xff]  ;;  %v1308_v11 = vld [vmem:[%s3515_s3 + $0x68] sm:$0xff] }
  0xfc   :  { %2577 = vmatprep.subr.bf16.mxu1 %v2614_v13 }
  0xfd   :  { %v276_v30 = vadd.f32 %v1492_v26, %v1457_v21 }
  0xfe   :  { %2554 = vmatpush3.bf16.msra.mxu0 %v3145_v42 }
  0xff   :  { %2556 = vmatprep.subr.bf16.mxu0 %v3151_v57  ;;  %2579 = vmatpush3.bf16.msra.mxu1 %v3149_v55  ;;  %v2602_v55 = vpack.c.bf16 %v1308_v11, %v1307_v61 }
 0x100   :  { %2580 = vmatprep.subr.bf16.mxu1 %v2614_v13 }
 0x102   :  { %2558 = vmatpush3.bf16.msra.mxu0 %v3167_v22  ;;  %v1309_v22 = vld [vmem:[%s3515_s3 + $0x70] sm:$0xff] }
 0x103   :  { %2582 = vmatpush3.bf16.msra.mxu1 %v3171_v24  ;;  %2583 = vmatprep.subr.bf16.mxu0 %v2614_v13  ;;  %v1310_v24 = vld [vmem:[%s3515_s3 + $0x78] sm:$0xff] }
 0x104   :  { %v2605_v31 = vpack.c.bf16 %v1310_v24, %v1309_v22 }
 0x105   :  { %1210 = vmatmul.mubr.f32.vlgmr.msra.gmra.mrb[14].mxu0 %v1418_v34 }
 0x106   :  { %2066 = vmatmul.mubr.f32.vlgmr.msra.gmra.mrb[14].mxu1 %v1420_v38  ;;  %2100 = vmatprep.mubr.msk.f32.mxu0 %vm2615_vm0, %v2616_v45  ;;  %v1304_v45 = vld [vmem:[%s3515_s3 + $0x48] sm:$0xff] }
 0x107   :  { %2585 = vmatpush3.bf16.msra.mxu0 %v2584_v44  ;;  %v2596_v46 = vpack.c.bf16 %v1304_v45, %v1303_v29 }
 0x108   :  { %2586 = vmatprep.subr.bf16.mxu0 %v2614_v13 }
 0x10b   :  { %2588 = vmatpush3.bf16.msra.mxu0 %v2587_v49 }
 0x10c   :  { %2589 = vmatprep.subr.bf16.mxu0 %v2614_v13 }
 0x10f   :  { %2591 = vmatpush3.bf16.msra.mxu0 %v2590_v4 }
 0x110   :  { %2592 = vmatprep.subr.bf16.mxu0 %v2614_v13 }
 0x113   :  { %2594 = vmatpush3.bf16.msra.mxu0 %v2593_v28 }
 0x114   :  { %2595 = vmatprep.subr.bf16.mxu0 %v2614_v13 }
 0x117   :  { %2597 = vmatpush3.bf16.msra.mxu0 %v2596_v46 }
 0x118   :  { %v1525_v39 = vpop.f32.mrb[2].mxu0  ;;  %2598 = vmatprep.subr.bf16.mxu0 %v2614_v13 }
 0x119   :  { %v1526_v43 = vpop.f32.mrb[3].mxu0  ;;  %v415_v50 = vpop.f32.mrb[2].mxu1 }
 0x11a   :  { %v1527_v51 = vadd.f32 %v1526_v43, %v1525_v39  ;;  %v1962_v52 = vpop.f32.mrb[3].mxu1 }
 0x11b   :  { %2600 = vmatpush3.bf16.msra.mxu0 %v2599_v40 }
 0x11c   :  { %v346_v56 = vadd.f32 %v1527_v51, %v276_v30  ;;  %2601 = vmatprep.subr.bf16.mxu0 %v2614_v13 }
 0x11e   :  { %v3446_v62 = vadd.f32 %v415_v50, %v346_v56 }
 0x11f   :  { %2603 = vmatpush3.bf16.msra.mxu0 %v2602_v55 }
 0x120   :  { %2604 = vmatprep.subr.bf16.mxu0 %v2614_v13 }
 0x123   :  { %2606 = vmatpush3.bf16.msra.mxu0 %v2605_v31 }
 0x138   :  { %v1577_v63 = vpop.f32.mrb[4].mxu0 }
 0x139   :  { %v1612_v0 = vpop.f32.mrb[4].mxu1  ;;  %v1578_v5 = vpop.f32.mrb[5].mxu0 }
 0x13a   :  { %v1579_v14 = vadd.f32 %v1578_v5, %v1577_v63  ;;  %v1613_v19 = vpop.f32.mrb[5].mxu1 }
 0x13b   :  { %v1614_v20 = vadd.f32 %v1613_v19, %v1612_v0  ;;  %v1421_v19 = vld [vmem:[%s3516_s2] ss:$0 sm:$0xff] }
 0x13d   :  { %v564_v27 = vadd.f32 %v1614_v20, %v1579_v14 }
 0x158   :  { %v1647_v47 = vpop.f32.mrb[6].mxu0 }
 0x159   :  { %v1648_v54 = vpop.f32.mrb[7].mxu0  ;;  %v703_v1 = vpop.f32.mrb[6].mxu1 }
 0x15a   :  { %v1649_v32 = vadd.f32 %v1648_v54, %v1647_v47  ;;  %v1997_v33 = vpop.f32.mrb[7].mxu1 }
 0x15c   :  { %v634_v60 = vadd.f32 %v1649_v32, %v564_v27 }
 0x15e   :  { %v704_v42 = vadd.f32 %v703_v1, %v634_v60 }
 0x160   :  { %v707_v57 = vmax.f32 %v3446_v62, %v704_v42 }
 0x178   :  { %v1699_v41 = vpop.f32.mrb[8].mxu0 }
 0x179   :  { %v1734_v58 = vpop.f32.mrb[8].mxu1  ;;  %v1700_v59 = vpop.f32.mrb[9].mxu0 }
 0x17a   :  { %v1701_v15 = vadd.f32 %v1700_v59, %v1699_v41  ;;  %v1735_v18 = vpop.f32.mrb[9].mxu1 }
 0x17b   :  { %v1736_v3 = vadd.f32 %v1735_v18, %v1734_v58 }
 0x17d   :  { %v853_v7 = vadd.f32 %v1736_v3, %v1701_v15 }
 0x198   :  { %v1769_v8 = vpop.f32.mrb[10].mxu0 }
 0x199   :  { %v1770_v12 = vpop.f32.mrb[11].mxu0  ;;  %v992_v13 = vpop.f32.mrb[10].mxu1 }
 0x19a   :  { %v1771_v16 = vadd.f32 %v1770_v12, %v1769_v8  ;;  %v2032_v17 = vpop.f32.mrb[11].mxu1 }
 0x19c   :  { %v923_v21 = vadd.f32 %v1771_v16, %v853_v7 }
 0x19e   :  { %v993_v25 = vadd.f32 %v992_v13, %v923_v21 }
 0x1a0   :  { %v996_v26 = vmax.f32 %v707_v57, %v993_v25 }
 0x1b8   :  { %v1821_v30 = vpop.f32.mrb[12].mxu0 }
 0x1b9   :  { %v1856_v34 = vpop.f32.mrb[12].mxu1  ;;  %v1822_v38 = vpop.f32.mrb[13].mxu0 }
 0x1ba   :  { %v1823_v39 = vadd.f32 %v1822_v38, %v1821_v30  ;;  %v1857_v43 = vpop.f32.mrb[13].mxu1 }
 0x1bb   :  { %v1858_v50 = vadd.f32 %v1857_v43, %v1856_v34 }
 0x1bd   :  { %v1142_v51 = vadd.f32 %v1858_v50, %v1823_v39 }
 0x1d8   :  { %v1891_v52 = vpop.f32.mrb[14].mxu0 }
 0x1d9   :  { %v1892_v56 = vpop.f32.mrb[15].mxu0  ;;  %v1281_v62 = vpop.f32.mrb[14].mxu1 }
 0x1da   :  { %v1893_v63 = vadd.f32 %v1892_v56, %v1891_v52  ;;  %v2067_v0 = vpop.f32.mrb[15].mxu1 }
 0x1dc   :  { %v1212_v5 = vadd.f32 %v1893_v63, %v1142_v51 }
 0x1de   :  { %v1282_v14 = vadd.f32 %v1281_v62, %v1212_v5 }
 0x1e0   :  { %v1285_v20 = vmax.f32 %v996_v26, %v1282_v14 }
 0x1e2   :  { %v1293_v27 = vadd.f32 %v1421_v19, %v1285_v20 }
 0x1e4   :  { %v1294_v35 = vmax.f32 %v1293_v27, 0.0 }
 0x1e6   :  { %2101 = vmatmul.mubr.f32.vlgmr.msra.gmra.mrb[16].mxu0 %v1294_v35 }
 0x2b9   :  { %v1384_v37 = vpop.f32.mrb[16].mxu0 }
 0x2ba   :  { %v1385_v44 = vadd.f32 %v1422_v36, %v1384_v37  ;;  %v2102_v48 = vpop.f32.mrb[17].mxu0 }
 0x2bc   :  { %v1388_v49 = vsub.f32 0.0, %v1385_v44 }
 0x2be   :  { %v1389_v53 = vmul.f32 1.442695, %v1388_v49 }
 0x2c0   :  { %2610 = vpow2.f32 %v1389_v53 }
 0x2ca   :  { %v2611_v2 = vpop.eup %2610 }
 0x2cb   :  { %v1391_v4 = vadd.f32 1.0, %v2611_v2 }
 0x2cd   :  { %2612 = vrcp.f32 %v1391_v4 }
 0x2d7   :  { %v2613_v6 = vpop.eup %2612 }
 0x2d8   :  { %1395 = vst.msk [vmem:[%s3518_s5] sm:$0xff] %vm1394_vm1, %v2613_v6 }

</bundles_post_ra>
